<compile_context>
chip_gen: v6e
topology: v6e:2x2x1
jax: 0.10.0
libtpu: 0.0.40
codegen_flags: <defaults>
</compile_context>

<pallas_src>
import jax
import jax.numpy as jnp
from jax.experimental import pallas as pl
from jax.experimental.pallas import tpu as pltpu

IN_FEATURES = 28 * 28 * 1   # 784
OUT_FEATURES = 10


def _round_up(n, m):
    return ((n + m - 1) // m) * m


def _pick_tile_config():
    """Generation-aware (batch-tile cap, vmem_limit_bytes).

    128 MiB-VMEM parts (v5e/v6e): 8192-row tiles (~25 MiB each, ~51 MiB
    double-buffered) under an 80 MiB limit.  v7x (64 MiB physical per TC) or
    unknown backend: 4096-row tiles (~13 MiB each, ~26 MiB double-buffered)
    under a 40 MiB limit, leaving headroom for compiler scratch.
    """
    vmem_bytes = None
    try:
        info = pltpu.get_tpu_info()
        vmem_bytes = getattr(info, "vmem_capacity_bytes", None)
    except Exception:
        vmem_bytes = None
    if vmem_bytes is not None and vmem_bytes >= (100 << 20):
        return 8192, 80 << 20
    return 4096, 40 << 20


def softmax_linear_kernel(x_ref, w_ref, b_ref, o_ref):
    # (TB,784)@(784,10) on the MXU with full-f32 precision (negligible cost in
    # this HBM-bound kernel), then bias + exp + row-sum + exact normalize.
    logits = jnp.dot(
        x_ref[...], w_ref[...],
        preferred_element_type=jnp.float32,
        precision=jax.lax.Precision.HIGHEST,
    )
    logits = logits + b_ref[...]                      # (TB, 10) + (1, 10) broadcast
    x_exp = jnp.exp(logits)                           # matches torch x.exp() (no max-sub)
    exp_sum = jnp.sum(x_exp, axis=1, keepdims=True)   # matches .sum(dim=1, keepdim=True)
    o_ref[...] = (x_exp / exp_sum).astype(o_ref.dtype)


def softmax_model_forward(x_nchw, weight, bias, tb_max=None):
    """x_nchw: (B, 1, 28, 28) float32. weight: (784, 10). bias: (10,)."""
    B = x_nchw.shape[0]
    x_flat = x_nchw.reshape(B, IN_FEATURES)           # same as torch .view(-1, 784)
    b2d = bias.reshape(1, OUT_FEATURES)

    if tb_max is None:
        tb_cap, vmem_limit = _pick_tile_config()
    else:
        tb_cap, vmem_limit = tb_max, 40 << 20

    # Batch tile: multiple of 8 (sublane), capped by tb_cap.  No array padding:
    # the grid is ceil(B / tb) with a ragged final block handled by Pallas.
    tb = max(8, min(tb_cap, _round_up(B, 8)))
    grid = (pl.cdiv(B, tb),)

    cost = pl.CostEstimate(
        flops=2 * B * IN_FEATURES * OUT_FEATURES,
        transcendentals=B * OUT_FEATURES,
        bytes_accessed=4 * (B * IN_FEATURES + B * OUT_FEATURES
                            + IN_FEATURES * OUT_FEATURES + OUT_FEATURES),
    )

    def run(batch_semantics):
        return pl.pallas_call(
            softmax_linear_kernel,
            out_shape=jax.ShapeDtypeStruct((B, OUT_FEATURES), jnp.float32),
            grid=grid,
            in_specs=[
                # x streams tile-by-tile over the batch axis (double-buffered).
                pl.BlockSpec((tb, IN_FEATURES), lambda i: (i, 0)),
                # weight and bias are small and resident across the whole grid.
                pl.BlockSpec((IN_FEATURES, OUT_FEATURES), lambda i: (0, 0)),
                pl.BlockSpec((1, OUT_FEATURES), lambda i: (0, 0)),
            ],
            out_specs=pl.BlockSpec((tb, OUT_FEATURES), lambda i: (i, 0)),
            compiler_params=pltpu.CompilerParams(
                dimension_semantics=(batch_semantics,),
                vmem_limit_bytes=vmem_limit,
            ),
            cost_estimate=cost,
        )(x_flat, weight, b2d)

    # CORE_PARALLEL actually shards the batch grid across v7x's two TensorCores
    # (string "parallel" has no codegen effect); fall back if unsupported.
    try:
        return jax.block_until_ready(run(pltpu.CORE_PARALLEL))
    except Exception:
        return jax.block_until_ready(run("parallel"))


if __name__ == "__main__":
    key = jax.random.PRNGKey(0)
    k_x, k_w, k_b = jax.random.split(key, 3)

    batch_size = 8
    # Deterministic synthetic input consistent with Fashion-MNIST NCHW images.
    x = jax.random.normal(k_x, (batch_size, 1, 28, 28), dtype=jnp.float32)

    # Deterministic parameter init mimicking torch.nn.Linear default
    # (uniform in [-1/sqrt(fan_in), 1/sqrt(fan_in)]).
    bound = 1.0 / (IN_FEATURES ** 0.5)
    weight = jax.random.uniform(k_w, (IN_FEATURES, OUT_FEATURES), jnp.float32, -bound, bound)
    bias = jax.random.uniform(k_b, (OUT_FEATURES,), jnp.float32, -bound, bound)

    def reference(x_img):
        logits = jnp.dot(x_img.reshape(x_img.shape[0], -1), weight,
                         precision=jax.lax.Precision.HIGHEST) + bias
        e = jnp.exp(logits)
        return e / jnp.sum(e, axis=1, keepdims=True)

    # Single-tile case.
    out = jax.block_until_ready(softmax_model_forward(x, weight, bias))
    ref = reference(x)
    assert out.shape == (batch_size, OUT_FEATURES)
    assert bool(jnp.allclose(out, ref, atol=1e-4, rtol=1e-4)), \
        float(jnp.max(jnp.abs(out - ref)))

    # Multi-tile + ragged final block case (grid of 3, last tile partially valid).
    b2 = 37
    x2 = jax.random.normal(jax.random.PRNGKey(1), (b2, 1, 28, 28), dtype=jnp.float32)
    out2 = jax.block_until_ready(softmax_model_forward(x2, weight, bias, tb_max=16))
    ref2 = reference(x2)
    assert out2.shape == (b2, OUT_FEATURES)
    assert bool(jnp.allclose(out2, ref2, atol=1e-4, rtol=1e-4)), \
        float(jnp.max(jnp.abs(out2 - ref2)))

    print("KERNEL_OK")
</pallas_src>

<mosaic_0001>
module attributes {stable_mosaic.version = 11 : i64} {
  func.func @softmax_linear_kernel(%arg0: i32, %arg1: memref<8x784xf32, #tpu.memory_space<vmem>>, %arg2: memref<784x10xf32, #tpu.memory_space<vmem>>, %arg3: memref<1x10xf32, #tpu.memory_space<vmem>>, %arg4: memref<8x10xf32, #tpu.memory_space<vmem>>) attributes {dimension_semantics = [#tpu.dimension_semantics<core_parallel>], iteration_bounds = array<i64: 1>, scalar_prefetch = 0 : i64, scratch_operands = 0 : i64, tpu.core_type = #tpu.core_type<tc>, window_params = [{transform_indices = @transform_0, window_bounds = array<i64: 8, 784>}, {pipeline_mode = #tpu.pipeline_mode<synchronous>, transform_indices = @transform_1, window_bounds = array<i64: 784, 10>}, {pipeline_mode = #tpu.pipeline_mode<synchronous>, transform_indices = @transform_2, window_bounds = array<i64: 1, 10>}, {transform_indices = @transform_3, window_bounds = array<i64: 8, 10>}]} {
    %c0 = arith.constant 0 : index
    %c0_0 = arith.constant 0 : index
    %0 = vector.load %arg1[%c0, %c0_0] : memref<8x784xf32, #tpu.memory_space<vmem>>, vector<8x784xf32>
    %c0_1 = arith.constant 0 : index
    %c0_2 = arith.constant 0 : index
    %1 = vector.load %arg2[%c0_1, %c0_2] : memref<784x10xf32, #tpu.memory_space<vmem>>, vector<784x10xf32>
    %cst = arith.constant dense<0.000000e+00> : vector<8x10xf32>
    %2 = tpu.matmul %0, %1, %cst {dimension_numbers = #tpu.dot_dimension_numbers<[1], [0], [0], [1], [0, 0, 1, 1], [], []>, precision = #tpu.contract_precision<fp32>} : vector<8x784xf32>, vector<784x10xf32>, vector<8x10xf32> -> vector<8x10xf32>
    %c0_3 = arith.constant 0 : index
    %c0_4 = arith.constant 0 : index
    %3 = vector.load %arg3[%c0_3, %c0_4] : memref<1x10xf32, #tpu.memory_space<vmem>>, vector<1x10xf32>
    %4 = vector.broadcast %3 : vector<1x10xf32> to vector<8x10xf32>
    %5 = arith.addf %2, %4 : vector<8x10xf32>
    %6 = math.exp %5 : vector<8x10xf32>
    %cst_5 = arith.constant dense<0.000000e+00> : vector<8xf32>
    %7 = vector.multi_reduction <add>, %6, %cst_5 [1] : vector<8x10xf32> to vector<8xf32>
    %8 = vector.shape_cast %7 : vector<8xf32> to vector<8x1xf32>
    %9 = vector.broadcast %8 : vector<8x1xf32> to vector<8x10xf32>
    %10 = arith.divf %6, %9 : vector<8x10xf32>
    %c0_6 = arith.constant 0 : index
    %c0_7 = arith.constant 0 : index
    %11 = vector.load %arg4[%c0_6, %c0_7] : memref<8x10xf32, #tpu.memory_space<vmem>>, vector<8x10xf32>
    tpu.vector_store %arg4[%c0_6, %c0_7], %10 {strides = array<i32>} : memref<8x10xf32, #tpu.memory_space<vmem>>, vector<8x10xf32>,
    return
  }
  func.func @transform_0(%arg0: i32) -> (i32, i32) {
    %c0_i32 = arith.constant 0 : i32
    %c0_i32_0 = arith.constant 0 : i32
    return %arg0, %c0_i32 : i32, i32
  }
  func.func @transform_1(%arg0: i32) -> (i32, i32) {
    %c0_i32 = arith.constant 0 : i32
    %c0_i32_0 = arith.constant 0 : i32
    %c0_i32_1 = arith.constant 0 : i32
    return %c0_i32, %c0_i32_0 : i32, i32
  }
  func.func @transform_2(%arg0: i32) -> (i32, i32) {
    %c0_i32 = arith.constant 0 : i32
    %c0_i32_0 = arith.constant 0 : i32
    %c0_i32_1 = arith.constant 0 : i32
    return %c0_i32, %c0_i32_0 : i32, i32
  }
  func.func @transform_3(%arg0: i32) -> (i32, i32) {
    %c0_i32 = arith.constant 0 : i32
    %c0_i32_0 = arith.constant 0 : i32
    return %arg0, %c0_i32 : i32, i32
  }
}

module attributes {stable_mosaic.version = 11 : i64} {
  func.func @softmax_linear_kernel(%arg0: i32, %arg1: memref<8x784xf32, #tpu.memory_space<vmem>>, %arg2: memref<784x10xf32, #tpu.memory_space<vmem>>, %arg3: memref<1x10xf32, #tpu.memory_space<vmem>>, %arg4: memref<8x10xf32, #tpu.memory_space<vmem>>) attributes {dimension_semantics = [#tpu.dimension_semantics<parallel>], iteration_bounds = array<i64: 1>, scalar_prefetch = 0 : i64, scratch_operands = 0 : i64, tpu.core_type = #tpu.core_type<tc>, window_params = [{transform_indices = @transform_0, window_bounds = array<i64: 8, 784>}, {pipeline_mode = #tpu.pipeline_mode<synchronous>, transform_indices = @transform_1, window_bounds = array<i64: 784, 10>}, {pipeline_mode = #tpu.pipeline_mode<synchronous>, transform_indices = @transform_2, window_bounds = array<i64: 1, 10>}, {transform_indices = @transform_3, window_bounds = array<i64: 8, 10>}]} {
    %c0 = arith.constant 0 : index
    %c0_0 = arith.constant 0 : index
    %0 = vector.load %arg1[%c0, %c0_0] : memref<8x784xf32, #tpu.memory_space<vmem>>, vector<8x784xf32>
    %c0_1 = arith.constant 0 : index
    %c0_2 = arith.constant 0 : index
    %1 = vector.load %arg2[%c0_1, %c0_2] : memref<784x10xf32, #tpu.memory_space<vmem>>, vector<784x10xf32>
    %cst = arith.constant dense<0.000000e+00> : vector<8x10xf32>
    %2 = tpu.matmul %0, %1, %cst {dimension_numbers = #tpu.dot_dimension_numbers<[1], [0], [0], [1], [0, 0, 1, 1], [], []>, precision = #tpu.contract_precision<fp32>} : vector<8x784xf32>, vector<784x10xf32>, vector<8x10xf32> -> vector<8x10xf32>
    %c0_3 = arith.constant 0 : index
    %c0_4 = arith.constant 0 : index
    %3 = vector.load %arg3[%c0_3, %c0_4] : memref<1x10xf32, #tpu.memory_space<vmem>>, vector<1x10xf32>
    %4 = vector.broadcast %3 : vector<1x10xf32> to vector<8x10xf32>
    %5 = arith.addf %2, %4 : vector<8x10xf32>
    %6 = math.exp %5 : vector<8x10xf32>
    %cst_5 = arith.constant dense<0.000000e+00> : vector<8xf32>
    %7 = vector.multi_reduction <add>, %6, %cst_5 [1] : vector<8x10xf32> to vector<8xf32>
    %8 = vector.shape_cast %7 : vector<8xf32> to vector<8x1xf32>
    %9 = vector.broadcast %8 : vector<8x1xf32> to vector<8x10xf32>
    %10 = arith.divf %6, %9 : vector<8x10xf32>
    %c0_6 = arith.constant 0 : index
    %c0_7 = arith.constant 0 : index
    %11 = vector.load %arg4[%c0_6, %c0_7] : memref<8x10xf32, #tpu.memory_space<vmem>>, vector<8x10xf32>
    tpu.vector_store %arg4[%c0_6, %c0_7], %10 {strides = array<i32>} : memref<8x10xf32, #tpu.memory_space<vmem>>, vector<8x10xf32>,
    return
  }
  func.func @transform_0(%arg0: i32) -> (i32, i32) {
    %c0_i32 = arith.constant 0 : i32
    %c0_i32_0 = arith.constant 0 : i32
    return %arg0, %c0_i32 : i32, i32
  }
  func.func @transform_1(%arg0: i32) -> (i32, i32) {
    %c0_i32 = arith.constant 0 : i32
    %c0_i32_0 = arith.constant 0 : i32
    %c0_i32_1 = arith.constant 0 : i32
    return %c0_i32, %c0_i32_0 : i32, i32
  }
  func.func @transform_2(%arg0: i32) -> (i32, i32) {
    %c0_i32 = arith.constant 0 : i32
    %c0_i32_0 = arith.constant 0 : i32
    %c0_i32_1 = arith.constant 0 : i32
    return %c0_i32, %c0_i32_0 : i32, i32
  }
  func.func @transform_3(%arg0: i32) -> (i32, i32) {
    %c0_i32 = arith.constant 0 : i32
    %c0_i32_0 = arith.constant 0 : i32
    return %arg0, %c0_i32 : i32, i32
  }
}

</mosaic_0001>

<bundles_post_ra>
// kernel: tpu_custom_call.1
= control target key start
LH: loop header
LB: loop body
LE: loop exit
PB: predicated region body
PF: predicated region fallthrough
CT: control target
= control target key end

     0   :  { %s3972_s12 = sld [smem:[#allocation0]]   ;;  %s6082_s0 = inlined_call_operand.vmem [shape: f32[8,784], index: 0, kind: input, shape index: {}]   ;;  %s6083_s1 = inlined_call_operand.vmem [shape: f32[784,10], index: 1, kind: input, shape index: {}]   ;;  %s6084_s2 = inlined_call_operand.vmem [shape: f32[1,10], index: 2, kind: input, shape index: {}]   ;;  %s6085_s3 = inlined_call_operand.hbm [shape: f32[8,10], index: 3, kind: output, shape index: {}]  }
   0x1   :  { %v68_v0 = vld [vmem:[%s6083_s1 + $0xf8] sm:$0xff]  ;;  %v67_v2 = vld [vmem:[%s6083_s1 + $0xf0] sm:$0xff]  ;;  %v66_v7 = vld [vmem:[%s6083_s1 + $0xe8] sm:$0xff] }
   0x2   :  { %v52_v1 = vld [vmem:[%s6083_s1 + $0x78] sm:$0xff]  ;;  %v3983_v3 = vand.u32 4294901760, %v68_v0  ;;  %v3987_v5 = vand.u32 4294901760, %v67_v2  ;;  %v51_v6 = vld [vmem:[%s6083_s1 + $0x70] sm:$0xff]  ;;  %v50_v8 = vld [vmem:[%s6083_s1 + $0x68] sm:$0xff]  ;;  %v4000_v10 = vand.u32 4294901760, %v66_v7 }
   0x3   :  { %v3985_v4 = vand.u32 4294901760, %v52_v1  ;;  %v3998_v9 = vand.u32 4294901760, %v51_v6  ;;  %v4002_v11 = vand.u32 4294901760, %v50_v8  ;;  %v65_v12 = vld [vmem:[%s6083_s1 + $0xe0] sm:$0xff]  ;;  %v64_v14 = vld [vmem:[%s6083_s1 + $0xd8] sm:$0xff]  ;;  %v4031_v20 = vld [vmem:[%s6083_s1 + $0xd0] sm:$0xff] }
   0x4   :  { %v49_v13 = vld [vmem:[%s6083_s1 + $0x60] sm:$0xff]  ;;  %3227 = vmatprep.subr.mxu0 %v3983_v3  ;;  %v4014_v15 = vand.u32 4294901760, %v65_v12  ;;  %v4018_v17 = vand.u32 4294901760, %v64_v14  ;;  %v4021_v18 = vsub.f32 %v68_v0, %v3983_v3  ;;  %v4026_v19 = vld [vmem:[%s6083_s1 + $0x58] sm:$0xff]  ;;  %v4036_v21 = vld [vmem:[%s6083_s1 + $0x50] sm:$0xff]  ;;  %v4046_v24 = vand.u32 4294901760, %v4031_v20 }
   0x5   :  { %v4016_v16 = vand.u32 4294901760, %v49_v13  ;;  %3228 = vmatpush3.msra.mxu0 %v3985_v4  ;;  %v4040_v22 = vand.u32 4294901760, %v4026_v19  ;;  %v4043_v23 = vsub.f32 %v52_v1, %v3985_v4  ;;  %v4049_v25 = vsub.f32 %v67_v2, %v3987_v5  ;;  %v4054_v26 = vld [vmem:[%s6083_s1 + $0xc8] sm:$0xff]  ;;  %v4064_v28 = vld [vmem:[%s6083_s1 + $0xc0] sm:$0xff]  ;;  %v4116_v46 = vld [vmem:[%s6083_s1 + $0xb8] sm:$0xff] }
   0x6   :  { %v4059_v27 = vld [vmem:[%s6083_s1 + $0x48] sm:$0xff]  ;;  %3229 = vmatprep.subr.mxu0 %v3987_v5  ;;  %v6099_v29 = vand.u32 4294901760, %v4021_v18  ;;  %v4069_v30 = vand.u32 4294901760, %v4036_v21  ;;  %v4072_v31 = vsub.f32 %v51_v6, %v3998_v9  ;;  %v4075_v32 = vand.u32 4294901760, %v4054_v26  ;;  %v4089_v37 = vld [vmem:[%s6083_s1 + $0x40] sm:$0xff]  ;;  %v4129_v51 = vld [vmem:[%s6083_s1 + $0x38] sm:$0xff] }
   0x7   :  { %3230 = vmatpush3.msra.mxu0 %v3998_v9  ;;  %v6098_v33 = vand.u32 4294901760, %v4043_v23  ;;  %v6096_v34 = vand.u32 4294901760, %v4049_v25  ;;  %v4081_v35 = vsub.f32 %v66_v7, %v4000_v10  ;;  %v4084_v36 = vand.u32 4294901760, %v4059_v27  ;;  %v4139_v56 = vld [vmem:[%s6083_s1 + $0xb0] sm:$0xff]  ;;  %v4169_v2 = vld [vmem:[%s6083_s1 + $0xa8] sm:$0xff] }
   0x8   :  { %6289 = vst [vmem:[#allocation5_spill] sm:$0xff] %v4069_v30  ;;  %6290 = vst [vmem:[#allocation6_spill] sm:$0xff] %v4075_v32  ;;  %3231 = vmatprep.subr.mxu0 %v4000_v10  ;;  %v374_v38 = vsub.f32 %v4021_v18, %v6099_v29  ;;  %v6095_v39 = vand.u32 4294901760, %v4072_v31  ;;  %v4097_v40 = vsub.f32 %v50_v8, %v4002_v11  ;;  %v4100_v41 = vand.u32 4294901760, %v4064_v28  ;;  %v4154_v61 = vld [vmem:[%s6083_s1 + $0x30] sm:$0xff] }
   0x9   :  { %6291 = vst [vmem:[#allocation7_spill] sm:$0xff] %v4084_v36  ;;  %3232 = vmatpush3.msra.mxu0 %v4002_v11  ;;  %v262_v42 = vsub.f32 %v4043_v23, %v6098_v33  ;;  %v381_v43 = vsub.f32 %v4049_v25, %v6096_v34  ;;  %v6093_v44 = vand.u32 4294901760, %v4081_v35  ;;  %v4111_v45 = vsub.f32 %v65_v12, %v4014_v15  ;;  %v4305_v33 = vld [vmem:[%s6083_s1 + $0x88] sm:$0xff] }
   0xa   :  { %6292 = vst [vmem:[#allocation8_spill] sm:$0xff] %v4100_v41  ;;  %3233 = vmatprep.subr.mxu0 %v4014_v15  ;;  %v375_v47 = vand.u32 4294901760, %v374_v38  ;;  %v269_v48 = vsub.f32 %v4072_v31, %v6095_v39  ;;  %v6091_v49 = vand.u32 4294901760, %v4097_v40  ;;  %v4124_v50 = vand.u32 4294901760, %v4089_v37 }
   0xb   :  { %3234 = vmatpush3.msra.mxu0 %v4016_v16  ;;  %v263_v52 = vand.u32 4294901760, %v262_v42  ;;  %v382_v53 = vand.u32 4294901760, %v381_v43  ;;  %v388_v54 = vsub.f32 %v4081_v35, %v6093_v44  ;;  %v6090_v55 = vand.u32 4294901760, %v4111_v45  ;;  %v4278_v44 = vld [vmem:[%s6083_s1 + $0x90] sm:$0xff] }
   0xc   :  { %6293 = vst [vmem:[#allocation9_spill] sm:$0xff] %v4124_v50  ;;  %3235 = vmatprep.subr.mxu0 %v4018_v17  ;;  %3262 = vmatprep.subr.mxu1 %v375_v47  ;;  %v270_v57 = vand.u32 4294901760, %v269_v48  ;;  %v276_v58 = vsub.f32 %v4097_v40, %v6091_v49  ;;  %v4146_v59 = vsub.f32 %v49_v13, %v4016_v16  ;;  %v4149_v60 = vand.u32 4294901760, %v4116_v46  ;;  %v4183_v13 = vld [vmem:[%s6083_s1 + $0x28] sm:$0xff]  ;;  %v4262_v49 = vld [vmem:[%s6083_s1 + $0x18] sm:$0xff] }
   0xd   :  { %3236 = vmatpush3.msra.mxu0 %v4040_v22  ;;  %3263 = vmatpush3.msra.mxu1 %v263_v52  ;;  %v389_v62 = vand.u32 4294901760, %v388_v54  ;;  %v395_v63 = vsub.f32 %v4111_v45, %v6090_v55  ;;  %v4161_v0 = vsub.f32 %v64_v14, %v4018_v17  ;;  %v4164_v1 = vand.u32 4294901760, %v4129_v51 }
   0xe   :  { %6294 = vst [vmem:[#allocation10_spill] sm:$0xff] %v4149_v60  ;;  %3237 = vmatprep.subr.mxu0 %v4046_v24  ;;  %3264 = vmatprep.subr.mxu1 %v382_v53  ;;  %v277_v6 = vand.u32 4294901760, %v276_v58  ;;  %v6088_v7 = vand.u32 4294901760, %v4146_v59  ;;  %v4175_v8 = vsub.f32 %v4026_v19, %v4040_v22  ;;  %v4178_v12 = vand.u32 4294901760, %v4139_v56 }
   0xf   :  { %6295 = vst [vmem:[#allocation11_spill] sm:$0xff] %v4164_v1  ;;  %3238 = vmatpush3.msra.mxu0 %v4069_v30  ;;  %3265 = vmatpush3.msra.mxu1 %v270_v57  ;;  %v396_v14 = vand.u32 4294901760, %v395_v63  ;;  %v6086_v38 = vand.u32 4294901760, %v4161_v0  ;;  %v4189_v42 = vsub.f32 %v4031_v20, %v4046_v24  ;;  %v4192_v19 = vand.u32 4294901760, %v4154_v61  ;;  %v4209_v20 = vld [vmem:[%s6083_s1 + $0xa0] sm:$0xff] }
  0x10   :  { %6296 = vst [vmem:[#allocation12_spill] sm:$0xff] %v4178_v12  ;;  %3239 = vmatprep.subr.mxu0 %v4075_v32  ;;  %3266 = vmatprep.subr.mxu1 %v389_v62  ;;  %v283_v43 = vsub.f32 %v4146_v59, %v6088_v7  ;;  %v6087_v47 = vand.u32 4294901760, %v4175_v8  ;;  %v4201_v48 = vsub.f32 %v4036_v21, %v4069_v30  ;;  %v4204_v52 = vand.u32 4294901760, %v4169_v2 }
  0x11   :  { %6297 = vst [vmem:[#allocation13_spill] sm:$0xff] %v4192_v19  ;;  %3240 = vmatpush3.msra.mxu0 %v4084_v36  ;;  %3267 = vmatpush3.msra.mxu1 %v277_v6  ;;  %v402_v53 = vsub.f32 %v4161_v0, %v6086_v38  ;;  %v6089_v54 = vand.u32 4294901760, %v4189_v42  ;;  %v4218_v21 = vsub.f32 %v4054_v26, %v4075_v32  ;;  %v4221_v57 = vand.u32 4294901760, %v4183_v13  ;;  %v4235_v26 = vld [vmem:[%s6083_s1 + $0x20] sm:$0xff] }
  0x12   :  { %6298 = vst [vmem:[#allocation14_spill] sm:$0xff] %v4204_v52  ;;  %3241 = vmatprep.subr.mxu0 %v4100_v41  ;;  %3268 = vmatprep.subr.mxu1 %v396_v14  ;;  %v284_v58 = vand.u32 4294901760, %v283_v43  ;;  %v290_v62 = vsub.f32 %v4175_v8, %v6087_v47  ;;  %v6092_v63 = vand.u32 4294901760, %v4201_v48  ;;  %v4230_v6 = vsub.f32 %v4059_v27, %v4084_v36  ;;  %v4248_v27 = vld [vmem:[%s6083_s1 + $0x98] sm:$0xff] }
  0x13   :  { %6299 = vst [vmem:[#allocation15_spill] sm:$0xff] %v4221_v57  ;;  %3242 = vmatpush3.msra.mxu0 %v4124_v50  ;;  %v403_v38 = vand.u32 4294901760, %v402_v53  ;;  %v409_v14 = vsub.f32 %v4189_v42, %v6089_v54  ;;  %v6094_v43 = vand.u32 4294901760, %v4218_v21  ;;  %v4243_v47 = vand.u32 4294901760, %v4209_v20 }
  0x14   :  { %3269 = vmatpush3.msra.mxu1 %v284_v58  ;;  %3243 = vmatprep.subr.mxu0 %v4149_v60  ;;  %v291_v7 = vand.u32 4294901760, %v290_v62  ;;  %v297_v53 = vsub.f32 %v4201_v48, %v6092_v63  ;;  %v6097_v54 = vand.u32 4294901760, %v4230_v6  ;;  %v4257_v55 = vsub.f32 %v4064_v28, %v4100_v41 }
  0x15   :  { %6300 = vst [vmem:[#allocation16_spill] sm:$0xff] %v4243_v47  ;;  %3270 = vmatprep.subr.mxu1 %v403_v38  ;;  %3244 = vmatpush3.msra.mxu0 %v4164_v1  ;;  %v410_v58 = vand.u32 4294901760, %v409_v14  ;;  %v416_v62 = vsub.f32 %v4218_v21, %v6094_v43  ;;  %v4269_v63 = vand.u32 4294901760, %v4235_v26  ;;  %v4273_v28 = vsub.f32 %v4089_v37, %v4124_v50  ;;  %v4291_v37 = vld [vmem:[%s6083_s1 + $0x10] sm:$0xff] }
  0x16   :  { %3271 = vmatpush3.msra.mxu1 %v291_v7  ;;  %3245 = vmatprep.subr.mxu0 %v4178_v12  ;;  %v298_v38 = vand.u32 4294901760, %v297_v53  ;;  %v304_v14 = vsub.f32 %v4230_v6, %v6097_v54  ;;  %v6100_v43 = vand.u32 4294901760, %v4257_v55  ;;  %v4286_v39 = vand.u32 4294901760, %v4248_v27 }
  0x17   :  { %6301 = vst [vmem:[#allocation17_spill] sm:$0xff] %v4269_v63  ;;  %3272 = vmatprep.subr.mxu1 %v410_v58  ;;  %3246 = vmatpush3.msra.mxu0 %v4192_v19  ;;  %v417_v7 = vand.u32 4294901760, %v416_v62  ;;  %v6103_v53 = vand.u32 4294901760, %v4273_v28  ;;  %v4297_v34 = vsub.f32 %v4116_v46, %v4149_v60  ;;  %v4300_v54 = vand.u32 4294901760, %v4262_v49 }
  0x18   :  { %3273 = vmatpush3.msra.mxu1 %v298_v38  ;;  %3247 = vmatprep.subr.mxu0 %v4204_v52  ;;  %v305_v58 = vand.u32 4294901760, %v304_v14  ;;  %v423_v62 = vsub.f32 %v4257_v55, %v6100_v43  ;;  %v4313_v46 = vsub.f32 %v4129_v51, %v4164_v1  ;;  %v4316_v29 = vand.u32 4294901760, %v4278_v44 }
  0x19   :  { %6302 = vst [vmem:[#allocation18_spill] sm:$0xff] %v4300_v54 }
  0x1a   :  { %6303 = vst [vmem:[#allocation19_spill] sm:$0xff] %v4316_v29 }
  0x1b   :  { %8 = vsyncpa [#allocation3], 0  ;;  %3274 = vmatprep.subr.mxu1 %v417_v7  ;;  %3248 = vmatpush3.msra.mxu0 %v4221_v57  ;;  %v311_v38 = vsub.f32 %v4273_v28, %v6103_v53  ;;  %v4325_v43 = vsub.f32 %v4139_v56, %v4178_v12  ;;  %v4328_v51 = vand.u32 4294901760, %v4291_v37  ;;  %v4333_v1 = vld [vmem:[%s6083_s1 + $0x8] sm:$0xff]  ;;  %v424_v7 = vand.u32 4294901760, %v423_v62  ;;  %v4347_v12 = vld [vmem:[%s6083_s1 + $0x80] sm:$0xff] }
  0x1c   :  { %3275 = vmatpush3.msra.mxu1 %v305_v58  ;;  %3249 = vmatprep.subr.mxu0 %v4243_v47  ;;  %v4339_v14 = vsub.f32 %v4154_v61, %v4192_v19  ;;  %v4342_v56 = vand.u32 4294901760, %v4305_v33  ;;  %v6307_v60 = vand.u32 4294901760, %v4297_v34  ;;  %v4356_v61 = vsub.f32 %v4169_v2, %v4204_v52  ;;  %v4373_v2 = vld [vmem:[%s6083_s1] sm:$0xff]  ;;  %s3951_s15 = smov [#allocation2]  }
  0x1d   :  { %6304 = vst [vmem:[#allocation20_spill] sm:$0xff] %v4328_v51  ;;  %3250 = vmatpush3.msra.mxu0 %v4269_v63  ;;  %v312_v58 = vand.u32 4294901760, %v311_v38  ;;  %v6120_v53 = vand.u32 4294901760, %v4325_v43  ;;  %3276 = vmatprep.subr.mxu1 %v424_v7  ;;  %v6309_v19 = vand.u32 4294901760, %v4313_v46  ;;  %v4364_v38 = vand.u32 4294901760, %v4333_v1  ;;  %v30_v41 = vld [vmem:[%s6082_s0] sm:$0xff] }
  0x1e   :  { %6305 = vst [vmem:[#allocation21_spill] sm:$0xff] %v4339_v14  ;;  %6306 = vst [vmem:[#allocation22_spill] sm:$0xff] %v4342_v56  ;;  %v430_v62 = vsub.f32 %v4297_v34, %v6307_v60  ;;  %3251 = vmatprep.subr.mxu0 %v4286_v39  ;;  %v4368_v60 = vsub.f32 %v4183_v13, %v4221_v57  ;;  %v4381_v52 = vand.u32 4294901760, %v4347_v12  ;;  %v31_v13 = vld [vmem:[%s6082_s0 + $0x8] sm:$0xff]  ;;  %vm142_vm0 = vcmask 130048   ;;  %s3208_s16 = sshll.u32 %s3951_s15, 4  ;;  %s3209_s16 = int_to_ptr.vmem [resolvable:$true] %s3208_s16 }
  0x1f   :  { %6308 = vst [vmem:[#allocation23_spill] sm:$0xff] %v4356_v61  ;;  %v318_v50 = vsub.f32 %v4313_v46, %v6309_v19  ;;  %3277 = vmatpush3.msra.mxu1 %v312_v58  ;;  %3252 = vmatpush3.msra.mxu0 %v4300_v54  ;;  %v437_v19 = vsub.f32 %v4325_v43, %v6120_v53  ;;  %v6310_v58 = vand.u32 4294901760, %v4339_v14  ;;  %vm3950_vm1 = vmmov 0   ;;  %s3925_s20 = scalar_lea.vmem %s3209_s16, 128  ;;  %p3930_p1 = scmp.lt.s32.totalorder %s3209_s16, %s3209_s16 }
  0x20   :  { %v431_v7 = vand.u32 4294901760, %v430_v62  ;;  %3253 = vmatprep.subr.mxu0 %v4316_v29  ;;  %v4393_v53 = vsub.f32 %v4209_v20, %v4243_v47  ;;  %v4407_v36 = vsub.f32 %v4235_v26, %v4269_v63  ;;  %v4422_v26 = vand.u32 4294901760, %v30_v41  ;;  %p3926_p0 = scmp.ne.s32.totalorder %s3209_s16, %s3925_s20  ;;  %p3931_p2 = scmp.lt.s32.totalorder %s3925_s20, %s3925_s20 }
  0x21   :  { %v319_v57 = vand.u32 4294901760, %v318_v50  ;;  %v325_v62 = vsub.f32 %v4339_v14, %v6310_v58  ;;  %v438_v32 = vand.u32 4294901760, %v437_v19  ;;  %3254 = vmatpush3.msra.mxu0 %v4328_v51  ;;  %v6311_v50 = vand.u32 4294901760, %v4356_v61 }
  0x22   :  { %3278 = vmatprep.subr.mxu1 %v431_v7  ;;  %v4403_v58 = vand.u32 4294901760, %v4373_v2  ;;  %3255 = vmatprep.subr.mxu0 %v4342_v56  ;;  %v6312_v7 = vand.u32 4294901760, %v4368_v60  ;;  %v6131_v47 = vand.u32 4294901760, %v4393_v53  ;;  %v4414_v14 = vand.u32 4294901760, %v31_v13  ;;  %6314 = vst [vmem:[#allocation25_spill] sm:$0xff] %v4422_v26  ;;  %p3932_p3 = por %p3931_p2, %p3930_p1 }
  0x23   :  { %v444_v30 = vsub.f32 %v4356_v61, %v6311_v50  ;;  %3279 = vmatpush3.msra.mxu1 %v319_v57  ;;  %v326_v20 = vand.u32 4294901760, %v325_v62  ;;  %3256 = vmatpush3.msra.mxu0 %v4364_v38  ;;  %v6132_v61 = vand.u32 4294901760, %v4407_v36  ;;  %v4420_v57 = vsub.f32 %v4248_v27, %v4286_v39 }
  0x24   :  { %v332_v19 = vsub.f32 %v4368_v60, %v6312_v7  ;;  %6313 = vst [vmem:[#allocation24_spill] sm:$0xff] %v4414_v14  ;;  %3280 = vmatprep.subr.mxu1 %v438_v32  ;;  %3257 = vmatprep.subr.mxu0 %v4381_v52  ;;  %v451_v7 = vsub.f32 %v4393_v53, %v6131_v47  ;;  %vm3193_vm2 = vcmask 80896   ;;  %p3933_p4 = pnand %p3932_p3, %p3926_p0 }
  0x25   :  { %v445_v50 = vand.u32 4294901760, %v444_v30  ;;  %3281 = vmatpush3.msra.mxu1 %v326_v20  ;;  %v4429_v30 = vsub.f32 %v31_v13, %v4414_v14  ;;  %v4433_v32 = vsub.f32 %v4262_v49, %v4300_v54  ;;  %3258 = vmatpush3.msra.mxu0 %v4403_v58  ;;  %v339_v27 = vsub.f32 %v4407_v36, %v6132_v61 }
  0x26   :  { %v333_v62 = vand.u32 4294901760, %v332_v19  ;;  %v4441_v19 = vsub.f32 %v30_v41, %v4422_v26  ;;  %v4445_v13 = vsub.f32 %v4278_v44, %v4316_v29  ;;  %v452_v47 = vand.u32 4294901760, %v451_v7  ;;  %3297 = vmatprep.subr.mxu0 %v4021_v18  ;;  %483 = vmatprep.mubr.f32.mxu1 %v4414_v14 }
  0x27   :  { %3282 = vmatprep.subr.mxu1 %v445_v50  ;;  %v6137_v49 = vand.u32 4294901760, %v4429_v30  ;;  %v6140_v50 = vand.u32 4294901760, %v4433_v32  ;;  %v4452_v61 = vsub.f32 %v4291_v37, %v4328_v51  ;;  %v340_v20 = vand.u32 4294901760, %v339_v27 }
  0x28   :  { %3283 = vmatpush3.msra.mxu1 %v333_v62  ;;  %v6315_v41 = vand.u32 4294901760, %v4420_v57  ;;  %v6316_v62 = vand.u32 4294901760, %v4441_v19  ;;  %v6317_v14 = vand.u32 4294901760, %v4445_v13  ;;  %v4479_v51 = vsub.f32 %v4333_v1, %v4364_v38 }
  0x29   :  { %3284 = vmatprep.subr.mxu1 %v452_v47  ;;  %v245_v7 = vsub.f32 %v4429_v30, %v6137_v49  ;;  %v346_v37 = vsub.f32 %v4433_v32, %v6140_v50  ;;  %v6319_v29 = vand.u32 4294901760, %v4452_v61 }
  0x2a   :  { %v458_v54 = vsub.f32 %v4420_v57, %v6315_v41  ;;  %v4469_v41 = vsub.f32 %v4305_v33, %v4342_v56  ;;  %3285 = vmatpush3.msra.mxu1 %v340_v20  ;;  %v251_v47 = vsub.f32 %v4441_v19, %v6316_v62  ;;  %v465_v49 = vsub.f32 %v4445_v13, %v6317_v14 }
  0x2b   :  { %6318 = vst [vmem:[#allocation26_spill] sm:$0xff] %v4479_v51  ;;  %v246_v50 = vand.u32 4294901760, %v245_v7  ;;  %v347_v27 = vand.u32 4294901760, %v346_v37  ;;  %v353_v33 = vsub.f32 %v4452_v61, %v6319_v29  ;;  %v6147_v62 = vand.u32 4294901760, %v4479_v51 }
  0x2c   :  { %v459_v44 = vand.u32 4294901760, %v458_v54  ;;  %v6148_v54 = vand.u32 4294901760, %v4469_v41  ;;  %v252_v20 = vand.u32 4294901760, %v251_v47  ;;  %v466_v56 = vand.u32 4294901760, %v465_v49 }
  0x2d   :  { %v4488_v14 = vsub.f32 %v4347_v12, %v4381_v52  ;;  %247 = vmatprep.mubr.f32.mxu0 %v246_v50  ;;  %v354_v1 = vand.u32 4294901760, %v353_v33  ;;  %v4495_v29 = vsub.f32 %v4373_v2, %v4403_v58  ;;  %v360_v49 = vsub.f32 %v4479_v51, %v6147_v62  ;;  %v6322_v33 = vld [vmem:[#allocation21_spill] sm:$0xff]  ;;  %v6335_v62 = vld [vmem:[#allocation16_spill] sm:$0xff] }
  0x2e   :  { %3286 = vmatprep.subr.mxu1 %v459_v44  ;;  %v472_v7 = vsub.f32 %v4469_v41, %v6148_v54  ;;  %253 = vmatmul.mubr.f32.vlgmr.msra.gmra.mxu0 %v252_v20  ;;  %v6323_v20 = vld [vmem:[#allocation5_spill] sm:$0xff]  ;;  %v6336_v54 = vand.u32 4294901760, %v4021_v18  ;;  %v6344_v18 = vand.u32 4294901760, %v4081_v35 }
  0x2f   :  { %6320 = vst [vmem:[#allocation27_spill] sm:$0xff] %v4488_v14  ;;  %3287 = vmatpush3.msra.mxu1 %v347_v27  ;;  %6321 = vst [vmem:[#allocation28_spill] sm:$0xff] %v4495_v29  ;;  %v6146_v12 = vand.u32 4294901760, %v4488_v14  ;;  %3298 = vmatpush3.msra.mxu0 %v4043_v23  ;;  %v6145_v44 = vand.u32 4294901760, %v4495_v29  ;;  %v361_v37 = vand.u32 4294901760, %v360_v49  ;;  %v6326_v49 = vld [vmem:[#allocation7_spill] sm:$0xff] }
  0x30   :  { %3288 = vmatprep.subr.mxu1 %v466_v56  ;;  %v473_v50 = vand.u32 4294901760, %v472_v7  ;;  %3299 = vmatprep.subr.mxu0 %v4049_v25  ;;  %v6325_v7 = vld [vmem:[#allocation6_spill] sm:$0xff] }
  0x31   :  { %3289 = vmatpush3.msra.mxu1 %v354_v1  ;;  %v479_v2 = vsub.f32 %v4488_v14, %v6146_v12  ;;  %620 = vmatprep.mubr.f32.mxu0 %v4429_v30  ;;  %v367_v56 = vsub.f32 %v4495_v29, %v6145_v44  ;;  %v6324_v1 = vld [vmem:[#allocation23_spill] sm:$0xff]  ;;  %v6333_v44 = vld [vmem:[#allocation14_spill] sm:$0xff] }
  0x32   :  { %3300 = vmatpush3.msra.mxu0 %v4072_v31  ;;  %3290 = vmatprep.subr.mxu1 %v473_v50  ;;  %v6327_v50 = vld [vmem:[#allocation8_spill] sm:$0xff]  ;;  %v6334_v12 = vld [vmem:[#allocation15_spill] sm:$0xff] }
  0x33   :  { %3301 = vmatprep.subr.mxu0 %v4081_v35  ;;  %3291 = vmatpush3.msra.mxu1 %v361_v37  ;;  %v480_v27 = vand.u32 4294901760, %v479_v2  ;;  %v368_v47 = vand.u32 4294901760, %v367_v56  ;;  %v6328_v37 = vld [vmem:[#allocation9_spill] sm:$0xff]  ;;  %v6329_v2 = vld [vmem:[#allocation10_spill] sm:$0xff]  ;;  %v6330_v56 = vld [vmem:[#allocation11_spill] sm:$0xff]  ;;  %v6349_v35 = vand.u32 4294901760, %v4441_v19 }
  0x34   :  { %3302 = vmatpush3.msra.mxu0 %v4097_v40 }
  0x35   :  { %3292 = vmatprep.subr.mxu1 %v480_v27  ;;  %3303 = vmatprep.subr.mxu0 %v4111_v45  ;;  %v6331_v27 = vld [vmem:[#allocation12_spill] sm:$0xff] }
  0x36   :  { %3293 = vmatpush3.msra.mxu1 %v368_v47  ;;  %3304 = vmatpush3.msra.mxu0 %v4146_v59  ;;  %v6332_v47 = vld [vmem:[#allocation13_spill] sm:$0xff] }
  0x37   :  { %485 = vmatmul.mubr.f32.vlgmr.msra.gmra.mxu1 %v4422_v26  ;;  %3305 = vmatprep.subr.mxu0 %v4161_v0  ;;  %v6337_v26 = vld [vmem:[#allocation18_spill] sm:$0xff] }
  0x38   :  { %3332 = vmatprep.subr.mxu1 %v3983_v3  ;;  %3306 = vmatpush3.msra.mxu0 %v4175_v8 }
  0x39   :  { %3333 = vmatpush3.msra.mxu1 %v3985_v4  ;;  %3307 = vmatprep.subr.mxu0 %v4189_v42 }
  0x3a   :  { %3334 = vmatprep.subr.mxu1 %v3987_v5  ;;  %3308 = vmatpush3.msra.mxu0 %v4201_v48 }
  0x3b   :  { %3335 = vmatpush3.msra.mxu1 %v3998_v9  ;;  %3309 = vmatprep.subr.mxu0 %v4218_v21 }
  0x3c   :  { %3336 = vmatprep.subr.mxu1 %v4000_v10  ;;  %3310 = vmatpush3.msra.mxu0 %v4230_v6 }
  0x3d   :  { %3337 = vmatpush3.msra.mxu1 %v4002_v11  ;;  %3311 = vmatprep.subr.mxu0 %v4257_v55 }
  0x3e   :  { %3338 = vmatprep.subr.mxu1 %v4014_v15  ;;  %3312 = vmatpush3.msra.mxu0 %v4273_v28 }
  0x3f   :  { %3339 = vmatpush3.msra.mxu1 %v4016_v16  ;;  %3313 = vmatprep.subr.mxu0 %v4297_v34 }
  0x40   :  { %3340 = vmatprep.subr.mxu1 %v4018_v17  ;;  %3314 = vmatpush3.msra.mxu0 %v4313_v46 }
  0x41   :  { %3341 = vmatpush3.msra.mxu1 %v4040_v22  ;;  %3315 = vmatprep.subr.mxu0 %v4325_v43 }
  0x42   :  { %3342 = vmatprep.subr.mxu1 %v4046_v24  ;;  %3316 = vmatpush3.msra.mxu0 %v6322_v33 }
  0x43   :  { %3343 = vmatpush3.msra.mxu1 %v6323_v20  ;;  %3317 = vmatprep.subr.mxu0 %v6324_v1 }
  0x44   :  { %3344 = vmatprep.subr.mxu1 %v6325_v7  ;;  %3318 = vmatpush3.msra.mxu0 %v4368_v60 }
  0x45   :  { %3345 = vmatpush3.msra.mxu1 %v6326_v49  ;;  %3319 = vmatprep.subr.mxu0 %v4393_v53 }
  0x46   :  { %3346 = vmatprep.subr.mxu1 %v6327_v50  ;;  %3320 = vmatpush3.msra.mxu0 %v4407_v36 }
  0x47   :  { %3347 = vmatpush3.msra.mxu1 %v6328_v37  ;;  %3321 = vmatprep.subr.mxu0 %v4420_v57 }
  0x48   :  { %3348 = vmatprep.subr.mxu1 %v6329_v2  ;;  %3322 = vmatpush3.msra.mxu0 %v4433_v32 }
  0x49   :  { %3349 = vmatpush3.msra.mxu1 %v6330_v56  ;;  %3323 = vmatprep.subr.mxu0 %v4445_v13 }
  0x4a   :  { %3350 = vmatprep.subr.mxu1 %v6331_v27  ;;  %3324 = vmatpush3.msra.mxu0 %v4452_v61 }
  0x4b   :  { %3351 = vmatpush3.msra.mxu1 %v6332_v47  ;;  %3325 = vmatprep.subr.mxu0 %v4469_v41 }
  0x4c   :  { %3352 = vmatprep.subr.mxu1 %v6333_v44  ;;  %3326 = vmatpush3.msra.mxu0 %v4479_v51  ;;  %v6338_v51 = vand.u32 4294901760, %v4043_v23  ;;  %v6345_v23 = vand.u32 4294901760, %v4097_v40  ;;  %v6351_v40 = vand.u32 4294901760, %v4175_v8  ;;  %v6357_v8 = vand.u32 4294901760, %v4273_v28 }
  0x4d   :  { %3353 = vmatpush3.msra.mxu1 %v6334_v12  ;;  %3327 = vmatprep.subr.mxu0 %v4488_v14  ;;  %v6339_v12 = vld [vmem:[#allocation19_spill] sm:$0xff]  ;;  %v6343_v14 = vld [vmem:[#allocation22_spill] sm:$0xff] }
  0x4e   :  { %3354 = vmatprep.subr.mxu1 %v6335_v62  ;;  %3328 = vmatpush3.msra.mxu0 %v4495_v29  ;;  %v6340_v62 = vand.u32 4294901760, %v4049_v25  ;;  %v6341_v29 = vld [vmem:[#allocation20_spill] sm:$0xff]  ;;  %v6346_v25 = vand.u32 4294901760, %v4111_v45  ;;  %v6352_v45 = vand.u32 4294901760, %v4189_v42 }
  0x4f   :  { %3355 = vmatpush3.msra.mxu1 %v4269_v63  ;;  %623 = vmatmul.mubr.f32.vlgmr.msra.gmra.mxu0 %v4441_v19  ;;  %v6342_v63 = vand.u32 4294901760, %v4072_v31  ;;  %v6347_v31 = vand.u32 4294901760, %v4429_v30  ;;  %v6363_v30 = vand.u32 4294901760, %v6324_v1 }
  0x50   :  { %3356 = vmatprep.subr.mxu1 %v4286_v39  ;;  %3367 = vmatprep.subr.mxu0 %v6336_v54  ;;  %v6365_v54 = vand.u32 4294901760, %v4368_v60 }
  0x51   :  { %3357 = vmatpush3.msra.mxu1 %v6337_v26  ;;  %3368 = vmatpush3.msra.mxu0 %v6338_v51  ;;  %v6350_v51 = vand.u32 4294901760, %v4161_v0  ;;  %v6354_v0 = vand.u32 4294901760, %v4218_v21  ;;  %v6359_v21 = vand.u32 4294901760, %v4313_v46 }
  0x52   :  { %3358 = vmatprep.subr.mxu1 %v6339_v12  ;;  %3369 = vmatprep.subr.mxu0 %v6340_v62 }
  0x53   :  { %3359 = vmatpush3.msra.mxu1 %v6341_v29  ;;  %3370 = vmatpush3.msra.mxu0 %v6342_v63  ;;  %v6348_v63 = vand.u32 4294901760, %v4146_v59  ;;  %v6353_v59 = vand.u32 4294901760, %v4201_v48  ;;  %v82_v48 = vld [vmem:[%s6083_s1 + $0x168] sm:$0xff] }
  0x54   :  { %3360 = vmatprep.subr.mxu1 %v6343_v14  ;;  %3371 = vmatprep.subr.mxu0 %v6344_v18  ;;  %v4656_v46 = vand.u32 4294901760, %v82_v48  ;;  %v6369_v18 = vand.u32 4294901760, %v4420_v57 }
  0x55   :  { %3361 = vmatpush3.msra.mxu1 %v4364_v38  ;;  %3372 = vmatpush3.msra.mxu0 %v6345_v23  ;;  %v79_v23 = vld [vmem:[%s6083_s1 + $0x150] sm:$0xff] }
  0x56   :  { %3362 = vmatprep.subr.mxu1 %v4381_v52  ;;  %3373 = vmatprep.subr.mxu0 %v6346_v25  ;;  %6362 = vst [vmem:[#allocation21_spill] sm:$0xff] %v4656_v46  ;;  %v4690_v60 = vsub.f32 %v82_v48, %v4656_v46  ;;  %v6384_v48 = vld [vmem:[#allocation16_spill] sm:$0xff] }
  0x57   :  { %3363 = vmatpush3.msra.mxu1 %v4403_v58  ;;  %727 = vmatprep.mubr.f32.mxu1 %v6347_v31  ;;  %v6370_v31 = vand.u32 4294901760, %v4433_v32 }
  0x58   :  { %3374 = vmatpush3.msra.mxu0 %v6348_v63  ;;  %731 = vmatmul.mubr.f32.vlgmr.msra.gmra.mxu1 %v6349_v35  ;;  %v6372_v35 = vand.u32 4294901760, %v4445_v13  ;;  %v78_v13 = vld [vmem:[%s6083_s1 + $0x148] sm:$0xff] }
  0x59   :  { %3375 = vmatprep.subr.mxu0 %v6350_v51  ;;  %3402 = vmatprep.subr.mxu1 %v3983_v3  ;;  %v6355_v3 = vand.u32 4294901760, %v4230_v6  ;;  %v6361_v6 = vand.u32 4294901760, %v6322_v33  ;;  %v6366_v33 = vand.u32 4294901760, %v4393_v53  ;;  %v96_v53 = vld [vmem:[%s6083_s1 + $0x1d8] sm:$0xff] }
  0x5a   :  { %3376 = vmatpush3.msra.mxu0 %v6351_v40  ;;  %3403 = vmatpush3.msra.mxu1 %v3985_v4  ;;  %v100_v4 = vld [vmem:[%s6083_s1 + $0x1f8] sm:$0xff]  ;;  %v4727_v32 = vand.u32 4294901760, %v96_v53 }
  0x5b   :  { %3377 = vmatprep.subr.mxu0 %v6352_v45  ;;  %3404 = vmatprep.subr.mxu1 %v3987_v5  ;;  %v84_v5 = vld [vmem:[%s6083_s1 + $0x178] sm:$0xff]  ;;  %v4630_v42 = vand.u32 4294901760, %v100_v4 }
  0x5c   :  { %3378 = vmatpush3.msra.mxu0 %v6353_v59  ;;  %3405 = vmatpush3.msra.mxu1 %v3998_v9  ;;  %v6356_v9 = vand.u32 4294901760, %v4257_v55  ;;  %v4632_v55 = vand.u32 4294901760, %v84_v5  ;;  %6373 = vst [vmem:[#allocation7_spill] sm:$0xff] %v4727_v32  ;;  %v4735_v59 = vand.u32 4294901760, %v79_v23 }
  0x5d   :  { %3379 = vmatprep.subr.mxu0 %v6354_v0  ;;  %3406 = vmatprep.subr.mxu1 %v4000_v10  ;;  %v83_v10 = vld [vmem:[%s6083_s1 + $0x170] sm:$0xff]  ;;  %v4670_v19 = vsub.f32 %v100_v4, %v4630_v42  ;;  %v6377_v0 = vand.u32 4294901760, %v4469_v41  ;;  %v94_v4 = vld [vmem:[%s6083_s1 + $0x1c8] sm:$0xff] }
  0x5e   :  { %3380 = vmatpush3.msra.mxu0 %v6355_v3  ;;  %3407 = vmatpush3.msra.mxu1 %v4002_v11  ;;  %v6358_v11 = vand.u32 4294901760, %v4297_v34  ;;  %v6360_v34 = vand.u32 4294901760, %v4325_v43  ;;  %6376 = vst [vmem:[#allocation9_spill] sm:$0xff] %v4735_v59 }
  0x5f   :  { %3381 = vmatprep.subr.mxu0 %v6356_v9  ;;  %3408 = vmatprep.subr.mxu1 %v4014_v15  ;;  %v99_v15 = vld [vmem:[%s6083_s1 + $0x1f0] sm:$0xff]  ;;  %v6381_v9 = vld [vmem:[#allocation15_spill] sm:$0xff] }
  0x60   :  { %3382 = vmatpush3.msra.mxu0 %v6357_v8  ;;  %3409 = vmatpush3.msra.mxu1 %v4016_v16  ;;  %v4643_v16 = vand.u32 4294901760, %v83_v10  ;;  %v4654_v28 = vand.u32 4294901760, %v99_v15 }
  0x61   :  { %3383 = vmatprep.subr.mxu0 %v6358_v11  ;;  %3410 = vmatprep.subr.mxu1 %v4018_v17  ;;  %v98_v17 = vld [vmem:[%s6083_s1 + $0x1e8] sm:$0xff]  ;;  %v6382_v11 = vld [vmem:[#allocation27_spill] sm:$0xff] }
  0x62   :  { %3384 = vmatpush3.msra.mxu0 %v6359_v21  ;;  %3411 = vmatpush3.msra.mxu1 %v4040_v22  ;;  %v81_v22 = vld [vmem:[%s6083_s1 + $0x160] sm:$0xff]  ;;  %v4667_v43 = vand.u32 4294901760, %v98_v17  ;;  %v4676_v62 = vsub.f32 %v83_v10, %v4643_v16 }
  0x63   :  { %3385 = vmatprep.subr.mxu0 %v6360_v34  ;;  %3412 = vmatprep.subr.mxu1 %v4046_v24  ;;  %v4665_v24 = vsub.f32 %v84_v5, %v4632_v55  ;;  %v4684_v1 = vand.u32 4294901760, %v81_v22  ;;  %v6379_v5 = vld [vmem:[#allocation26_spill] sm:$0xff]  ;;  %v93_v34 = vld [vmem:[%s6083_s1 + $0x1c0] sm:$0xff] }
  0x64   :  { %3386 = vmatpush3.msra.mxu0 %v6361_v6  ;;  %3413 = vmatpush3.msra.mxu1 %v6323_v20  ;;  %6364 = vst [vmem:[#allocation5_spill] sm:$0xff] %v4667_v43  ;;  %v97_v20 = vld [vmem:[%s6083_s1 + $0x1e0] sm:$0xff]  ;;  %v4710_v25 = vsub.f32 %v98_v17, %v4667_v43  ;;  %v6158_v63 = vand.u32 4294901760, %v4676_v62  ;;  %v4777_v17 = vand.u32 4294901760, %v78_v13 }
  0x65   :  { %3387 = vmatprep.subr.mxu0 %v6363_v30  ;;  %3414 = vmatprep.subr.mxu1 %v6325_v7  ;;  %6367 = vst [vmem:[#allocation23_spill] sm:$0xff] %v4684_v1  ;;  %v6368_v7 = vand.u32 4294901760, %v4407_v36  ;;  %v6161_v36 = vand.u32 4294901760, %v4670_v19  ;;  %v4715_v57 = vand.u32 4294901760, %v97_v20  ;;  %v4725_v51 = vsub.f32 %v81_v22, %v4684_v1  ;;  %v77_v6 = vld [vmem:[%s6083_s1 + $0x140] sm:$0xff] }
  0x66   :  { %3388 = vmatpush3.msra.mxu0 %v6365_v54  ;;  %3415 = vmatpush3.msra.mxu1 %v6326_v49  ;;  %v80_v49 = vld [vmem:[%s6083_s1 + $0x158] sm:$0xff]  ;;  %v6157_v41 = vand.u32 4294901760, %v4710_v25  ;;  %v4766_v10 = vsub.f32 %v4676_v62, %v6158_v63  ;;  %6385 = vst [vmem:[#allocation11_spill] sm:$0xff] %v4777_v17  ;;  %v4787_v30 = vsub.f32 %v96_v53, %v4727_v32  ;;  %v6386_v54 = vld [vmem:[#allocation28_spill] sm:$0xff] }
  0x67   :  { %3389 = vmatprep.subr.mxu0 %v6366_v33  ;;  %3416 = vmatprep.subr.mxu1 %v6327_v50  ;;  %v4699_v50 = vsub.f32 %v99_v15, %v4654_v28  ;;  %6371 = vst [vmem:[#allocation6_spill] sm:$0xff] %v4715_v57  ;;  %v4729_v40 = vand.u32 4294901760, %v80_v49  ;;  %v4769_v8 = vsub.f32 %v97_v20, %v4715_v57  ;;  %v6383_v15 = vand.u32 4294901760, %v6382_v11  ;;  %v6388_v20 = vld [vmem:[#allocation24_spill] sm:$0xff] }
  0x68   :  { %3390 = vmatpush3.msra.mxu0 %v6368_v7  ;;  %3417 = vmatpush3.msra.mxu1 %v6328_v37  ;;  %v6160_v37 = vand.u32 4294901760, %v4665_v24  ;;  %v6156_v22 = vand.u32 4294901760, %v4725_v51  ;;  %v6387_v33 = vand.u32 4294901760, %v6386_v54 }
  0x69   :  { %3391 = vmatprep.subr.mxu0 %v6369_v18  ;;  %3418 = vmatprep.subr.mxu1 %v6329_v2  ;;  %v95_v2 = vld [vmem:[%s6083_s1 + $0x1d0] sm:$0xff]  ;;  %6374 = vst [vmem:[#allocation8_spill] sm:$0xff] %v4729_v40  ;;  %v6159_v45 = vand.u32 4294901760, %v4699_v50  ;;  %v4775_v21 = vsub.f32 %v80_v49, %v4729_v40  ;;  %v4798_v49 = vsub.f32 %v79_v23, %v4735_v59  ;;  %v4800_v18 = vand.u32 4294901760, %v94_v4 }
  0x6a   :  { %3392 = vmatpush3.msra.mxu0 %v6370_v31  ;;  %3419 = vmatpush3.msra.mxu1 %v6330_v56  ;;  %v6375_v56 = vand.u32 4294901760, %v4452_v61  ;;  %v4747_v61 = vsub.f32 %v4670_v19, %v6161_v36  ;;  %v4754_v3 = vand.u32 4294901760, %v95_v2  ;;  %v6390_v31 = vld [vmem:[#allocation17_spill] sm:$0xff]  ;;  %v4814_v23 = vsub.f32 %v4710_v25, %v6157_v41 }
  0x6b   :  { %3393 = vmatprep.subr.mxu0 %v6372_v35  ;;  %3420 = vmatprep.subr.mxu1 %v6331_v27  ;;  %v6155_v27 = vand.u32 4294901760, %v4690_v60  ;;  %v4795_v7 = vsub.f32 %v4699_v50, %v6159_v45  ;;  %6389 = vst [vmem:[#allocation12_spill] sm:$0xff] %v4800_v18  ;;  %v6391_v35 = vld [vmem:[#allocation25_spill] sm:$0xff]  ;;  %v6162_v11 = vand.u32 4294901760, %v4769_v8  ;;  %v4841_v54 = vsub.f32 %v4725_v51, %v6156_v22  ;;  %v4855_v22 = vld [vmem:[%s6083_s1 + $0x1b0] sm:$0xff] }
  0x6c   :  { %3394 = vmatpush3.msra.mxu0 %v6375_v56  ;;  %3421 = vmatpush3.msra.mxu1 %v6332_v47  ;;  %v4752_v47 = vsub.f32 %v4665_v24, %v6160_v37  ;;  %6378 = vst [vmem:[#allocation10_spill] sm:$0xff] %v4754_v3  ;;  %v6165_v41 = vand.u32 4294901760, %v4798_v49  ;;  %v4859_v63 = vsub.f32 %v94_v4, %v4800_v18  ;;  %v74_v36 = vld [vmem:[%s6083_s1 + $0x128] sm:$0xff] }
  0x6d   :  { %3395 = vmatprep.subr.mxu0 %v6377_v0  ;;  %3422 = vmatprep.subr.mxu1 %v6333_v44  ;;  %v6380_v44 = vand.u32 4294901760, %v6379_v5  ;;  %v4805_v53 = vsub.f32 %v4690_v60, %v6155_v27  ;;  %v4817_v5 = vsub.f32 %v95_v2, %v4754_v3  ;;  %v76_v2 = vld [vmem:[%s6083_s1 + $0x138] sm:$0xff]  ;;  %v75_v27 = vld [vmem:[%s6083_s1 + $0x130] sm:$0xff] }
  0x6e   :  { %3423 = vmatpush3.msra.mxu1 %v6381_v9  ;;  %897 = vmatprep.mubr.f32.mxu0 %v6388_v20  ;;  %v4822_v9 = vand.u32 4294901760, %v93_v34 }
  0x6f   :  { %3396 = vmatpush3.msra.mxu0 %v6380_v44  ;;  %3424 = vmatprep.subr.mxu1 %v6384_v48  ;;  %v92_v48 = vld [vmem:[%s6083_s1 + $0x1b8] sm:$0xff]  ;;  %v6168_v37 = vand.u32 4294901760, %v4817_v5  ;;  %v73_v44 = vld [vmem:[%s6083_s1 + $0x120] sm:$0xff] }
  0x70   :  { %3397 = vmatprep.subr.mxu0 %v6383_v15  ;;  %3425 = vmatpush3.msra.mxu1 %v6390_v31  ;;  %6392 = vst [vmem:[#allocation13_spill] sm:$0xff] %v4822_v9  ;;  %v4825_v15 = vand.u32 4294901760, %v77_v6  ;;  %v6164_v31 = vand.u32 4294901760, %v4775_v21  ;;  %v4864_v45 = vand.u32 4294901760, %v92_v48 }
  0x71   :  { %3398 = vmatpush3.msra.mxu0 %v6387_v33  ;;  %3426 = vmatprep.subr.mxu1 %v4286_v39  ;;  %v4836_v39 = vsub.f32 %v78_v13, %v4777_v17  ;;  %v6163_v33 = vand.u32 4294901760, %v4787_v30  ;;  %v4882_v13 = vand.u32 4294901760, %v75_v27  ;;  %v4931_v56 = vsub.f32 %v4817_v5, %v6168_v37 }
  0x72   :  { %899 = vmatmul.mubr.f32.vlgmr.msra.gmra.mxu0 %v6391_v35  ;;  %3437 = vmatprep.subr.mxu0 %v4630_v42  ;;  %6393 = vst [vmem:[#allocation14_spill] sm:$0xff] %v4825_v15  ;;  %6395 = vst [vmem:[#allocation19_spill] sm:$0xff] %v4864_v45  ;;  %v4880_v4 = vsub.f32 %v77_v6, %v4825_v15  ;;  %v4936_v0 = vsub.f32 %v92_v48, %v4864_v45  ;;  %v6404_v37 = vand.u32 4294901760, %v4747_v61 }
  0x73   :  { %3427 = vmatpush3.msra.mxu1 %v6337_v26  ;;  %3438 = vmatpush3.msra.mxu0 %v4632_v55  ;;  %6394 = vst [vmem:[#allocation18_spill] sm:$0xff] %v4836_v39  ;;  %v1244_v26 = vand.u32 4294901760, %v4795_v7  ;;  %v4866_v7 = vand.u32 4294901760, %v76_v2  ;;  %6398 = vst [vmem:[#allocation26_spill] sm:$0xff] %v4882_v13  ;;  %v4896_v6 = vsub.f32 %v4787_v30, %v6163_v33  ;;  %v90_v33 = vld [vmem:[%s6083_s1 + $0x1a8] sm:$0xff] }
  0x74   :  { %3428 = vmatprep.subr.mxu1 %v6339_v12  ;;  %3439 = vmatprep.subr.mxu0 %v4654_v28  ;;  %6397 = vst [vmem:[#allocation22_spill] sm:$0xff] %v4880_v4  ;;  %v4885_v12 = vsub.f32 %v93_v34, %v4822_v9  ;;  %v4901_v34 = vsub.f32 %v4775_v21, %v6164_v31  ;;  %v4917_v31 = vand.u32 4294901760, %v74_v36 }
  0x75   :  { %3429 = vmatpush3.msra.mxu1 %v6341_v29  ;;  %3440 = vmatpush3.msra.mxu0 %v4643_v16  ;;  %6396 = vst [vmem:[#allocation20_spill] sm:$0xff] %v4866_v7  ;;  %v4877_v29 = vsub.f32 %v4769_v8, %v6162_v11  ;;  %v4904_v11 = vand.u32 4294901760, %v4855_v22  ;;  %v1265_v48 = vand.u32 4294901760, %v4896_v6  ;;  %v6407_v6 = vand.u32 4294901760, %v4859_v63 }
  0x76   :  { %3430 = vmatprep.subr.mxu1 %v6343_v14  ;;  %3441 = vmatprep.subr.mxu0 %v4667_v43  ;;  %6399 = vst [vmem:[#allocation15_spill] sm:$0xff] %v4885_v12  ;;  %6401 = vst [vmem:[#allocation16_spill] sm:$0xff] %v4917_v31  ;;  %v4933_v14 = vand.u32 4294901760, %v73_v44 }
  0x77   :  { %3431 = vmatpush3.msra.mxu1 %v4364_v38  ;;  %3442 = vmatpush3.msra.mxu0 %v4656_v46  ;;  %6400 = vst [vmem:[#allocation27_spill] sm:$0xff] %v4904_v11  ;;  %v4911_v38 = vsub.f32 %v4798_v49, %v6165_v41  ;;  %v4926_v41 = vsub.f32 %v76_v2, %v4866_v7  ;;  %v4951_v46 = vand.u32 4294901760, %v90_v33  ;;  %v6408_v2 = vand.u32 4294901760, %v4836_v39 }
  0x78   :  { %3432 = vmatprep.subr.mxu1 %v4381_v52  ;;  %3443 = vmatprep.subr.mxu0 %v4715_v57  ;;  %v89_v52 = vld [vmem:[%s6083_s1 + $0x1a0] sm:$0xff]  ;;  %6402 = vst [vmem:[#allocation28_spill] sm:$0xff] %v4933_v14  ;;  %v4971_v57 = vsub.f32 %v74_v36, %v4917_v31  ;;  %v4987_v36 = vsub.f32 %v73_v44, %v4933_v14 }
  0x79   :  { %3433 = vmatpush3.msra.mxu1 %v4403_v58  ;;  %1001 = vmatprep.mubr.f32.mxu1 %v6388_v20  ;;  %v1258_v58 = vand.u32 4294901760, %v4877_v29  ;;  %v4942_v20 = vsub.f32 %v75_v27, %v4882_v13  ;;  %6405 = vst [vmem:[#allocation17_spill] sm:$0xff] %v4951_v46  ;;  %v72_v27 = vld [vmem:[%s6083_s1 + $0x118] sm:$0xff] }
  0x7a   :  { %3444 = vmatpush3.msra.mxu0 %v4684_v1  ;;  %1003 = vmatmul.mubr.f32.vlgmr.msra.gmra.mxu1 %v6391_v35  ;;  %v1153_v1 = vand.u32 4294901760, %v4901_v34  ;;  %v4953_v35 = vand.u32 4294901760, %v89_v52  ;;  %v33_v29 = vld [vmem:[%s6082_s0 + $0x18] sm:$0xff]  ;;  %v4968_v34 = vsub.f32 %v4859_v63, %v6407_v6  ;;  %v1272_v6 = vand.u32 4294901760, %v4931_v56  ;;  %6409 = vst [vmem:[#allocation25_spill] sm:$0xff] %v4987_v36 }
  0x7b   :  { %6403 = vst [vmem:[#allocation24_spill] sm:$0xff] %v4942_v20  ;;  %3445 = vmatprep.subr.mxu0 %v4727_v32  ;;  %3472 = vmatprep.subr.mxu1 %v6404_v37  ;;  %v6406_v37 = vand.u32 4294901760, %v4752_v47  ;;  %v4976_v32 = vsub.f32 %v4836_v39, %v6408_v2  ;;  %v71_v47 = vld [vmem:[%s6083_s1 + $0x110] sm:$0xff]  ;;  %v88_v2 = vld [vmem:[%s6083_s1 + $0x198] sm:$0xff]  ;;  %v6411_v56 = vand.u32 4294901760, %v4885_v12  ;;  %v5010_v61 = vand.u32 4294901760, %v72_v27 }
  0x7c   :  { %3446 = vmatpush3.msra.mxu0 %v4729_v40  ;;  %v4995_v40 = vsub.f32 %v4855_v22, %v4904_v11  ;;  %v87_v22 = vld [vmem:[%s6083_s1 + $0x190] sm:$0xff]  ;;  %v1279_v43 = vand.u32 4294901760, %v4968_v34 }
  0x7d   :  { %3473 = vmatpush3.msra.mxu1 %v6406_v37  ;;  %v32_v37 = vld [vmem:[%s6082_s0 + $0x10] sm:$0xff]  ;;  %3447 = vmatprep.subr.mxu0 %v4754_v3  ;;  %v6410_v3 = vand.u32 4294901760, %v4766_v10  ;;  %v5003_v44 = vsub.f32 %v4885_v12, %v6411_v56  ;;  %v5021_v56 = vand.u32 4294901760, %v71_v47  ;;  %v6416_v12 = vand.u32 4294901760, %v4805_v53  ;;  %v70_v53 = vld [vmem:[%s6083_s1 + $0x108] sm:$0xff] }
  0x7e   :  { %3474 = vmatprep.subr.mxu1 %v1244_v26  ;;  %3448 = vmatpush3.msra.mxu0 %v4735_v59  ;;  %v6412_v26 = vand.u32 4294901760, %v4880_v4  ;;  %v5015_v59 = vand.u32 4294901760, %v33_v29 }
  0x7f   :  { %3475 = vmatpush3.msra.mxu1 %v6410_v3  ;;  %3449 = vmatprep.subr.mxu0 %v4800_v18  ;;  %v6414_v3 = vand.u32 4294901760, %v4814_v23  ;;  %v1167_v18 = vand.u32 4294901760, %v4976_v32  ;;  %v5033_v23 = vand.u32 4294901760, %v88_v2  ;;  %v86_v32 = vld [vmem:[%s6083_s1 + $0x188] sm:$0xff]  ;;  %v1286_v34 = vand.u32 4294901760, %v5003_v44 }
  0x80   :  { %v5008_v39 = vsub.f32 %v4880_v4, %v6412_v26  ;;  %6413 = vst [vmem:[#allocation29_spill] sm:$0xff] %v5015_v59  ;;  %v5024_v26 = vsub.f32 %v90_v33, %v4951_v46  ;;  %v5026_v4 = vand.u32 4294901760, %v32_v37  ;;  %3450 = vmatpush3.msra.mxu0 %v4777_v17  ;;  %v6417_v33 = vand.u32 4294901760, %v4936_v0  ;;  %1345 = vmatprep.mubr.f32.mxu1 %v5015_v59 }
  0x81   :  { %3476 = vmatprep.subr.mxu1 %v6414_v3  ;;  %3451 = vmatprep.subr.mxu0 %v4822_v9  ;;  %v5042_v17 = vand.u32 4294901760, %v87_v22  ;;  %v5057_v3 = vsub.f32 %v72_v27, %v5010_v61  ;;  %v5063_v9 = vsub.f32 %v33_v29, %v5015_v59  ;;  %v5070_v44 = vsub.f32 %v71_v47, %v5021_v56  ;;  %v85_v27 = vld [vmem:[%s6083_s1 + $0x180] sm:$0xff]  ;;  %v6456_v59 = vld [vmem:[#allocation26_spill] sm:$0xff] }
  0x82   :  { %6415 = vst [vmem:[#allocation30_spill] sm:$0xff] %v5026_v4  ;;  %3477 = vmatpush3.msra.mxu1 %v6416_v12  ;;  %v5040_v10 = vsub.f32 %v4936_v0, %v6417_v33  ;;  %v5049_v12 = vsub.f32 %v89_v52, %v4953_v35  ;;  %3452 = vmatpush3.msra.mxu0 %v4825_v15  ;;  %v1174_v33 = vand.u32 4294901760, %v5008_v39  ;;  %v69_v29 = vld [vmem:[%s6083_s1 + $0x100] sm:$0xff]  ;;  %v6422_v15 = vand.u32 4294901760, %v4995_v40 }
  0x83   :  { %3478 = vmatprep.subr.mxu1 %v1258_v58  ;;  %6418 = vst [vmem:[#allocation31_spill] sm:$0xff] %v5042_v17  ;;  %v6419_v58 = vand.u32 4294901760, %v4841_v54  ;;  %3453 = vmatprep.subr.mxu0 %v4864_v45  ;;  %v6420_v54 = vand.u32 4294901760, %v4926_v41  ;;  %v5090_v45 = vsub.f32 %v88_v2, %v5033_v23  ;;  %v6423_v39 = vand.u32 4294901760, %v4911_v38 }
  0x84   :  { %3454 = vmatpush3.msra.mxu0 %v4866_v7  ;;  %v5097_v7 = vand.u32 4294901760, %v70_v53  ;;  %v5103_v2 = vand.u32 4294901760, %v85_v27  ;;  %v6209_v38 = vand.u32 4294901760, %v4987_v36 }
  0x85   :  { %3479 = vmatpush3.msra.mxu1 %v6419_v58  ;;  %v1180_v52 = vsub.f32 %v4926_v41, %v6420_v54  ;;  %v5080_v58 = vsub.f32 %v32_v37, %v5026_v4  ;;  %v5086_v54 = vand.u32 4294901760, %v86_v32  ;;  %3455 = vmatprep.subr.mxu0 %v4904_v11  ;;  %v1293_v37 = vand.u32 4294901760, %v5040_v10 }
  0x86   :  { %3480 = vmatprep.subr.mxu1 %v1265_v48  ;;  %v6421_v48 = vand.u32 4294901760, %v4942_v20  ;;  %3456 = vmatpush3.msra.mxu0 %v4882_v13  ;;  %v5109_v10 = vsub.f32 %v87_v22, %v5042_v17 }
  0x87   :  { %3481 = vmatpush3.msra.mxu1 %v1153_v1  ;;  %v1299_v1 = vsub.f32 %v4995_v40, %v6422_v15  ;;  %3457 = vmatprep.subr.mxu0 %v4951_v46  ;;  %v1181_v15 = vand.u32 4294901760, %v1180_v52 }
  0x88   :  { %v1187_v47 = vsub.f32 %v4942_v20, %v6421_v48  ;;  %3482 = vmatprep.subr.mxu1 %v1272_v6  ;;  %v5105_v20 = vand.u32 4294901760, %v69_v29  ;;  %v6424_v48 = vand.u32 4294901760, %v5024_v26  ;;  %3458 = vmatpush3.msra.mxu0 %v4917_v31  ;;  %v6425_v6 = vand.u32 4294901760, %v4971_v57 }
  0x89   :  { %3483 = vmatpush3.msra.mxu1 %v6423_v39  ;;  %3459 = vmatprep.subr.mxu0 %v4953_v35  ;;  %v1300_v52 = vand.u32 4294901760, %v1299_v1  ;;  %v6426_v39 = vand.u32 4294901760, %v5049_v12 }
  0x8a   :  { %3484 = vmatprep.subr.mxu1 %v1279_v43  ;;  %v1306_v13 = vsub.f32 %v5024_v26, %v6424_v48  ;;  %v1188_v11 = vand.u32 4294901760, %v1187_v47  ;;  %v1194_v22 = vsub.f32 %v4971_v57, %v6425_v6  ;;  %v5123_v43 = vsub.f32 %v86_v32, %v5086_v54  ;;  %3460 = vmatpush3.msra.mxu0 %v4933_v14 }
  0x8b   :  { %3485 = vmatpush3.msra.mxu1 %v1167_v18  ;;  %v5127_v48 = vsub.f32 %v70_v53, %v5097_v7  ;;  %v1313_v18 = vsub.f32 %v5049_v12, %v6426_v39  ;;  %v5135_v6 = vsub.f32 %v69_v29, %v5105_v20  ;;  %v6428_v32 = vand.u32 4294901760, %v5063_v9  ;;  %3461 = vmatprep.subr.mxu0 %v5033_v23 }
  0x8c   :  { %3486 = vmatprep.subr.mxu1 %v1286_v34  ;;  %v5142_v53 = vsub.f32 %v85_v27, %v5103_v2  ;;  %v1307_v39 = vand.u32 4294901760, %v1306_v13  ;;  %v6430_v29 = vand.u32 4294901760, %v5080_v58  ;;  %3462 = vmatpush3.msra.mxu0 %v5010_v61  ;;  %v6431_v27 = vand.u32 4294901760, %v5090_v45 }
  0x8d   :  { %3487 = vmatpush3.msra.mxu1 %v1174_v33  ;;  %6427 = vst [vmem:[#allocation32_spill] sm:$0xff] %v5135_v6  ;;  %v1107_v34 = vsub.f32 %v5063_v9, %v6428_v32  ;;  %v1201_v33 = vsub.f32 %v4987_v36, %v6209_v38  ;;  %v1195_v32 = vand.u32 4294901760, %v1194_v22  ;;  %3463 = vmatprep.subr.mxu0 %v5042_v17  ;;  %v6432_v38 = vand.u32 4294901760, %v5057_v3 }
  0x8e   :  { %6429 = vst [vmem:[#allocation33_spill] sm:$0xff] %v5142_v53  ;;  %3488 = vmatprep.subr.mxu1 %v1293_v37  ;;  %v1113_v47 = vsub.f32 %v5080_v58, %v6430_v29  ;;  %v1320_v1 = vsub.f32 %v5090_v45, %v6431_v27  ;;  %v1314_v37 = vand.u32 4294901760, %v1313_v18  ;;  %3464 = vmatpush3.msra.mxu0 %v5021_v56  ;;  %v6433_v22 = vand.u32 4294901760, %v5109_v10 }
  0x8f   :  { %3489 = vmatpush3.msra.mxu1 %v1181_v15  ;;  %v1208_v29 = vsub.f32 %v5057_v3, %v6432_v38  ;;  %v1108_v15 = vand.u32 4294901760, %v1107_v34  ;;  %v6213_v13 = vand.u32 4294901760, %v5142_v53  ;;  %3465 = vmatprep.subr.mxu0 %v5086_v54  ;;  %v6434_v17 = vand.u32 4294901760, %v5070_v44 }
  0x90   :  { %3490 = vmatprep.subr.mxu1 %v1300_v52  ;;  %v1327_v27 = vsub.f32 %v5109_v10, %v6433_v22  ;;  %v1202_v52 = vand.u32 4294901760, %v1201_v33  ;;  %v1114_v18 = vand.u32 4294901760, %v1113_v47  ;;  %v6212_v46 = vand.u32 4294901760, %v5135_v6  ;;  %3466 = vmatpush3.msra.mxu0 %v5097_v7 }
  0x91   :  { %3491 = vmatpush3.msra.mxu1 %v1188_v11  ;;  %v1215_v38 = vsub.f32 %v5070_v44, %v6434_v17  ;;  %v1321_v11 = vand.u32 4294901760, %v1320_v1  ;;  %v6435_v34 = vand.u32 4294901760, %v5123_v43  ;;  %3467 = vmatprep.subr.mxu0 %v5103_v2  ;;  %v6436_v47 = vand.u32 4294901760, %v5127_v48 }
  0x92   :  { %3492 = vmatprep.subr.mxu1 %v1307_v39  ;;  %v1209_v39 = vand.u32 4294901760, %v1208_v29  ;;  %3468 = vmatpush3.msra.mxu0 %v5105_v20  ;;  %v1328_v17 = vand.u32 4294901760, %v1327_v27  ;;  %v1341_v1 = vsub.f32 %v5142_v53, %v6213_v13  ;;  %v6454_v13 = vld [vmem:[#allocation20_spill] sm:$0xff] }
  0x93   :  { %3493 = vmatpush3.msra.mxu1 %v1195_v32  ;;  %v1334_v22 = vsub.f32 %v5123_v43, %v6435_v34  ;;  %v1222_v33 = vsub.f32 %v5127_v48, %v6436_v47  ;;  %1109 = vmatprep.mubr.f32.mxu0 %v1108_v15  ;;  %v1216_v32 = vand.u32 4294901760, %v1215_v38  ;;  %v6438_v38 = vld [vmem:[#allocation18_spill] sm:$0xff]  ;;  %v6440_v34 = vld [vmem:[#allocation15_spill] sm:$0xff] }
  0x94   :  { %3494 = vmatprep.subr.mxu1 %v1314_v37  ;;  %1115 = vmatmul.mubr.f32.vlgmr.msra.gmra.mxu0 %v1114_v18  ;;  %v1229_v37 = vsub.f32 %v5135_v6, %v6212_v46  ;;  %v1342_v27 = vand.u32 4294901760, %v1341_v1  ;;  %v6437_v18 = vld [vmem:[#allocation5_spill] sm:$0xff]  ;;  %v6443_v47 = vld [vmem:[#allocation23_spill] sm:$0xff]  ;;  %v6446_v1 = vld [vmem:[#allocation10_spill] sm:$0xff] }
  0x95   :  { %3495 = vmatpush3.msra.mxu1 %v1202_v52  ;;  %3507 = vmatprep.subr.mxu0 %v4670_v19  ;;  %v1335_v29 = vand.u32 4294901760, %v1334_v22  ;;  %v1223_v15 = vand.u32 4294901760, %v1222_v33  ;;  %v6441_v22 = vld [vmem:[#allocation6_spill] sm:$0xff]  ;;  %v6444_v33 = vld [vmem:[#allocation7_spill] sm:$0xff] }
  0x96   :  { %3496 = vmatprep.subr.mxu1 %v1321_v11  ;;  %3508 = vmatpush3.msra.mxu0 %v4665_v24  ;;  %v1230_v52 = vand.u32 4294901760, %v1229_v37  ;;  %v6439_v11 = vld [vmem:[#allocation21_spill] sm:$0xff]  ;;  %v6453_v46 = vld [vmem:[#allocation19_spill] sm:$0xff] }
  0x97   :  { %3497 = vmatpush3.msra.mxu1 %v1209_v39  ;;  %3509 = vmatprep.subr.mxu0 %v4699_v50  ;;  %v6442_v39 = vld [vmem:[#allocation22_spill] sm:$0xff]  ;;  %v6448_v37 = vld [vmem:[#allocation9_spill] sm:$0xff] }
  0x98   :  { %3498 = vmatprep.subr.mxu1 %v1328_v17  ;;  %3510 = vmatpush3.msra.mxu0 %v4676_v62  ;;  %v6445_v17 = vld [vmem:[#allocation8_spill] sm:$0xff] }
  0x99   :  { %3499 = vmatpush3.msra.mxu1 %v1216_v32  ;;  %3511 = vmatprep.subr.mxu0 %v4710_v25  ;;  %v6447_v32 = vld [vmem:[#allocation24_spill] sm:$0xff] }
  0x9a   :  { %3500 = vmatprep.subr.mxu1 %v1335_v29  ;;  %3512 = vmatpush3.msra.mxu0 %v4690_v60  ;;  %v6449_v29 = vld [vmem:[#allocation12_spill] sm:$0xff] }
  0x9b   :  { %3501 = vmatpush3.msra.mxu1 %v1223_v15  ;;  %3513 = vmatprep.subr.mxu0 %v4769_v8  ;;  %v6450_v15 = vld [vmem:[#allocation11_spill] sm:$0xff] }
  0x9c   :  { %3502 = vmatprep.subr.mxu1 %v1342_v27  ;;  %3514 = vmatpush3.msra.mxu0 %v4725_v51  ;;  %v6451_v27 = vld [vmem:[#allocation13_spill] sm:$0xff] }
  0x9d   :  { %3503 = vmatpush3.msra.mxu1 %v1230_v52  ;;  %3515 = vmatprep.subr.mxu0 %v4787_v30  ;;  %v6452_v52 = vld [vmem:[#allocation14_spill] sm:$0xff] }
  0x9e   :  { %1347 = vmatmul.mubr.f32.vlgmr.msra.gmra.mxu1 %v5026_v4  ;;  %3542 = vmatprep.subr.mxu1 %v4630_v42  ;;  %v6455_v4 = vld [vmem:[#allocation27_spill] sm:$0xff] }
  0x9f   :  { %3516 = vmatpush3.msra.mxu0 %v4775_v21  ;;  %3543 = vmatpush3.msra.mxu1 %v4632_v55 }
  0xa0   :  { %3517 = vmatprep.subr.mxu0 %v4817_v5  ;;  %3544 = vmatprep.subr.mxu1 %v4654_v28 }
  0xa1   :  { %3518 = vmatpush3.msra.mxu0 %v4798_v49  ;;  %3545 = vmatpush3.msra.mxu1 %v4643_v16 }
  0xa2   :  { %3519 = vmatprep.subr.mxu0 %v4859_v63  ;;  %3546 = vmatprep.subr.mxu1 %v6437_v18 }
  0xa3   :  { %3520 = vmatpush3.msra.mxu0 %v6438_v38  ;;  %3547 = vmatpush3.msra.mxu1 %v6439_v11 }
  0xa4   :  { %3521 = vmatprep.subr.mxu0 %v6440_v34  ;;  %3548 = vmatprep.subr.mxu1 %v6441_v22 }
  0xa5   :  { %3522 = vmatpush3.msra.mxu0 %v6442_v39  ;;  %3549 = vmatpush3.msra.mxu1 %v6443_v47 }
  0xa6   :  { %3523 = vmatprep.subr.mxu0 %v4936_v0  ;;  %3550 = vmatprep.subr.mxu1 %v6444_v33 }
  0xa7   :  { %3524 = vmatpush3.msra.mxu0 %v4926_v41  ;;  %3551 = vmatpush3.msra.mxu1 %v6445_v17 }
  0xa8   :  { %3525 = vmatprep.subr.mxu0 %v4995_v40  ;;  %3552 = vmatprep.subr.mxu1 %v6446_v1 }
  0xa9   :  { %3526 = vmatpush3.msra.mxu0 %v6447_v32  ;;  %3553 = vmatpush3.msra.mxu1 %v6448_v37 }
  0xaa   :  { %3527 = vmatprep.subr.mxu0 %v5024_v26  ;;  %3554 = vmatprep.subr.mxu1 %v6449_v29 }
  0xab   :  { %3528 = vmatpush3.msra.mxu0 %v4971_v57  ;;  %3555 = vmatpush3.msra.mxu1 %v6450_v15 }
  0xac   :  { %3529 = vmatprep.subr.mxu0 %v5049_v12  ;;  %3556 = vmatprep.subr.mxu1 %v6451_v27 }
  0xad   :  { %3530 = vmatpush3.msra.mxu0 %v4987_v36  ;;  %3557 = vmatpush3.msra.mxu1 %v6452_v52  ;;  %v6457_v36 = vld [vmem:[#allocation17_spill] sm:$0xff] }
  0xae   :  { %3531 = vmatprep.subr.mxu0 %v5090_v45  ;;  %3558 = vmatprep.subr.mxu1 %v6453_v46 }
  0xaf   :  { %3532 = vmatpush3.msra.mxu0 %v5057_v3  ;;  %3559 = vmatpush3.msra.mxu1 %v6454_v13 }
  0xb0   :  { %3533 = vmatprep.subr.mxu0 %v5109_v10  ;;  %3560 = vmatprep.subr.mxu1 %v6455_v4 }
  0xb1   :  { %3534 = vmatpush3.msra.mxu0 %v5070_v44  ;;  %3561 = vmatpush3.msra.mxu1 %v6456_v59 }
  0xb2   :  { %3535 = vmatprep.subr.mxu0 %v5123_v43  ;;  %3562 = vmatprep.subr.mxu1 %v6457_v36  ;;  %v6458_v36 = vand.u32 4294901760, %v4670_v19  ;;  %v6463_v19 = vand.u32 4294901760, %v4710_v25  ;;  %v6468_v25 = vand.u32 4294901760, %v5080_v58 }
  0xb3   :  { %3536 = vmatpush3.msra.mxu0 %v5127_v48  ;;  %3563 = vmatpush3.msra.mxu1 %v4917_v31  ;;  %v6459_v31 = vand.u32 4294901760, %v4665_v24  ;;  %v6464_v24 = vand.u32 4294901760, %v4690_v60  ;;  %v6470_v60 = vand.u32 4294901760, %v4775_v21 }
  0xb4   :  { %3537 = vmatprep.subr.mxu0 %v5142_v53  ;;  %3564 = vmatprep.subr.mxu1 %v4953_v35  ;;  %v6460_v53 = vld [vmem:[#allocation31_spill] sm:$0xff] }
  0xb5   :  { %3538 = vmatpush3.msra.mxu0 %v5135_v6  ;;  %1482 = vmatprep.mubr.f32.mxu0 %v5063_v9  ;;  %v6461_v6 = vand.u32 4294901760, %v4699_v50  ;;  %v6465_v50 = vand.u32 4294901760, %v4769_v8  ;;  %v6471_v8 = vand.u32 4294901760, %v4817_v5  ;;  %v6477_v5 = vand.u32 4294901760, %v4936_v0 }
  0xb6   :  { %3565 = vmatpush3.msra.mxu1 %v4933_v14  ;;  %1485 = vmatmul.mubr.f32.vlgmr.msra.gmra.mxu0 %v5080_v58  ;;  %v6462_v14 = vand.u32 4294901760, %v4676_v62  ;;  %v6466_v62 = vand.u32 4294901760, %v5063_v9  ;;  %v131_v9 = vld [vmem:[%s6083_s1 + $0x2f0] sm:$0xff]  ;;  %v6479_v0 = vand.u32 4294901760, %v4995_v40  ;;  %v113_v40 = vld [vmem:[%s6083_s1 + $0x260] sm:$0xff] }
  0xb7   :  { %3566 = vmatprep.subr.mxu1 %v5033_v23  ;;  %3577 = vmatprep.subr.mxu0 %v6458_v36  ;;  %v6478_v36 = vand.u32 4294901760, %v4926_v41  ;;  %v114_v41 = vld [vmem:[%s6083_s1 + $0x268] sm:$0xff] }
  0xb8   :  { %3567 = vmatpush3.msra.mxu1 %v5010_v61  ;;  %3578 = vmatpush3.msra.mxu0 %v6459_v31  ;;  %v6467_v31 = vand.u32 4294901760, %v4725_v51  ;;  %v6472_v51 = vand.u32 4294901760, %v4798_v49  ;;  %v115_v49 = vld [vmem:[%s6083_s1 + $0x270] sm:$0xff] }
  0xb9   :  { %3568 = vmatprep.subr.mxu1 %v6460_v53  ;;  %3579 = vmatprep.subr.mxu0 %v6461_v6  ;;  %v130_v6 = vld [vmem:[%s6083_s1 + $0x2e8] sm:$0xff] }
  0xba   :  { %3569 = vmatpush3.msra.mxu1 %v5021_v56  ;;  %3580 = vmatpush3.msra.mxu0 %v6462_v14  ;;  %v6469_v14 = vand.u32 4294901760, %v4787_v30  ;;  %v6473_v30 = vand.u32 4294901760, %v4859_v63  ;;  %v6476_v63 = vand.u32 4294901760, %v6442_v39  ;;  %v5346_v39 = vand.u32 4294901760, %v130_v6 }
  0xbb   :  { %3570 = vmatprep.subr.mxu1 %v5086_v54  ;;  %3581 = vmatprep.subr.mxu0 %v6463_v19 }
  0xbc   :  { %3571 = vmatpush3.msra.mxu1 %v5097_v7  ;;  %3582 = vmatpush3.msra.mxu0 %v6464_v24  ;;  %v6488_v24 = vand.u32 4294901760, %v5090_v45  ;;  %v111_v45 = vld [vmem:[%s6083_s1 + $0x250] sm:$0xff] }
  0xbd   :  { %3572 = vmatprep.subr.mxu1 %v5103_v2  ;;  %3583 = vmatprep.subr.mxu0 %v6465_v50 }
  0xbe   :  { %3573 = vmatpush3.msra.mxu1 %v5105_v20  ;;  %1589 = vmatprep.mubr.f32.mxu1 %v6466_v62  ;;  %v5386_v62 = vsub.f32 %v130_v6, %v5346_v39 }
  0xbf   :  { %3584 = vmatpush3.msra.mxu0 %v6467_v31  ;;  %1593 = vmatmul.mubr.f32.vlgmr.msra.gmra.mxu1 %v6468_v25 }
  0xc0   :  { %3585 = vmatprep.subr.mxu0 %v6469_v14  ;;  %3612 = vmatprep.subr.mxu1 %v4630_v42  ;;  %v116_v42 = vld [vmem:[%s6083_s1 + $0x278] sm:$0xff] }
  0xc1   :  { %3586 = vmatpush3.msra.mxu0 %v6470_v60  ;;  %3613 = vmatpush3.msra.mxu1 %v4632_v55  ;;  %v6474_v55 = vand.u32 4294901760, %v6438_v38  ;;  %v5305_v21 = vand.u32 4294901760, %v116_v42  ;;  %v6480_v38 = vand.u32 4294901760, %v6447_v32 }
  0xc2   :  { %3587 = vmatprep.subr.mxu0 %v6471_v8  ;;  %3614 = vmatprep.subr.mxu1 %v4654_v28  ;;  %v6475_v28 = vand.u32 4294901760, %v6440_v34  ;;  %v5338_v34 = vand.u32 4294901760, %v131_v9 }
  0xc3   :  { %3588 = vmatpush3.msra.mxu0 %v6472_v51  ;;  %3615 = vmatpush3.msra.mxu1 %v4643_v16  ;;  %v132_v16 = vld [vmem:[%s6083_s1 + $0x2f8] sm:$0xff]  ;;  %v6494_v51 = vand.u32 4294901760, %v5070_v44 }
  0xc4   :  { %3589 = vmatprep.subr.mxu0 %v6473_v30  ;;  %3616 = vmatprep.subr.mxu1 %v6437_v18  ;;  %v5319_v58 = vand.u32 4294901760, %v132_v16  ;;  %v5327_v18 = vand.u32 4294901760, %v115_v49  ;;  %v5378_v19 = vsub.f32 %v131_v9, %v5338_v34 }
  0xc5   :  { %3590 = vmatpush3.msra.mxu0 %v6474_v55  ;;  %3617 = vmatpush3.msra.mxu1 %v6439_v11  ;;  %v5336_v11 = vsub.f32 %v116_v42, %v5305_v21  ;;  %v6495_v42 = vand.u32 4294901760, %v5123_v43  ;;  %v6496_v55 = vld [vmem:[#allocation17_spill] sm:$0xff]  ;;  %v109_v43 = vld [vmem:[%s6083_s1 + $0x240] sm:$0xff] }
  0xc6   :  { %3591 = vmatprep.subr.mxu0 %v6475_v28  ;;  %3618 = vmatprep.subr.mxu1 %v6441_v22  ;;  %v6481_v22 = vand.u32 4294901760, %v5024_v26  ;;  %v6484_v26 = vand.u32 4294901760, %v5049_v12  ;;  %v5363_v32 = vsub.f32 %v115_v49, %v5327_v18  ;;  %v128_v12 = vld [vmem:[%s6083_s1 + $0x2d8] sm:$0xff]  ;;  %v5429_v28 = vand.u32 4294901760, %v111_v45 }
  0xc7   :  { %3592 = vmatpush3.msra.mxu0 %v6476_v63  ;;  %3619 = vmatpush3.msra.mxu1 %v6443_v47  ;;  %v6482_v47 = vand.u32 4294901760, %v4971_v57  ;;  %v5365_v57 = vand.u32 4294901760, %v113_v40  ;;  %v5409_v60 = vand.u32 4294901760, %v128_v12  ;;  %v6499_v49 = vand.u32 4294901760, %v5127_v48 }
  0xc8   :  { %3593 = vmatprep.subr.mxu0 %v6477_v5  ;;  %3620 = vmatprep.subr.mxu1 %v6444_v33  ;;  %v5351_v33 = vand.u32 4294901760, %v114_v41  ;;  %v6226_v8 = vand.u32 4294901760, %v5363_v32  ;;  %6498 = vst [vmem:[#allocation23_spill] sm:$0xff] %v5429_v28  ;;  %v6500_v5 = vld [vmem:[#allocation16_spill] sm:$0xff] }
  0xc9   :  { %3594 = vmatpush3.msra.mxu0 %v6478_v36  ;;  %3621 = vmatpush3.msra.mxu1 %v6445_v17  ;;  %v129_v17 = vld [vmem:[%s6083_s1 + $0x2e0] sm:$0xff]  ;;  %6485 = vst [vmem:[#allocation18_spill] sm:$0xff] %v5365_v57  ;;  %6493 = vst [vmem:[#allocation6_spill] sm:$0xff] %v5409_v60 }
  0xca   :  { %3595 = vmatprep.subr.mxu0 %v6479_v0  ;;  %3622 = vmatprep.subr.mxu1 %v6446_v1  ;;  %6483 = vst [vmem:[#allocation5_spill] sm:$0xff] %v5351_v33  ;;  %v5357_v1 = vsub.f32 %v132_v16, %v5319_v58  ;;  %v5383_v50 = vand.u32 4294901760, %v129_v17  ;;  %v5392_v31 = vsub.f32 %v114_v41, %v5351_v33  ;;  %v6225_v16 = vand.u32 4294901760, %v5386_v62  ;;  %v6501_v0 = vld [vmem:[#allocation33_spill] sm:$0xff] }
  0xcb   :  { %3596 = vmatpush3.msra.mxu0 %v6480_v38  ;;  %3623 = vmatpush3.msra.mxu1 %v6448_v37  ;;  %v112_v37 = vld [vmem:[%s6083_s1 + $0x258] sm:$0xff]  ;;  %v6502_v41 = vand.u32 4294901760, %v6501_v0  ;;  %v5459_v48 = vsub.f32 %v5363_v32, %v6226_v8 }
  0xcc   :  { %3597 = vmatprep.subr.mxu0 %v6481_v22  ;;  %3624 = vmatprep.subr.mxu1 %v6449_v29  ;;  %v6486_v29 = vld [vmem:[#allocation25_spill] sm:$0xff]  ;;  %6489 = vst [vmem:[#allocation21_spill] sm:$0xff] %v5383_v50  ;;  %v6230_v25 = vand.u32 4294901760, %v5357_v1  ;;  %v5395_v14 = vand.u32 4294901760, %v112_v37  ;;  %v5436_v63 = vsub.f32 %v129_v17, %v5383_v50  ;;  %v6224_v6 = vand.u32 4294901760, %v5392_v31  ;;  %v6504_v17 = vld [vmem:[#allocation32_spill] sm:$0xff] }
  0xcd   :  { %3598 = vmatpush3.msra.mxu0 %v6482_v47  ;;  %3625 = vmatpush3.msra.mxu1 %v6450_v15  ;;  %v6487_v15 = vand.u32 4294901760, %v6486_v29  ;;  %v5468_v47 = vsub.f32 %v128_v12, %v5409_v60  ;;  %v6510_v12 = vld [vmem:[#allocation30_spill] sm:$0xff] }
  0xce   :  { %3599 = vmatprep.subr.mxu0 %v6484_v26  ;;  %3626 = vmatprep.subr.mxu1 %v6451_v27  ;;  %v6229_v27 = vand.u32 4294901760, %v5336_v11  ;;  %6491 = vst [vmem:[#allocation15_spill] sm:$0xff] %v5395_v14  ;;  %v5447_v9 = vsub.f32 %v5357_v1, %v6230_v25  ;;  %v5450_v36 = vsub.f32 %v112_v37, %v5395_v14  ;;  %v6505_v26 = vand.u32 4294901760, %v6504_v17  ;;  %v124_v17 = vld [vmem:[%s6083_s1 + $0x2b8] sm:$0xff] }
  0xcf   :  { %3600 = vmatpush3.msra.mxu0 %v6487_v15  ;;  %3627 = vmatpush3.msra.mxu1 %v6452_v52  ;;  %v6490_v52 = vand.u32 4294901760, %v5057_v3  ;;  %v6492_v3 = vand.u32 4294901760, %v5109_v10  ;;  %v6228_v10 = vand.u32 4294901760, %v5378_v19  ;;  %v5556_v8 = vand.u32 4294901760, %v124_v17 }
  0xd0   :  { %3601 = vmatprep.subr.mxu0 %v6488_v24  ;;  %3628 = vmatprep.subr.mxu1 %v6453_v46  ;;  %v127_v46 = vld [vmem:[%s6083_s1 + $0x2d0] sm:$0xff]  ;;  %v5418_v30 = vsub.f32 %v5336_v11, %v6229_v27  ;;  %v5481_v24 = vand.u32 4294901760, %v109_v43 }
  0xd1   :  { %3602 = vmatpush3.msra.mxu0 %v6490_v52  ;;  %3629 = vmatpush3.msra.mxu1 %v6454_v13  ;;  %v5407_v13 = vsub.f32 %v113_v40, %v5365_v57  ;;  %v5427_v44 = vand.u32 4294901760, %v127_v46  ;;  %v125_v40 = vld [vmem:[%s6083_s1 + $0x2c0] sm:$0xff]  ;;  %v5477_v29 = vsub.f32 %v5378_v19, %v6228_v10  ;;  %6515 = vst [vmem:[#allocation13_spill] sm:$0xff] %v5556_v8  ;;  %v106_v10 = vld [vmem:[%s6083_s1 + $0x228] sm:$0xff] }
  0xd2   :  { %3603 = vmatprep.subr.mxu0 %v6492_v3  ;;  %3630 = vmatprep.subr.mxu1 %v6455_v4  ;;  %v110_v4 = vld [vmem:[%s6083_s1 + $0x248] sm:$0xff]  ;;  %6508 = vst [vmem:[#allocation10_spill] sm:$0xff] %v5481_v24  ;;  %v6509_v52 = vld [vmem:[#allocation28_spill] sm:$0xff]  ;;  %v5486_v3 = vsub.f32 %v111_v45, %v5429_v28  ;;  %v2099_v45 = vand.u32 4294901760, %v5447_v9  ;;  %v5508_v0 = vand.u32 4294901760, %v125_v40 }
  0xd3   :  { %3604 = vmatpush3.msra.mxu0 %v6494_v51  ;;  %3631 = vmatpush3.msra.mxu1 %v6456_v59  ;;  %6497 = vst [vmem:[#allocation22_spill] sm:$0xff] %v5427_v44  ;;  %v126_v59 = vld [vmem:[%s6083_s1 + $0x2c8] sm:$0xff]  ;;  %v5461_v38 = vand.u32 4294901760, %v110_v4  ;;  %v6223_v22 = vand.u32 4294901760, %v5407_v13  ;;  %v5491_v51 = vsub.f32 %v5386_v62, %v6225_v16 }
  0xd4   :  { %3605 = vmatprep.subr.mxu0 %v6495_v42  ;;  %3632 = vmatprep.subr.mxu1 %v6496_v55  ;;  %v5479_v15 = vand.u32 4294901760, %v126_v59  ;;  %v6227_v42 = vand.u32 4294901760, %v5436_v63  ;;  %v108_v55 = vld [vmem:[%s6083_s1 + $0x238] sm:$0xff]  ;;  %6511 = vst [vmem:[#allocation24_spill] sm:$0xff] %v5508_v0  ;;  %v5567_v27 = vsub.f32 %v125_v40, %v5508_v0  ;;  %v5608_v40 = vand.u32 4294901760, %v106_v10 }
  0xd5   :  { %3606 = vmatpush3.msra.mxu0 %v6499_v49  ;;  %3633 = vmatpush3.msra.mxu1 %v6500_v5  ;;  %6503 = vst [vmem:[#allocation7_spill] sm:$0xff] %v5461_v38  ;;  %v5498_v49 = vsub.f32 %v127_v46, %v5427_v44  ;;  %v5506_v5 = vsub.f32 %v5392_v31, %v6224_v6 }
  0xd6   :  { %3607 = vmatprep.subr.mxu0 %v6502_v41  ;;  %3634 = vmatprep.subr.mxu1 %v4953_v35  ;;  %v6506_v35 = vld [vmem:[#allocation29_spill] sm:$0xff]  ;;  %6507 = vst [vmem:[#allocation8_spill] sm:$0xff] %v5479_v15  ;;  %v6231_v41 = vand.u32 4294901760, %v5450_v36  ;;  %v5520_v9 = vsub.f32 %v5407_v13, %v6223_v22  ;;  %v107_v22 = vld [vmem:[%s6083_s1 + $0x230] sm:$0xff]  ;;  %v5538_v6 = vsub.f32 %v126_v59, %v5479_v15  ;;  %v6234_v59 = vand.u32 4294901760, %v5486_v3 }
  0xd7   :  { %3608 = vmatpush3.msra.mxu0 %v6505_v26  ;;  %1759 = vmatprep.mubr.f32.mxu0 %v6506_v35  ;;  %v6232_v26 = vand.u32 4294901760, %v5468_v47  ;;  %v6233_v16 = vand.u32 4294901760, %v5498_v49  ;;  %6516 = vst [vmem:[#allocation14_spill] sm:$0xff] %v5567_v27  ;;  %6520 = vst [vmem:[#allocation26_spill] sm:$0xff] %v5608_v40 }
  0xd8   :  { %3635 = vmatpush3.msra.mxu1 %v6509_v52  ;;  %1761 = vmatmul.mubr.f32.vlgmr.msra.gmra.mxu0 %v6510_v12  ;;  %v5532_v52 = vand.u32 4294901760, %v108_v55 }
  0xd9   :  { %3636 = vmatprep.subr.mxu1 %v5033_v23  ;;  %3647 = vmatprep.subr.mxu0 %v5319_v58  ;;  %v5515_v23 = vsub.f32 %v110_v4, %v5461_v38  ;;  %v5530_v4 = vsub.f32 %v109_v43, %v5481_v24  ;;  %v5546_v43 = vsub.f32 %v5436_v63, %v6227_v42 }
  0xda   :  { %3637 = vmatpush3.msra.mxu1 %v5010_v61  ;;  %3648 = vmatpush3.msra.mxu0 %v5305_v21  ;;  %v2106_v61 = vand.u32 4294901760, %v5477_v29  ;;  %6514 = vst [vmem:[#allocation11_spill] sm:$0xff] %v5532_v52  ;;  %v123_v29 = vld [vmem:[%s6083_s1 + $0x2b0] sm:$0xff]  ;;  %v5561_v42 = vsub.f32 %v5450_v36, %v6231_v41  ;;  %v5575_v25 = vsub.f32 %v5468_v47, %v6232_v26  ;;  %v5577_v41 = vand.u32 4294901760, %v107_v22 }
  0xdb   :  { %6512 = vst [vmem:[#allocation9_spill] sm:$0xff] %v5515_v23  ;;  %3638 = vmatprep.subr.mxu1 %v6460_v53  ;;  %3649 = vmatprep.subr.mxu0 %v5338_v34  ;;  %6513 = vst [vmem:[#allocation12_spill] sm:$0xff] %v5530_v4  ;;  %v5591_v26 = vand.u32 4294901760, %v123_v29  ;;  %v2120_v37 = vand.u32 4294901760, %v5546_v43 }
  0xdc   :  { %3639 = vmatpush3.msra.mxu1 %v5021_v56  ;;  %3650 = vmatpush3.msra.mxu0 %v5327_v18  ;;  %6517 = vst [vmem:[#allocation19_spill] sm:$0xff] %v5577_v41  ;;  %v122_v56 = vld [vmem:[%s6083_s1 + $0x2a8] sm:$0xff]  ;;  %v5624_v53 = vsub.f32 %v107_v22, %v5577_v41  ;;  %v6526_v22 = vand.u32 4294901760, %v5538_v6 }
  0xdd   :  { %3640 = vmatprep.subr.mxu1 %v5086_v54  ;;  %3651 = vmatprep.subr.mxu0 %v5346_v39  ;;  %v5589_v54 = vsub.f32 %v108_v55, %v5532_v52  ;;  %6519 = vst [vmem:[#allocation27_spill] sm:$0xff] %v5591_v26  ;;  %v5606_v55 = vsub.f32 %v5486_v3, %v6234_v59  ;;  %v5616_v43 = vand.u32 4294901760, %v122_v56  ;;  %v2127_v59 = vand.u32 4294901760, %v5575_v25 }
  0xde   :  { %3641 = vmatpush3.msra.mxu1 %v5097_v7  ;;  %3652 = vmatpush3.msra.mxu0 %v5351_v33  ;;  %v105_v7 = vld [vmem:[%s6083_s1 + $0x220] sm:$0xff]  ;;  %v6525_v25 = vand.u32 4294901760, %v5418_v30  ;;  %v5669_v33 = vsub.f32 %v123_v29, %v5591_v26  ;;  %v103_v29 = vld [vmem:[%s6083_s1 + $0x210] sm:$0xff] }
  0xdf   :  { %3642 = vmatprep.subr.mxu1 %v5103_v2  ;;  %3653 = vmatprep.subr.mxu0 %v5383_v50  ;;  %6518 = vst [vmem:[#allocation20_spill] sm:$0xff] %v5589_v54  ;;  %v5601_v2 = vsub.f32 %v5498_v49, %v6233_v16  ;;  %6521 = vst [vmem:[#allocation31_spill] sm:$0xff] %v5616_v43  ;;  %v5619_v46 = vand.u32 4294901760, %v105_v7  ;;  %v104_v16 = vld [vmem:[%s6083_s1 + $0x218] sm:$0xff] }
  0xe0   :  { %3643 = vmatpush3.msra.mxu1 %v5105_v20  ;;  %1863 = vmatprep.mubr.f32.mxu1 %v6506_v35  ;;  %v121_v20 = vld [vmem:[%s6083_s1 + $0x2a0] sm:$0xff]  ;;  %v5632_v35 = vsub.f32 %v124_v17, %v5556_v8 }
  0xe1   :  { %3654 = vmatpush3.msra.mxu0 %v5365_v57  ;;  %1865 = vmatmul.mubr.f32.vlgmr.msra.gmra.mxu1 %v6510_v12  ;;  %6522 = vst [vmem:[#allocation25_spill] sm:$0xff] %v5619_v46  ;;  %v6523_v57 = vand.u32 4294901760, %v5515_v23  ;;  %v5648_v17 = vand.u32 4294901760, %v121_v20  ;;  %v2134_v30 = vand.u32 4294901760, %v5601_v2 }
  0xe2   :  { %3655 = vmatprep.subr.mxu0 %v5409_v60  ;;  %3682 = vmatprep.subr.mxu1 %v2099_v45  ;;  %6524 = vst [vmem:[#allocation17_spill] sm:$0xff] %v5632_v35  ;;  %v35_v45 = vld [vmem:[%s6082_s0 + $0x28] sm:$0xff]  ;;  %v6527_v60 = vand.u32 4294901760, %v5530_v4 }
  0xe3   :  { %v5629_v12 = vsub.f32 %v5515_v23, %v6523_v57  ;;  %3656 = vmatpush3.msra.mxu0 %v5395_v14  ;;  %3683 = vmatpush3.msra.mxu1 %v6525_v25  ;;  %v5646_v57 = vsub.f32 %v5538_v6, %v6526_v22  ;;  %v34_v14 = vld [vmem:[%s6082_s0 + $0x20] sm:$0xff]  ;;  %v2022_v25 = vand.u32 4294901760, %v5606_v55  ;;  %v5663_v22 = vsub.f32 %v106_v10, %v5608_v40 }
  0xe4   :  { %v5653_v50 = vsub.f32 %v5530_v4, %v6527_v60  ;;  %3657 = vmatprep.subr.mxu0 %v5427_v44  ;;  %3684 = vmatprep.subr.mxu1 %v2106_v61  ;;  %v120_v60 = vld [vmem:[%s6083_s1 + $0x298] sm:$0xff]  ;;  %v6528_v4 = vand.u32 4294901760, %v5459_v48  ;;  %v6529_v61 = vand.u32 4294901760, %v5567_v27  ;;  %v5680_v10 = vsub.f32 %v105_v7, %v5619_v46  ;;  %v119_v7 = vld [vmem:[%s6083_s1 + $0x290] sm:$0xff] }
  0xe5   :  { %3658 = vmatpush3.msra.mxu0 %v5429_v28  ;;  %v5682_v55 = vand.u32 4294901760, %v104_v16  ;;  %v5687_v44 = vand.u32 4294901760, %v35_v45  ;;  %v6531_v48 = vand.u32 4294901760, %v5491_v51  ;;  %v5698_v28 = vsub.f32 %v122_v56, %v5616_v43  ;;  %v118_v56 = vld [vmem:[%s6083_s1 + $0x288] sm:$0xff] }
  0xe6   :  { %3685 = vmatpush3.msra.mxu1 %v6528_v4  ;;  %v5677_v2 = vsub.f32 %v5567_v27, %v6529_v61  ;;  %3659 = vmatprep.subr.mxu0 %v5479_v15  ;;  %v2029_v4 = vand.u32 4294901760, %v5629_v12  ;;  %v5700_v27 = vand.u32 4294901760, %v34_v14  ;;  %v6533_v15 = vand.u32 4294901760, %v5506_v5 }
  0xe7   :  { %6530 = vst [vmem:[#allocation16_spill] sm:$0xff] %v5687_v44  ;;  %3686 = vmatprep.subr.mxu1 %v6531_v48  ;;  %3660 = vmatpush3.msra.mxu0 %v5461_v38  ;;  %v2141_v51 = vand.u32 4294901760, %v5646_v57  ;;  %v2036_v12 = vand.u32 4294901760, %v5653_v50  ;;  %v5707_v48 = vand.u32 4294901760, %v120_v60  ;;  %v6534_v61 = vand.u32 4294901760, %v5589_v54  ;;  %v102_v57 = vld [vmem:[%s6083_s1 + $0x208] sm:$0xff] }
  0xe8   :  { %6532 = vst [vmem:[#allocation33_spill] sm:$0xff] %v5700_v27  ;;  %3687 = vmatpush3.msra.mxu1 %v6533_v15  ;;  %3661 = vmatprep.subr.mxu0 %v5508_v0  ;;  %v5719_v5 = vand.u32 4294901760, %v103_v29  ;;  %v6535_v38 = vand.u32 4294901760, %v5520_v9  ;;  %v5733_v15 = vsub.f32 %v104_v16, %v5682_v55  ;;  %v5735_v0 = vand.u32 4294901760, %v119_v7  ;;  %v117_v16 = vld [vmem:[%s6083_s1 + $0x280] sm:$0xff] }
  0xe9   :  { %v5712_v23 = vsub.f32 %v5589_v54, %v6534_v61  ;;  %3688 = vmatprep.subr.mxu1 %v2120_v37  ;;  %v5726_v61 = vsub.f32 %v121_v20, %v5648_v17  ;;  %3662 = vmatpush3.msra.mxu0 %v5481_v24  ;;  %v2148_v37 = vand.u32 4294901760, %v5677_v2  ;;  %v5738_v50 = vsub.f32 %v35_v45, %v5687_v44  ;;  %v101_v9 = vld [vmem:[%s6083_s1 + $0x200] sm:$0xff] }
  0xea   :  { %3689 = vmatpush3.msra.mxu1 %v6535_v38  ;;  %6536 = vst [vmem:[#allocation32_spill] sm:$0xff] %v5735_v0  ;;  %3663 = vmatprep.subr.mxu0 %v5556_v8  ;;  %v6537_v20 = vand.u32 4294901760, %v5632_v35  ;;  %v5744_v54 = vand.u32 4294901760, %v118_v56  ;;  %v5754_v45 = vsub.f32 %v34_v14, %v5700_v27  ;;  %v5764_v8 = vsub.f32 %v120_v60, %v5707_v48 }
  0xeb   :  { %3690 = vmatprep.subr.mxu1 %v2127_v59  ;;  %3664 = vmatpush3.msra.mxu0 %v5532_v52  ;;  %v6538_v59 = vand.u32 4294901760, %v5561_v42  ;;  %v2043_v2 = vand.u32 4294901760, %v5712_v23  ;;  %v6539_v14 = vand.u32 4294901760, %v5669_v33  ;;  %v5771_v52 = vsub.f32 %v103_v29, %v5719_v5 }
  0xec   :  { %v2154_v24 = vsub.f32 %v5632_v35, %v6537_v20  ;;  %v5760_v20 = vand.u32 4294901760, %v102_v57  ;;  %3665 = vmatprep.subr.mxu0 %v5591_v26  ;;  %v6540_v42 = vand.u32 4294901760, %v5624_v53  ;;  %v5778_v60 = vand.u32 4294901760, %v117_v16  ;;  %2207 = vmatprep.mubr.f32.mxu1 %v5687_v44  ;;  %v6574_v44 = vld [vmem:[#allocation31_spill] sm:$0xff] }
  0xed   :  { %3691 = vmatpush3.msra.mxu1 %v6538_v59  ;;  %v2161_v35 = vsub.f32 %v5669_v33, %v6539_v14  ;;  %3666 = vmatpush3.msra.mxu0 %v5577_v41  ;;  %v5780_v38 = vand.u32 4294901760, %v101_v9  ;;  %v5784_v14 = vsub.f32 %v119_v7, %v5735_v0  ;;  %v6542_v7 = vand.u32 4294901760, %v5663_v22 }
  0xee   :  { %3692 = vmatprep.subr.mxu1 %v2134_v30  ;;  %v2049_v23 = vsub.f32 %v5624_v53, %v6540_v42  ;;  %3667 = vmatprep.subr.mxu0 %v5616_v43  ;;  %v2155_v29 = vand.u32 4294901760, %v2154_v24  ;;  %v6541_v42 = vand.u32 4294901760, %v5698_v28  ;;  %v5794_v30 = vsub.f32 %v102_v57, %v5760_v20 }
  0xef   :  { %3693 = vmatpush3.msra.mxu1 %v2022_v25  ;;  %3668 = vmatpush3.msra.mxu0 %v5608_v40  ;;  %v2056_v43 = vsub.f32 %v5663_v22, %v6542_v7  ;;  %v6543_v41 = vand.u32 4294901760, %v5726_v61  ;;  %v5810_v7 = vsub.f32 %v101_v9, %v5780_v38  ;;  %v6548_v9 = vand.u32 4294901760, %v5754_v45 }
  0xf0   :  { %3694 = vmatprep.subr.mxu1 %v2141_v51  ;;  %v2168_v59 = vsub.f32 %v5698_v28, %v6541_v42  ;;  %v5801_v51 = vsub.f32 %v118_v56, %v5744_v54  ;;  %3669 = vmatprep.subr.mxu0 %v5648_v17  ;;  %v2162_v42 = vand.u32 4294901760, %v2161_v35  ;;  %v2050_v25 = vand.u32 4294901760, %v2049_v23 }
  0xf1   :  { %3695 = vmatpush3.msra.mxu1 %v2029_v4  ;;  %v2175_v4 = vsub.f32 %v5726_v61, %v6543_v41  ;;  %3670 = vmatpush3.msra.mxu0 %v5619_v46  ;;  %6544 = vst [vmem:[#allocation29_spill] sm:$0xff] %v5810_v7  ;;  %v6545_v56 = vand.u32 4294901760, %v5738_v50  ;;  %v5817_v35 = vsub.f32 %v117_v16, %v5778_v60  ;;  %v6547_v23 = vand.u32 4294901760, %v5680_v10 }
  0xf2   :  { %3696 = vmatprep.subr.mxu1 %v2148_v37  ;;  %3671 = vmatprep.subr.mxu0 %v5707_v48  ;;  %v2169_v41 = vand.u32 4294901760, %v2168_v59  ;;  %v1975_v57 = vsub.f32 %v5754_v45, %v6548_v9  ;;  %v6549_v16 = vand.u32 4294901760, %v5764_v8  ;;  %v6279_v46 = vand.u32 4294901760, %v5810_v7 }
  0xf3   :  { %3697 = vmatpush3.msra.mxu1 %v2036_v12  ;;  %v1969_v24 = vsub.f32 %v5738_v50, %v6545_v56  ;;  %6546 = vst [vmem:[#allocation28_spill] sm:$0xff] %v5817_v35  ;;  %v2063_v12 = vsub.f32 %v5680_v10, %v6547_v23  ;;  %3672 = vmatpush3.msra.mxu0 %v5682_v55  ;;  %v2057_v56 = vand.u32 4294901760, %v2056_v43  ;;  %v6550_v23 = vand.u32 4294901760, %v5733_v15 }
  0xf4   :  { %3698 = vmatprep.subr.mxu1 %v2155_v29  ;;  %v2182_v37 = vsub.f32 %v5764_v8, %v6549_v16  ;;  %3673 = vmatprep.subr.mxu0 %v5735_v0  ;;  %v2176_v29 = vand.u32 4294901760, %v2175_v4  ;;  %v6280_v59 = vand.u32 4294901760, %v5817_v35  ;;  %v1976_v4 = vand.u32 4294901760, %v1975_v57 }
  0xf5   :  { %3699 = vmatpush3.msra.mxu1 %v2043_v2  ;;  %v2070_v9 = vsub.f32 %v5733_v15, %v6550_v23  ;;  %3674 = vmatpush3.msra.mxu0 %v5719_v5  ;;  %v1970_v43 = vand.u32 4294901760, %v1969_v24  ;;  %v6551_v2 = vand.u32 4294901760, %v5784_v14  ;;  %v6552_v0 = vand.u32 4294901760, %v5771_v52 }
  0xf6   :  { %3700 = vmatprep.subr.mxu1 %v2162_v42  ;;  %3675 = vmatprep.subr.mxu0 %v5744_v54  ;;  %v2064_v42 = vand.u32 4294901760, %v2063_v12  ;;  %v6553_v24 = vand.u32 4294901760, %v5801_v51  ;;  %v6554_v57 = vand.u32 4294901760, %v5794_v30 }
  0xf7   :  { %3701 = vmatpush3.msra.mxu1 %v2050_v25  ;;  %v2189_v16 = vsub.f32 %v5784_v14, %v6551_v2  ;;  %v2077_v23 = vsub.f32 %v5771_v52, %v6552_v0  ;;  %3676 = vmatpush3.msra.mxu0 %v5760_v20  ;;  %v2183_v25 = vand.u32 4294901760, %v2182_v37  ;;  %v2203_v37 = vsub.f32 %v5817_v35, %v6280_v59  ;;  %v6572_v59 = vld [vmem:[#allocation11_spill] sm:$0xff] }
  0xf8   :  { %3702 = vmatprep.subr.mxu1 %v2169_v41  ;;  %v2196_v2 = vsub.f32 %v5801_v51, %v6553_v24  ;;  %3677 = vmatprep.subr.mxu0 %v5778_v60  ;;  %v2071_v41 = vand.u32 4294901760, %v2070_v9  ;;  %v2084_v12 = vsub.f32 %v5794_v30, %v6554_v57  ;;  %v6558_v24 = vld [vmem:[#allocation21_spill] sm:$0xff] }
  0xf9   :  { %3703 = vmatpush3.msra.mxu1 %v2057_v56  ;;  %3678 = vmatpush3.msra.mxu0 %v5780_v38  ;;  %v2190_v0 = vand.u32 4294901760, %v2189_v16  ;;  %v2078_v56 = vand.u32 4294901760, %v2077_v23  ;;  %v2204_v16 = vand.u32 4294901760, %v2203_v37  ;;  %v6556_v23 = vld [vmem:[#allocation5_spill] sm:$0xff]  ;;  %v6564_v37 = vld [vmem:[#allocation15_spill] sm:$0xff] }
  0xfa   :  { %3704 = vmatprep.subr.mxu1 %v2176_v29  ;;  %1971 = vmatprep.mubr.f32.mxu0 %v1970_v43  ;;  %v2091_v29 = vsub.f32 %v5810_v7, %v6279_v46  ;;  %v2197_v9 = vand.u32 4294901760, %v2196_v2  ;;  %v2085_v43 = vand.u32 4294901760, %v2084_v12  ;;  %v6559_v2 = vld [vmem:[#allocation12_spill] sm:$0xff]  ;;  %v6561_v57 = vld [vmem:[#allocation17_spill] sm:$0xff]  ;;  %v6562_v12 = vld [vmem:[#allocation6_spill] sm:$0xff] }
  0xfb   :  { %3705 = vmatpush3.msra.mxu1 %v2064_v42  ;;  %1977 = vmatmul.mubr.f32.vlgmr.msra.gmra.mxu0 %v1976_v4  ;;  %v6555_v4 = vld [vmem:[#allocation9_spill] sm:$0xff] }
  0xfc   :  { %3706 = vmatprep.subr.mxu1 %v2183_v25  ;;  %3717 = vmatprep.subr.mxu0 %v5357_v1  ;;  %v2092_v42 = vand.u32 4294901760, %v2091_v29  ;;  %v6557_v25 = vld [vmem:[#allocation14_spill] sm:$0xff]  ;;  %v6566_v29 = vld [vmem:[#allocation23_spill] sm:$0xff]  ;;  %v6571_v46 = vld [vmem:[#allocation13_spill] sm:$0xff] }
  0xfd   :  { %3707 = vmatpush3.msra.mxu1 %v2071_v41  ;;  %3718 = vmatpush3.msra.mxu0 %v5336_v11  ;;  %v6560_v41 = vld [vmem:[#allocation18_spill] sm:$0xff] }
  0xfe   :  { %3708 = vmatprep.subr.mxu1 %v2190_v0  ;;  %3719 = vmatprep.subr.mxu0 %v5378_v19  ;;  %v6563_v0 = vld [vmem:[#allocation20_spill] sm:$0xff] }
  0xff   :  { %3709 = vmatpush3.msra.mxu1 %v2078_v56  ;;  %3720 = vmatpush3.msra.mxu0 %v5363_v32  ;;  %v6565_v56 = vld [vmem:[#allocation22_spill] sm:$0xff] }
 0x100   :  { %3710 = vmatprep.subr.mxu1 %v2197_v9  ;;  %3721 = vmatprep.subr.mxu0 %v5386_v62  ;;  %v6567_v9 = vld [vmem:[#allocation8_spill] sm:$0xff] }
 0x101   :  { %3711 = vmatpush3.msra.mxu1 %v2085_v43  ;;  %3722 = vmatpush3.msra.mxu0 %v5392_v31  ;;  %v6568_v43 = vld [vmem:[#allocation7_spill] sm:$0xff] }
 0x102   :  { %3712 = vmatprep.subr.mxu1 %v2204_v16  ;;  %3723 = vmatprep.subr.mxu0 %v5436_v63  ;;  %v6569_v16 = vld [vmem:[#allocation24_spill] sm:$0xff] }
 0x103   :  { %3713 = vmatpush3.msra.mxu1 %v2092_v42  ;;  %3724 = vmatpush3.msra.mxu0 %v5407_v13  ;;  %v6570_v42 = vld [vmem:[#allocation10_spill] sm:$0xff] }
 0x104   :  { %2209 = vmatmul.mubr.f32.vlgmr.msra.gmra.mxu1 %v5700_v27  ;;  %3725 = vmatprep.subr.mxu0 %v5468_v47  ;;  %v6573_v27 = vld [vmem:[#allocation19_spill] sm:$0xff] }
 0x105   :  { %3752 = vmatprep.subr.mxu1 %v5319_v58  ;;  %3726 = vmatpush3.msra.mxu0 %v5450_v36 }
 0x106   :  { %3753 = vmatpush3.msra.mxu1 %v5305_v21  ;;  %3727 = vmatprep.subr.mxu0 %v5498_v49 }
 0x107   :  { %3754 = vmatprep.subr.mxu1 %v5338_v34  ;;  %3728 = vmatpush3.msra.mxu0 %v5486_v3 }
 0x108   :  { %3755 = vmatpush3.msra.mxu1 %v5327_v18  ;;  %3729 = vmatprep.subr.mxu0 %v5538_v6 }
 0x109   :  { %3756 = vmatprep.subr.mxu1 %v5346_v39  ;;  %3730 = vmatpush3.msra.mxu0 %v6555_v4 }
 0x10a   :  { %3757 = vmatpush3.msra.mxu1 %v6556_v23  ;;  %3731 = vmatprep.subr.mxu0 %v6557_v25 }
 0x10b   :  { %3758 = vmatprep.subr.mxu1 %v6558_v24  ;;  %3732 = vmatpush3.msra.mxu0 %v6559_v2 }
 0x10c   :  { %3759 = vmatpush3.msra.mxu1 %v6560_v41  ;;  %3733 = vmatprep.subr.mxu0 %v6561_v57 }
 0x10d   :  { %3760 = vmatprep.subr.mxu1 %v6562_v12  ;;  %3734 = vmatpush3.msra.mxu0 %v6563_v0 }
 0x10e   :  { %3761 = vmatpush3.msra.mxu1 %v6564_v37  ;;  %3735 = vmatprep.subr.mxu0 %v5669_v33 }
 0x10f   :  { %3762 = vmatprep.subr.mxu1 %v6565_v56  ;;  %3736 = vmatpush3.msra.mxu0 %v5624_v53 }
 0x110   :  { %3763 = vmatpush3.msra.mxu1 %v6566_v29  ;;  %3737 = vmatprep.subr.mxu0 %v5698_v28 }
 0x111   :  { %3764 = vmatprep.subr.mxu1 %v6567_v9  ;;  %3738 = vmatpush3.msra.mxu0 %v5663_v22 }
 0x112   :  { %3765 = vmatpush3.msra.mxu1 %v6568_v43  ;;  %3739 = vmatprep.subr.mxu0 %v5726_v61 }
 0x113   :  { %3766 = vmatprep.subr.mxu1 %v6569_v16  ;;  %3740 = vmatpush3.msra.mxu0 %v5680_v10 }
 0x114   :  { %3767 = vmatpush3.msra.mxu1 %v6570_v42  ;;  %3741 = vmatprep.subr.mxu0 %v5764_v8 }
 0x115   :  { %3768 = vmatprep.subr.mxu1 %v6571_v46  ;;  %3742 = vmatpush3.msra.mxu0 %v5733_v15 }
 0x116   :  { %3769 = vmatpush3.msra.mxu1 %v6572_v59  ;;  %3743 = vmatprep.subr.mxu0 %v5784_v14 }
 0x117   :  { %3770 = vmatprep.subr.mxu1 %v5591_v26  ;;  %3744 = vmatpush3.msra.mxu0 %v5771_v52  ;;  %v6575_v26 = vld [vmem:[#allocation25_spill] sm:$0xff] }
 0x118   :  { %3771 = vmatpush3.msra.mxu1 %v6573_v27  ;;  %3745 = vmatprep.subr.mxu0 %v5801_v51 }
 0x119   :  { %3772 = vmatprep.subr.mxu1 %v6574_v44  ;;  %3746 = vmatpush3.msra.mxu0 %v5794_v30  ;;  %v6576_v44 = vand.u32 4294901760, %v5357_v1  ;;  %v6581_v1 = vand.u32 4294901760, %v5386_v62  ;;  %v6586_v62 = vand.u32 4294901760, %v5754_v45 }
 0x11a   :  { %3773 = vmatpush3.msra.mxu1 %v5608_v40  ;;  %3747 = vmatprep.subr.mxu0 %v5817_v35  ;;  %v6577_v40 = vand.u32 4294901760, %v5336_v11  ;;  %v6578_v35 = vld [vmem:[#allocation32_spill] sm:$0xff]  ;;  %v6582_v11 = vand.u32 4294901760, %v5392_v31  ;;  %v6588_v31 = vand.u32 4294901760, %v5450_v36 }
 0x11b   :  { %3774 = vmatprep.subr.mxu1 %v5648_v17  ;;  %3748 = vmatpush3.msra.mxu0 %v5810_v7  ;;  %v6579_v7 = vand.u32 4294901760, %v5378_v19  ;;  %v6583_v19 = vand.u32 4294901760, %v5436_v63  ;;  %v6589_v63 = vand.u32 4294901760, %v5498_v49  ;;  %v6598_v49 = vand.u32 4294901760, %v5624_v53  ;;  %v133_v53 = vld [vmem:[%s6083_s1 + $0x300] sm:$0xff] }
 0x11c   :  { %2344 = vmatprep.mubr.f32.mxu0 %v5738_v50  ;;  %3775 = vmatpush3.msra.mxu1 %v6575_v26  ;;  %v6580_v26 = vand.u32 4294901760, %v5363_v32  ;;  %v6584_v32 = vand.u32 4294901760, %v5738_v50 }
 0x11d   :  { %2347 = vmatmul.mubr.f32.vlgmr.msra.gmra.mxu0 %v5754_v45  ;;  %3776 = vmatprep.subr.mxu1 %v5707_v48  ;;  %v6599_v45 = vand.u32 4294901760, %v5698_v28  ;;  %v6602_v28 = vand.u32 4294901760, %v5680_v10  ;;  %v6605_v10 = vand.u32 4294901760, %v5784_v14  ;;  %v6610_v14 = vand.u32 4294901760, %v5794_v30 }
 0x11e   :  { %3787 = vmatprep.subr.mxu0 %v6576_v44  ;;  %3777 = vmatpush3.msra.mxu1 %v5682_v55  ;;  %v6585_v44 = vand.u32 4294901760, %v5407_v13  ;;  %v6590_v13 = vand.u32 4294901760, %v5486_v3  ;;  %v6597_v3 = vand.u32 4294901760, %v5669_v33  ;;  %v6600_v33 = vand.u32 4294901760, %v5663_v22 }
 0x11f   :  { %3788 = vmatpush3.msra.mxu0 %v6577_v40  ;;  %3778 = vmatprep.subr.mxu1 %v6578_v35  ;;  %v134_v40 = vld [vmem:[%s6083_s1 + $0x308] sm:$0xff] }
 0x120   :  { %3789 = vmatprep.subr.mxu0 %v6579_v7  ;;  %3779 = vmatpush3.msra.mxu1 %v5719_v5  ;;  %v6601_v7 = vand.u32 4294901760, %v5726_v61  ;;  %v6604_v61 = vand.u32 4294901760, %v5733_v15  ;;  %v6609_v15 = vld [vmem:[#allocation31_spill] sm:$0xff] }
 0x121   :  { %3790 = vmatpush3.msra.mxu0 %v6580_v26  ;;  %3780 = vmatprep.subr.mxu1 %v5744_v54  ;;  %v6587_v26 = vand.u32 4294901760, %v5468_v47  ;;  %v6591_v47 = vand.u32 4294901760, %v5538_v6  ;;  %v6596_v6 = vand.u32 4294901760, %v6563_v0 }
 0x122   :  { %3791 = vmatprep.subr.mxu0 %v6581_v1  ;;  %3781 = vmatpush3.msra.mxu1 %v5760_v20 }
 0x123   :  { %3792 = vmatpush3.msra.mxu0 %v6582_v11  ;;  %3782 = vmatprep.subr.mxu1 %v5778_v60 }
 0x124   :  { %3793 = vmatprep.subr.mxu0 %v6583_v19  ;;  %3783 = vmatpush3.msra.mxu1 %v5780_v38 }
 0x125   :  { %2451 = vmatprep.mubr.f32.mxu1 %v6584_v32  ;;  %3794 = vmatpush3.msra.mxu0 %v6585_v44 }
 0x126   :  { %2455 = vmatmul.mubr.f32.vlgmr.msra.gmra.mxu1 %v6586_v62  ;;  %3795 = vmatprep.subr.mxu0 %v6587_v26 }
 0x127   :  { %3822 = vmatprep.subr.mxu1 %v5319_v58  ;;  %3796 = vmatpush3.msra.mxu0 %v6588_v31  ;;  %v6592_v58 = vand.u32 4294901760, %v6555_v4  ;;  %v6006_v4 = vand.u32 4294901760, %v134_v40 }
 0x128   :  { %3823 = vmatpush3.msra.mxu1 %v5305_v21  ;;  %3797 = vmatprep.subr.mxu0 %v6589_v63  ;;  %v36_v21 = vld [vmem:[%s6082_s0 + $0x30] sm:$0xff]  ;;  %v3225_v63 = vld [vmem:[%s6084_s2] ss:$0 sm:$0xff]  ;;  %s3226_s2 = sshll.u32 %s3972_s12, 7 }
 0x129   :  { %3824 = vmatprep.subr.mxu1 %v5338_v34  ;;  %3798 = vmatpush3.msra.mxu0 %v6590_v13  ;;  %v6593_v34 = vand.u32 4294901760, %v6557_v25  ;;  %v144_v36 = vsel %vm142_vm0, %v36_v21, 0  ;;  %v6017_v25 = vand.u32 4294901760, %v133_v53  ;;  %s3206_s19 = scalar_lea.hbm %s6085_s3, %s3226_s2 }
 0x12a   :  { %3825 = vmatpush3.msra.mxu1 %v5327_v18  ;;  %3799 = vmatprep.subr.mxu0 %v6591_v47  ;;  %v6594_v18 = vand.u32 4294901760, %v6559_v2  ;;  %v5992_v50 = vand.u32 4294901760, %v144_v36  ;;  %v2839_v2 = vsub.f32 %v134_v40, %v6006_v4 }
 0x12b   :  { %3826 = vmatprep.subr.mxu1 %v5346_v39  ;;  %3800 = vmatpush3.msra.mxu0 %v6592_v58  ;;  %v6595_v39 = vand.u32 4294901760, %v6561_v57  ;;  %v6611_v57 = vld [vmem:[#allocation26_spill] sm:$0xff] }
 0x12c   :  { %3827 = vmatpush3.msra.mxu1 %v6556_v23  ;;  %3801 = vmatprep.subr.mxu0 %v6593_v34  ;;  %v6012_v22 = vsub.f32 %v144_v36, %v5992_v50  ;;  %v6603_v23 = vand.u32 4294901760, %v5764_v8 }
 0x12d   :  { %3828 = vmatprep.subr.mxu1 %v6558_v24  ;;  %3802 = vmatpush3.msra.mxu0 %v6594_v18  ;;  %v6606_v24 = vld [vmem:[#allocation27_spill] sm:$0xff] }
 0x12e   :  { %3829 = vmatpush3.msra.mxu1 %v6560_v41  ;;  %3803 = vmatprep.subr.mxu0 %v6595_v39  ;;  %v6607_v41 = vand.u32 4294901760, %v5771_v52  ;;  %v2801_v8 = vand.u32 4294901760, %v6012_v22  ;;  %v6614_v52 = vld [vmem:[#allocation29_spill] sm:$0xff] }
 0x12f   :  { %3830 = vmatprep.subr.mxu1 %v6562_v12  ;;  %3804 = vmatpush3.msra.mxu0 %v6596_v6  ;;  %v6612_v12 = vld [vmem:[#allocation28_spill] sm:$0xff] }
 0x130   :  { %3831 = vmatpush3.msra.mxu1 %v6564_v37  ;;  %3805 = vmatprep.subr.mxu0 %v6597_v3  ;;  %v6613_v0 = vand.u32 4294901760, %v6612_v12  ;;  %v6615_v37 = vand.u32 4294901760, %v6614_v52 }
 0x131   :  { %3832 = vmatprep.subr.mxu1 %v6565_v56  ;;  %3806 = vmatpush3.msra.mxu0 %v6598_v49  ;;  %v2802_v56 = vsub.f32 %v6012_v22, %v2801_v8 }
 0x132   :  { %3833 = vmatpush3.msra.mxu1 %v6566_v29  ;;  %3807 = vmatprep.subr.mxu0 %v6599_v45  ;;  %v6617_v29 = vld [vmem:[#allocation25_spill] sm:$0xff] }
 0x133   :  { %3834 = vmatprep.subr.mxu1 %v6567_v9  ;;  %3808 = vmatpush3.msra.mxu0 %v6600_v33  ;;  %v6618_v9 = vld [vmem:[#allocation33_spill] sm:$0xff] }
 0x134   :  { %3835 = vmatpush3.msra.mxu1 %v6568_v43  ;;  %3809 = vmatprep.subr.mxu0 %v6601_v7 }
 0x135   :  { %3836 = vmatprep.subr.mxu1 %v6569_v16  ;;  %3810 = vmatpush3.msra.mxu0 %v6602_v28  ;;  %v2803_v16 = vand.u32 4294901760, %v2802_v56 }
 0x136   :  { %3837 = vmatpush3.msra.mxu1 %v6570_v42  ;;  %3811 = vmatprep.subr.mxu0 %v6603_v23 }
 0x137   :  { %3838 = vmatprep.subr.mxu1 %v6571_v46  ;;  %3812 = vmatpush3.msra.mxu0 %v6604_v61  ;;  %v6608_v46 = vand.u32 4294901760, %v5801_v51  ;;  %v6616_v51 = vld [vmem:[#allocation16_spill] sm:$0xff] }
 0x138   :  { %3839 = vmatpush3.msra.mxu1 %v6572_v59  ;;  %3813 = vmatprep.subr.mxu0 %v6605_v10  ;;  %v2846_v59 = vsub.f32 %v133_v53, %v6017_v25 }
 0x139   :  { %3840 = vmatprep.subr.mxu1 %v6606_v24  ;;  %3814 = vmatpush3.msra.mxu0 %v6607_v41 }
 0x13a   :  { %3841 = vmatpush3.msra.mxu1 %v6573_v27  ;;  %3815 = vmatprep.subr.mxu0 %v6608_v46  ;;  %v2840_v27 = vand.u32 4294901760, %v2839_v2  ;;  %v2847_v30 = vand.u32 4294901760, %v2846_v59 }
 0x13b   :  { %3842 = vmatprep.subr.mxu1 %v6609_v15  ;;  %3816 = vmatpush3.msra.mxu0 %v6610_v14 }
 0x13c   :  { %3843 = vmatpush3.msra.mxu1 %v6611_v57  ;;  %3817 = vmatprep.subr.mxu0 %v6613_v0  ;;  %v2841_v43 = vsub.f32 %v2839_v2, %v2840_v27  ;;  %v2848_v42 = vsub.f32 %v2846_v59, %v2847_v30 }
 0x13d   :  { %3844 = vmatprep.subr.mxu1 %v5648_v17  ;;  %3818 = vmatpush3.msra.mxu0 %v6615_v37  ;;  %v3949_v17 = vmov 0.0  }
 0x13e   :  { %2621 = vmatprep.mubr.f32.mxu0 %v6616_v51  ;;  %3845 = vmatpush3.msra.mxu1 %v6617_v29 }
 0x13f   :  { %2623 = vmatmul.mubr.f32.vlgmr.msra.gmra.mxu0 %v6618_v9  ;;  %3846 = vmatprep.subr.mxu1 %v5707_v48  ;;  %v2849_v48 = vand.u32 4294901760, %v2848_v42 }
 0x140   :  { %2725 = vmatprep.mubr.f32.mxu1 %v6616_v51  ;;  %3847 = vmatpush3.msra.mxu1 %v5682_v55  ;;  %v2842_v55 = vand.u32 4294901760, %v2841_v43 }
 0x141   :  { %3875 = vmatprep.subr.mxu0 %v3949_v17  ;;  %3848 = vmatprep.subr.mxu1 %v6578_v35 }
 0x142   :  { %3876 = vmatpush3.msra.mxu0 %v6006_v4  ;;  %3849 = vmatpush3.msra.mxu1 %v5719_v5 }
 0x143   :  { %3877 = vmatprep.subr.mxu0 %v3949_v17  ;;  %3850 = vmatprep.subr.mxu1 %v5744_v54  ;;  %v3259_v54 = vpop.f32.mrf.mxu0 }
 0x144   :  { %3878 = vmatpush3.msra.mxu0 %v6017_v25  ;;  %3851 = vmatpush3.msra.mxu1 %v5760_v20 }
 0x145   :  { %3879 = vmatprep.mubr.msk.f32.mxu0 %vm3950_vm1, %v3949_v17  ;;  %3852 = vmatprep.subr.mxu1 %v5778_v60  ;;  %v3260_v5 = vpop.f32.mrf.mxu0 }
 0x146   :  { %3880 = vmatmul.mubr.f32.vlgmr.msra.gmra.mxu0 %v2803_v16  ;;  %3853 = vmatpush3.msra.mxu1 %v5780_v38  ;;  %v3294_v38 = vpop.f32.mrf.mxu1  ;;  %v3261_v31 = vadd.f32 %v3260_v5, %v3259_v54 }
 0x147   :  { %3889 = vmatprep.subr.mxu0 %v3949_v17  ;;  %2727 = vmatmul.mubr.f32.vlgmr.msra.gmra.mxu1 %v6618_v9  ;;  %v3329_v20 = vpop.f32.mrf.mxu0 }
 0x148   :  { %3882 = vmatprep.subr.mxu1 %v3949_v17  ;;  %3886 = vmatprep.mubr.msk.f32.mxu1 %vm3950_vm1, %v3949_v17  ;;  %v3295_v60 = vpop.f32.mrf.mxu1  ;;  %v255_v21 = vadd.f32 %v3261_v31, %v3225_v63 }
 0x149   :  { %3883 = vmatpush3.msra.mxu1 %v2842_v55  ;;  %3890 = vmatpush3.msra.mxu0 %v2839_v2  ;;  %v3330_v35 = vpop.f32.mrf.mxu0  ;;  %v3296_v34 = vadd.f32 %v3295_v60, %v3294_v38 }
 0x14a   :  { %3884 = vmatprep.subr.mxu1 %v3949_v17  ;;  %3891 = vmatprep.subr.mxu0 %v3949_v17  ;;  %v3364_v1 = vpop.f32.mrf.mxu1  ;;  %v3331_v39 = vadd.f32 %v3330_v35, %v3329_v20 }
 0x14b   :  { %3885 = vmatpush3.msra.mxu1 %v2849_v48  ;;  %3892 = vmatpush3.msra.mxu0 %v2846_v59  ;;  %v3399_v11 = vpop.f32.mrf.mxu0  ;;  %v487_v3 = vadd.f32 %v3296_v34, %v255_v21 }
 0x14c   :  { %3887 = vmatmul.mubr.f32.vlgmr.msra.gmra.mxu1 %v5992_v50  ;;  %3896 = vmatprep.subr.mxu1 %v3949_v17  ;;  %v3365_v19 = vpop.f32.mrf.mxu1 }
 0x14d   :  { %3893 = vmatprep.mubr.msk.f32.mxu0 %vm3950_vm1, %v3949_v17  ;;  %3897 = vmatpush3.msra.mxu1 %v6006_v4  ;;  %v3400_v32 = vpop.f32.mrf.mxu0  ;;  %v3366_v49 = vadd.f32 %v3365_v19, %v3364_v1 }
 0x14e   :  { %3894 = vmatmul.mubr.f32.vlgmr.msra.gmra.mxu0 %v6012_v22  ;;  %3898 = vmatprep.subr.mxu1 %v3949_v17  ;;  %v3434_v44 = vpop.f32.mrf.mxu1  ;;  %v3401_v45 = vadd.f32 %v3400_v32, %v3399_v11 }
 0x14f   :  { %3903 = vmatprep.subr.mxu0 %v3949_v17  ;;  %3899 = vmatpush3.msra.mxu1 %v6017_v25 }
 0x150   :  { %3900 = vmatprep.mubr.msk.f32.mxu1 %vm3950_vm1, %v3949_v17  ;;  %3904 = vmatpush3.msra.mxu0 %v2840_v27  ;;  %v3435_v26 = vpop.f32.mrf.mxu1 }
 0x151   :  { %3901 = vmatmul.mubr.f32.vlgmr.msra.gmra.mxu1 %v2801_v8  ;;  %3905 = vmatprep.subr.mxu0 %v3949_v17  ;;  %v3436_v7 = vadd.f32 %v3435_v26, %v3434_v44 }
 0x152   :  { %3910 = vmatprep.subr.mxu1 %v3949_v17  ;;  %3906 = vmatpush3.msra.mxu0 %v2847_v30 }
 0x153   :  { %3907 = vmatprep.mubr.msk.f32.mxu0 %vm3950_vm1, %v3949_v17  ;;  %3911 = vmatpush3.msra.mxu1 %v6006_v4 }
 0x154   :  { %3908 = vmatmul.mubr.f32.vlgmr.msra.gmra.mxu0 %v5992_v50  ;;  %3912 = vmatprep.subr.mxu1 %v3949_v17  ;;  %v3469_v62 = vpop.f32.mrf.mxu0 }
 0x155   :  { %3914 = vmatprep.mubr.msk.f32.mxu1 %vm3950_vm1, %v3949_v17  ;;  %3913 = vmatpush3.msra.mxu1 %v6017_v25 }
 0x156   :  { %3915 = vmatmul.mubr.f32.vlgmr.msra.gmra.mxu1 %v5992_v50  ;;  %v3470_v13 = vpop.f32.mrf.mxu0  ;;  %v625_v50 = vadd.f32 %v3331_v39, %v487_v3 }
 0x157   :  { %v3471_v23 = vadd.f32 %v3470_v13, %v3469_v62 }
 0x158   :  { %v733_v53 = vadd.f32 %v3366_v49, %v625_v50 }
 0x15a   :  { %v901_v22 = vadd.f32 %v3401_v45, %v733_v53 }
 0x15c   :  { %v1005_v61 = vadd.f32 %v3436_v7, %v901_v22 }
 0x15e   :  { %v3504_v47 = vpop.f32.mrf.mxu1  ;;  %v1117_v2 = vadd.f32 %v3471_v23, %v1005_v61 }
 0x160   :  { %v3505_v18 = vpop.f32.mrf.mxu1 }
 0x161   :  { %v3506_v10 = vadd.f32 %v3505_v18, %v3504_v47 }
 0x163   :  { %v1349_v15 = vadd.f32 %v3506_v10, %v1117_v2 }
 0x176   :  { %v3539_v58 = vpop.f32.mrf.mxu0 }
 0x178   :  { %v3540_v36 = vpop.f32.mrf.mxu0 }
 0x179   :  { %v3541_v41 = vadd.f32 %v3540_v36, %v3539_v58 }
 0x17b   :  { %v1487_v57 = vadd.f32 %v3541_v41, %v1349_v15 }
 0x17f   :  { %v3574_v6 = vpop.f32.mrf.mxu1 }
 0x181   :  { %v3575_v33 = vpop.f32.mrf.mxu1 }
 0x182   :  { %v3576_v59 = vadd.f32 %v3575_v33, %v3574_v6 }
 0x184   :  { %v1595_v27 = vadd.f32 %v3576_v59, %v1487_v57 }
 0x198   :  { %v3609_v40 = vpop.f32.mrf.mxu0 }
 0x19a   :  { %v3610_v4 = vpop.f32.mrf.mxu0 }
 0x19b   :  { %v3611_v12 = vadd.f32 %v3610_v4, %v3609_v40 }
 0x19d   :  { %v1763_v56 = vadd.f32 %v3611_v12, %v1595_v27 }
 0x1a1   :  { %v3644_v28 = vpop.f32.mrf.mxu1 }
 0x1a3   :  { %v3645_v24 = vpop.f32.mrf.mxu1 }
 0x1a4   :  { %v3646_v52 = vadd.f32 %v3645_v24, %v3644_v28 }
 0x1a6   :  { %v1867_v30 = vadd.f32 %v3646_v52, %v1763_v56 }
 0x1bb   :  { %v3679_v25 = vpop.f32.mrf.mxu0 }
 0x1bd   :  { %v3680_v8 = vpop.f32.mrf.mxu0 }
 0x1be   :  { %v3681_v29 = vadd.f32 %v3680_v8, %v3679_v25 }
 0x1c0   :  { %v1979_v16 = vadd.f32 %v3681_v29, %v1867_v30 }
 0x1c4   :  { %v3714_v46 = vpop.f32.mrf.mxu1 }
 0x1c6   :  { %v3715_v0 = vpop.f32.mrf.mxu1 }
 0x1c7   :  { %v3716_v17 = vadd.f32 %v3715_v0, %v3714_v46 }
 0x1c9   :  { %v2211_v48 = vadd.f32 %v3716_v17, %v1979_v16 }
 0x1dd   :  { %v3749_v14 = vpop.f32.mrf.mxu0 }
 0x1df   :  { %v3750_v37 = vpop.f32.mrf.mxu0 }
 0x1e0   :  { %v3751_v42 = vadd.f32 %v3750_v37, %v3749_v14 }
 0x1e2   :  { %v2349_v38 = vadd.f32 %v3751_v42, %v2211_v48 }
 0x1e6   :  { %v3784_v51 = vpop.f32.mrf.mxu1 }
 0x1e8   :  { %v3785_v43 = vpop.f32.mrf.mxu1 }
 0x1e9   :  { %v3786_v54 = vadd.f32 %v3785_v43, %v3784_v51 }
 0x1eb   :  { %v2457_v1 = vadd.f32 %v3786_v54, %v2349_v38 }
 0x1ff   :  { %v3819_v9 = vpop.f32.mrf.mxu0 }
 0x201   :  { %v3820_v55 = vpop.f32.mrf.mxu0 }
 0x202   :  { %v3821_v20 = vadd.f32 %v3820_v55, %v3819_v9 }
 0x204   :  { %v2625_v19 = vadd.f32 %v3821_v20, %v2457_v1 }
 0x206   :  { %v2805_v5 = vpop.f32.mrf.mxu0 }
 0x207   :  { %v3854_v60 = vpop.f32.mrf.mxu1 }
 0x208   :  { %v3881_v35 = vpop.f32.mrf.mxu0 }
 0x209   :  { %v3855_v11 = vpop.f32.mrf.mxu1 }
 0x20a   :  { %v3856_v32 = vadd.f32 %v3855_v11, %v3854_v60 }
 0x20c   :  { %v2886_v44 = vpop.f32.mrf.mxu1  ;;  %v2729_v62 = vadd.f32 %v3856_v32, %v2625_v19 }
 0x20e   :  { %v3888_v26 = vpop.f32.mrf.mxu1  ;;  %v2962_v31 = vpop.f32.mrf.mxu0  ;;  %v2806_v63 = vadd.f32 %v2805_v5, %v2729_v62 }
 0x210   :  { %v3895_v13 = vpop.f32.mrf.mxu0  ;;  %v2887_v47 = vadd.f32 %v2886_v44, %v2806_v63 }
 0x211   :  { %v3037_v58 = vpop.f32.mrf.mxu1 }
 0x212   :  { %v2963_v21 = vadd.f32 %v2962_v31, %v2887_v47 }
 0x213   :  { %v3902_v34 = vpop.f32.mrf.mxu1 }
 0x214   :  { %v3114_v18 = vpop.f32.mrf.mxu0  ;;  %v3038_v39 = vadd.f32 %v3037_v58, %v2963_v21 }
 0x216   :  { %v3909_v36 = vpop.f32.mrf.mxu0  ;;  %v3115_v6 = vadd.f32 %v3114_v18, %v3038_v39  ;;  %v3187_v3 = vpop.f32.mrf.mxu1 }
 0x218   :  { %v3188_v49 = vadd.f32 %v3187_v3, %v3115_v6  ;;  %v3916_v40 = vpop.f32.mrf.mxu1 }
 0x21a   :  { %v3191_v50 = vmul.f32 1.442695, %v3188_v49 }
 0x21c   :  { %3921 = vpow2.f32 %v3191_v50 }
 0x229   :  { %v3922_v45 = vpop.eup %3921 }
 0x22a   :  { %v3194_v33 = vsel %vm3193_vm2, %v3922_v45, 0.0 }
 0x22b   :  { %3195 = vadd.xlane.f32.xlu0 %v3194_v33 }
 0x2b4   :  { %v3196_v53 = vpop.xlane.xlu0 %3195 }
 0x2b5   :  { %3923 = vrcp.f32 %v3196_v53 }
 0x2c2   :  { %v3924_v7 = vpop.eup %3923 }
 0x2c3   :  { %v3198_v4 = vmul.f32 %v3924_v7, %v3922_v45 }
 0x2c5   :  { %3199 = vst.msk [vmem:[#allocation2] sm:$0xff] %vm3193_vm2, %v3198_v4 }
 0x2c6   :  { %3936 = shalt.err (!%p3933_p4)
}
 0x2c7   :  { %s3937_s21 = scalar_lea.hbm %s3206_s19, 128  ;;  %s3939_s23 = scalar_lea.hbm %s6085_s3, 128 }
 0x2c8   :  { %p3938_p5 = scmp.ne.s32.totalorder %s3206_s19, %s3937_s21  ;;  %p3941_p6 = scmp.lt.s32.totalorder %s3939_s23, %s3937_s21 }
 0x2ca   :  { %p3943_p7 = pnand %p3941_p6, %p3938_p5 }
 0x2cc   :  { %3946 = shalt.err (!%p3943_p7)
}
 0x2cd   :  { %3211 = dma.vmem_to_hbm [thread:$0]  %s3209_s16, 128, %s3206_s19, [#allocation3]  }
 0x2ce   :  { %3947 = dma.done.wait [#allocation3], 128  }
 0x2cf   :  { %3948 = vsyncadd [#allocation3], 4294967168 }
 0x2d0   :  { %3215 = vsyncpa [#allocation3], 1 }

// kernel: tpu_custom_call.1
= control target key start
LH: loop header
LB: loop body
LE: loop exit
PB: predicated region body
PF: predicated region fallthrough
CT: control target
= control target key end

     0   :  { %s6046_s0 = inlined_call_operand.vmem [shape: f32[8,784], index: 0, kind: input, shape index: {}]   ;;  %s6047_s1 = inlined_call_operand.vmem [shape: f32[784,10], index: 1, kind: input, shape index: {}]   ;;  %s6048_s2 = inlined_call_operand.vmem [shape: f32[1,10], index: 2, kind: input, shape index: {}]   ;;  %s6049_s3 = inlined_call_operand.hbm [shape: f32[8,10], index: 3, kind: output, shape index: {}]  }
   0x1   :  { %v53_v0 = vld [vmem:[%s6047_s1 + $0xf8] sm:$0xff]  ;;  %v52_v2 = vld [vmem:[%s6047_s1 + $0xf0] sm:$0xff]  ;;  %v51_v7 = vld [vmem:[%s6047_s1 + $0xe8] sm:$0xff] }
   0x2   :  { %v37_v1 = vld [vmem:[%s6047_s1 + $0x78] sm:$0xff]  ;;  %v3951_v3 = vand.u32 4294901760, %v53_v0  ;;  %v3955_v5 = vand.u32 4294901760, %v52_v2  ;;  %v36_v6 = vld [vmem:[%s6047_s1 + $0x70] sm:$0xff]  ;;  %v35_v8 = vld [vmem:[%s6047_s1 + $0x68] sm:$0xff]  ;;  %v3968_v10 = vand.u32 4294901760, %v51_v7 }
   0x3   :  { %v3953_v4 = vand.u32 4294901760, %v37_v1  ;;  %v3966_v9 = vand.u32 4294901760, %v36_v6  ;;  %v3970_v11 = vand.u32 4294901760, %v35_v8  ;;  %v50_v12 = vld [vmem:[%s6047_s1 + $0xe0] sm:$0xff]  ;;  %v49_v14 = vld [vmem:[%s6047_s1 + $0xd8] sm:$0xff]  ;;  %v3999_v20 = vld [vmem:[%s6047_s1 + $0xd0] sm:$0xff] }
   0x4   :  { %v34_v13 = vld [vmem:[%s6047_s1 + $0x60] sm:$0xff]  ;;  %3200 = vmatprep.subr.mxu0 %v3951_v3  ;;  %v3982_v15 = vand.u32 4294901760, %v50_v12  ;;  %v3986_v17 = vand.u32 4294901760, %v49_v14  ;;  %v3989_v18 = vsub.f32 %v53_v0, %v3951_v3  ;;  %v3994_v19 = vld [vmem:[%s6047_s1 + $0x58] sm:$0xff]  ;;  %v4004_v21 = vld [vmem:[%s6047_s1 + $0x50] sm:$0xff]  ;;  %v4014_v24 = vand.u32 4294901760, %v3999_v20 }
   0x5   :  { %v3984_v16 = vand.u32 4294901760, %v34_v13  ;;  %3201 = vmatpush3.msra.mxu0 %v3953_v4  ;;  %v4008_v22 = vand.u32 4294901760, %v3994_v19  ;;  %v4011_v23 = vsub.f32 %v37_v1, %v3953_v4  ;;  %v4017_v25 = vsub.f32 %v52_v2, %v3955_v5  ;;  %v4022_v26 = vld [vmem:[%s6047_s1 + $0xc8] sm:$0xff]  ;;  %v4032_v28 = vld [vmem:[%s6047_s1 + $0xc0] sm:$0xff]  ;;  %v4084_v46 = vld [vmem:[%s6047_s1 + $0xb8] sm:$0xff] }
   0x6   :  { %v4027_v27 = vld [vmem:[%s6047_s1 + $0x48] sm:$0xff]  ;;  %3202 = vmatprep.subr.mxu0 %v3955_v5  ;;  %v6063_v29 = vand.u32 4294901760, %v3989_v18  ;;  %v4037_v30 = vand.u32 4294901760, %v4004_v21  ;;  %v4040_v31 = vsub.f32 %v36_v6, %v3966_v9  ;;  %v4043_v32 = vand.u32 4294901760, %v4022_v26  ;;  %v4057_v37 = vld [vmem:[%s6047_s1 + $0x40] sm:$0xff]  ;;  %v4097_v51 = vld [vmem:[%s6047_s1 + $0x38] sm:$0xff] }
   0x7   :  { %3203 = vmatpush3.msra.mxu0 %v3966_v9  ;;  %v6062_v33 = vand.u32 4294901760, %v4011_v23  ;;  %v6060_v34 = vand.u32 4294901760, %v4017_v25  ;;  %v4049_v35 = vsub.f32 %v51_v7, %v3968_v10  ;;  %v4052_v36 = vand.u32 4294901760, %v4027_v27  ;;  %v4107_v56 = vld [vmem:[%s6047_s1 + $0xb0] sm:$0xff]  ;;  %v4137_v2 = vld [vmem:[%s6047_s1 + $0xa8] sm:$0xff] }
   0x8   :  { %6253 = vst [vmem:[#allocation5_spill] sm:$0xff] %v4037_v30  ;;  %6254 = vst [vmem:[#allocation6_spill] sm:$0xff] %v4043_v32  ;;  %3204 = vmatprep.subr.mxu0 %v3968_v10  ;;  %v359_v38 = vsub.f32 %v3989_v18, %v6063_v29  ;;  %v6059_v39 = vand.u32 4294901760, %v4040_v31  ;;  %v4065_v40 = vsub.f32 %v35_v8, %v3970_v11  ;;  %v4068_v41 = vand.u32 4294901760, %v4032_v28  ;;  %v4122_v61 = vld [vmem:[%s6047_s1 + $0x30] sm:$0xff] }
   0x9   :  { %6255 = vst [vmem:[#allocation7_spill] sm:$0xff] %v4052_v36  ;;  %3205 = vmatpush3.msra.mxu0 %v3970_v11  ;;  %v247_v42 = vsub.f32 %v4011_v23, %v6062_v33  ;;  %v366_v43 = vsub.f32 %v4017_v25, %v6060_v34  ;;  %v6057_v44 = vand.u32 4294901760, %v4049_v35  ;;  %v4079_v45 = vsub.f32 %v50_v12, %v3982_v15  ;;  %v4273_v33 = vld [vmem:[%s6047_s1 + $0x88] sm:$0xff] }
   0xa   :  { %6256 = vst [vmem:[#allocation8_spill] sm:$0xff] %v4068_v41  ;;  %3206 = vmatprep.subr.mxu0 %v3982_v15  ;;  %v360_v47 = vand.u32 4294901760, %v359_v38  ;;  %v254_v48 = vsub.f32 %v4040_v31, %v6059_v39  ;;  %v6055_v49 = vand.u32 4294901760, %v4065_v40  ;;  %v4092_v50 = vand.u32 4294901760, %v4057_v37 }
   0xb   :  { %3207 = vmatpush3.msra.mxu0 %v3984_v16  ;;  %v248_v52 = vand.u32 4294901760, %v247_v42  ;;  %v367_v53 = vand.u32 4294901760, %v366_v43  ;;  %v373_v54 = vsub.f32 %v4049_v35, %v6057_v44  ;;  %v6054_v55 = vand.u32 4294901760, %v4079_v45  ;;  %v4246_v44 = vld [vmem:[%s6047_s1 + $0x90] sm:$0xff] }
   0xc   :  { %6257 = vst [vmem:[#allocation9_spill] sm:$0xff] %v4092_v50  ;;  %3208 = vmatprep.subr.mxu0 %v3986_v17  ;;  %3235 = vmatprep.subr.mxu1 %v360_v47  ;;  %v255_v57 = vand.u32 4294901760, %v254_v48  ;;  %v261_v58 = vsub.f32 %v4065_v40, %v6055_v49  ;;  %v4114_v59 = vsub.f32 %v34_v13, %v3984_v16  ;;  %v4117_v60 = vand.u32 4294901760, %v4084_v46  ;;  %v4151_v13 = vld [vmem:[%s6047_s1 + $0x28] sm:$0xff]  ;;  %v4230_v49 = vld [vmem:[%s6047_s1 + $0x18] sm:$0xff] }
   0xd   :  { %3209 = vmatpush3.msra.mxu0 %v4008_v22  ;;  %3236 = vmatpush3.msra.mxu1 %v248_v52  ;;  %v374_v62 = vand.u32 4294901760, %v373_v54  ;;  %v380_v63 = vsub.f32 %v4079_v45, %v6054_v55  ;;  %v4129_v0 = vsub.f32 %v49_v14, %v3986_v17  ;;  %v4132_v1 = vand.u32 4294901760, %v4097_v51 }
   0xe   :  { %6258 = vst [vmem:[#allocation10_spill] sm:$0xff] %v4117_v60  ;;  %3210 = vmatprep.subr.mxu0 %v4014_v24  ;;  %3237 = vmatprep.subr.mxu1 %v367_v53  ;;  %v262_v6 = vand.u32 4294901760, %v261_v58  ;;  %v6052_v7 = vand.u32 4294901760, %v4114_v59  ;;  %v4143_v8 = vsub.f32 %v3994_v19, %v4008_v22  ;;  %v4146_v12 = vand.u32 4294901760, %v4107_v56 }
   0xf   :  { %6259 = vst [vmem:[#allocation11_spill] sm:$0xff] %v4132_v1  ;;  %3211 = vmatpush3.msra.mxu0 %v4037_v30  ;;  %3238 = vmatpush3.msra.mxu1 %v255_v57  ;;  %v381_v14 = vand.u32 4294901760, %v380_v63  ;;  %v6050_v38 = vand.u32 4294901760, %v4129_v0  ;;  %v4157_v42 = vsub.f32 %v3999_v20, %v4014_v24  ;;  %v4160_v19 = vand.u32 4294901760, %v4122_v61  ;;  %v4177_v20 = vld [vmem:[%s6047_s1 + $0xa0] sm:$0xff] }
  0x10   :  { %6260 = vst [vmem:[#allocation12_spill] sm:$0xff] %v4146_v12  ;;  %3212 = vmatprep.subr.mxu0 %v4043_v32  ;;  %3239 = vmatprep.subr.mxu1 %v374_v62  ;;  %v268_v43 = vsub.f32 %v4114_v59, %v6052_v7  ;;  %v6051_v47 = vand.u32 4294901760, %v4143_v8  ;;  %v4169_v48 = vsub.f32 %v4004_v21, %v4037_v30  ;;  %v4172_v52 = vand.u32 4294901760, %v4137_v2 }
  0x11   :  { %6261 = vst [vmem:[#allocation13_spill] sm:$0xff] %v4160_v19  ;;  %3213 = vmatpush3.msra.mxu0 %v4052_v36  ;;  %3240 = vmatpush3.msra.mxu1 %v262_v6  ;;  %v387_v53 = vsub.f32 %v4129_v0, %v6050_v38  ;;  %v6053_v54 = vand.u32 4294901760, %v4157_v42  ;;  %v4186_v21 = vsub.f32 %v4022_v26, %v4043_v32  ;;  %v4189_v57 = vand.u32 4294901760, %v4151_v13  ;;  %v4203_v26 = vld [vmem:[%s6047_s1 + $0x20] sm:$0xff] }
  0x12   :  { %6262 = vst [vmem:[#allocation14_spill] sm:$0xff] %v4172_v52  ;;  %3214 = vmatprep.subr.mxu0 %v4068_v41  ;;  %3241 = vmatprep.subr.mxu1 %v381_v14  ;;  %v269_v58 = vand.u32 4294901760, %v268_v43  ;;  %v275_v62 = vsub.f32 %v4143_v8, %v6051_v47  ;;  %v6056_v63 = vand.u32 4294901760, %v4169_v48  ;;  %v4198_v6 = vsub.f32 %v4027_v27, %v4052_v36  ;;  %v4216_v27 = vld [vmem:[%s6047_s1 + $0x98] sm:$0xff] }
  0x13   :  { %6263 = vst [vmem:[#allocation15_spill] sm:$0xff] %v4189_v57  ;;  %3215 = vmatpush3.msra.mxu0 %v4092_v50  ;;  %v388_v38 = vand.u32 4294901760, %v387_v53  ;;  %v394_v14 = vsub.f32 %v4157_v42, %v6053_v54  ;;  %v6058_v43 = vand.u32 4294901760, %v4186_v21  ;;  %v4211_v47 = vand.u32 4294901760, %v4177_v20 }
  0x14   :  { %3242 = vmatpush3.msra.mxu1 %v269_v58  ;;  %3216 = vmatprep.subr.mxu0 %v4117_v60  ;;  %v276_v7 = vand.u32 4294901760, %v275_v62  ;;  %v282_v53 = vsub.f32 %v4169_v48, %v6056_v63  ;;  %v6061_v54 = vand.u32 4294901760, %v4198_v6  ;;  %v4225_v55 = vsub.f32 %v4032_v28, %v4068_v41 }
  0x15   :  { %6264 = vst [vmem:[#allocation16_spill] sm:$0xff] %v4211_v47  ;;  %3243 = vmatprep.subr.mxu1 %v388_v38  ;;  %3217 = vmatpush3.msra.mxu0 %v4132_v1  ;;  %v395_v58 = vand.u32 4294901760, %v394_v14  ;;  %v401_v62 = vsub.f32 %v4186_v21, %v6058_v43  ;;  %v4237_v63 = vand.u32 4294901760, %v4203_v26  ;;  %v4241_v28 = vsub.f32 %v4057_v37, %v4092_v50  ;;  %v4259_v37 = vld [vmem:[%s6047_s1 + $0x10] sm:$0xff] }
  0x16   :  { %3244 = vmatpush3.msra.mxu1 %v276_v7  ;;  %3218 = vmatprep.subr.mxu0 %v4146_v12  ;;  %v283_v38 = vand.u32 4294901760, %v282_v53  ;;  %v289_v14 = vsub.f32 %v4198_v6, %v6061_v54  ;;  %v6064_v43 = vand.u32 4294901760, %v4225_v55  ;;  %v4254_v39 = vand.u32 4294901760, %v4216_v27 }
  0x17   :  { %6265 = vst [vmem:[#allocation17_spill] sm:$0xff] %v4237_v63  ;;  %3245 = vmatprep.subr.mxu1 %v395_v58  ;;  %3219 = vmatpush3.msra.mxu0 %v4160_v19  ;;  %v402_v7 = vand.u32 4294901760, %v401_v62  ;;  %v6067_v53 = vand.u32 4294901760, %v4241_v28  ;;  %v4265_v34 = vsub.f32 %v4084_v46, %v4117_v60  ;;  %v4268_v54 = vand.u32 4294901760, %v4230_v49 }
  0x18   :  { %3246 = vmatpush3.msra.mxu1 %v283_v38  ;;  %3220 = vmatprep.subr.mxu0 %v4172_v52  ;;  %v290_v58 = vand.u32 4294901760, %v289_v14  ;;  %v408_v62 = vsub.f32 %v4225_v55, %v6064_v43  ;;  %v4281_v46 = vsub.f32 %v4097_v51, %v4132_v1  ;;  %v4284_v29 = vand.u32 4294901760, %v4246_v44 }
  0x19   :  { %6266 = vst [vmem:[#allocation18_spill] sm:$0xff] %v4268_v54 }
  0x1a   :  { %6267 = vst [vmem:[#allocation19_spill] sm:$0xff] %v4284_v29 }
  0x1b   :  { %8 = vsyncpa [#allocation3], 0  ;;  %3247 = vmatprep.subr.mxu1 %v402_v7  ;;  %3221 = vmatpush3.msra.mxu0 %v4189_v57  ;;  %v296_v38 = vsub.f32 %v4241_v28, %v6067_v53  ;;  %v4293_v43 = vsub.f32 %v4107_v56, %v4146_v12  ;;  %v4296_v51 = vand.u32 4294901760, %v4259_v37  ;;  %v4301_v1 = vld [vmem:[%s6047_s1 + $0x8] sm:$0xff]  ;;  %v409_v7 = vand.u32 4294901760, %v408_v62  ;;  %v4315_v12 = vld [vmem:[%s6047_s1 + $0x80] sm:$0xff] }
  0x1c   :  { %3248 = vmatpush3.msra.mxu1 %v290_v58  ;;  %3222 = vmatprep.subr.mxu0 %v4211_v47  ;;  %v4307_v14 = vsub.f32 %v4122_v61, %v4160_v19  ;;  %v4310_v56 = vand.u32 4294901760, %v4273_v33  ;;  %v6271_v60 = vand.u32 4294901760, %v4265_v34  ;;  %v4324_v61 = vsub.f32 %v4137_v2, %v4172_v52  ;;  %v4341_v2 = vld [vmem:[%s6047_s1] sm:$0xff] }
  0x1d   :  { %6268 = vst [vmem:[#allocation20_spill] sm:$0xff] %v4296_v51  ;;  %3223 = vmatpush3.msra.mxu0 %v4237_v63  ;;  %v297_v58 = vand.u32 4294901760, %v296_v38  ;;  %v6084_v53 = vand.u32 4294901760, %v4293_v43  ;;  %3249 = vmatprep.subr.mxu1 %v409_v7  ;;  %v6273_v19 = vand.u32 4294901760, %v4281_v46  ;;  %v4332_v38 = vand.u32 4294901760, %v4301_v1  ;;  %v15_v41 = vld [vmem:[%s6046_s0] sm:$0xff] }
  0x1e   :  { %6269 = vst [vmem:[#allocation21_spill] sm:$0xff] %v4307_v14  ;;  %6270 = vst [vmem:[#allocation22_spill] sm:$0xff] %v4310_v56  ;;  %v415_v62 = vsub.f32 %v4265_v34, %v6271_v60  ;;  %3224 = vmatprep.subr.mxu0 %v4254_v39  ;;  %v4336_v60 = vsub.f32 %v4151_v13, %v4189_v57  ;;  %v4349_v52 = vand.u32 4294901760, %v4315_v12  ;;  %v16_v13 = vld [vmem:[%s6046_s0 + $0x8] sm:$0xff]  ;;  %vm127_vm0 = vcmask 130048  }
  0x1f   :  { %6272 = vst [vmem:[#allocation23_spill] sm:$0xff] %v4324_v61  ;;  %v303_v50 = vsub.f32 %v4281_v46, %v6273_v19  ;;  %3250 = vmatpush3.msra.mxu1 %v297_v58  ;;  %3225 = vmatpush3.msra.mxu0 %v4268_v54  ;;  %v422_v19 = vsub.f32 %v4293_v43, %v6084_v53  ;;  %v6274_v58 = vand.u32 4294901760, %v4307_v14  ;;  %vm3920_vm1 = vmmov 0  }
  0x20   :  { %v416_v7 = vand.u32 4294901760, %v415_v62  ;;  %3226 = vmatprep.subr.mxu0 %v4284_v29  ;;  %v4361_v53 = vsub.f32 %v4177_v20, %v4211_v47  ;;  %v4375_v36 = vsub.f32 %v4203_v26, %v4237_v63  ;;  %v4390_v26 = vand.u32 4294901760, %v15_v41 }
  0x21   :  { %v304_v57 = vand.u32 4294901760, %v303_v50  ;;  %v310_v62 = vsub.f32 %v4307_v14, %v6274_v58  ;;  %v423_v32 = vand.u32 4294901760, %v422_v19  ;;  %3227 = vmatpush3.msra.mxu0 %v4296_v51  ;;  %v6275_v50 = vand.u32 4294901760, %v4324_v61 }
  0x22   :  { %3251 = vmatprep.subr.mxu1 %v416_v7  ;;  %v4371_v58 = vand.u32 4294901760, %v4341_v2  ;;  %3228 = vmatprep.subr.mxu0 %v4310_v56  ;;  %v6276_v7 = vand.u32 4294901760, %v4336_v60  ;;  %v6095_v47 = vand.u32 4294901760, %v4361_v53  ;;  %v4382_v14 = vand.u32 4294901760, %v16_v13  ;;  %6278 = vst [vmem:[#allocation25_spill] sm:$0xff] %v4390_v26 }
  0x23   :  { %v429_v30 = vsub.f32 %v4324_v61, %v6275_v50  ;;  %3252 = vmatpush3.msra.mxu1 %v304_v57  ;;  %v311_v20 = vand.u32 4294901760, %v310_v62  ;;  %3229 = vmatpush3.msra.mxu0 %v4332_v38  ;;  %v6096_v61 = vand.u32 4294901760, %v4375_v36  ;;  %v4388_v57 = vsub.f32 %v4216_v27, %v4254_v39 }
  0x24   :  { %v317_v19 = vsub.f32 %v4336_v60, %v6276_v7  ;;  %6277 = vst [vmem:[#allocation24_spill] sm:$0xff] %v4382_v14  ;;  %3253 = vmatprep.subr.mxu1 %v423_v32  ;;  %3230 = vmatprep.subr.mxu0 %v4349_v52  ;;  %v436_v7 = vsub.f32 %v4361_v53, %v6095_v47  ;;  %vm3178_vm2 = vcmask 80896  }
  0x25   :  { %v430_v50 = vand.u32 4294901760, %v429_v30  ;;  %3254 = vmatpush3.msra.mxu1 %v311_v20  ;;  %v4397_v30 = vsub.f32 %v16_v13, %v4382_v14  ;;  %v4401_v32 = vsub.f32 %v4230_v49, %v4268_v54  ;;  %3231 = vmatpush3.msra.mxu0 %v4371_v58  ;;  %v324_v27 = vsub.f32 %v4375_v36, %v6096_v61 }
  0x26   :  { %v318_v62 = vand.u32 4294901760, %v317_v19  ;;  %v4409_v19 = vsub.f32 %v15_v41, %v4390_v26  ;;  %v4413_v13 = vsub.f32 %v4246_v44, %v4284_v29  ;;  %v437_v47 = vand.u32 4294901760, %v436_v7  ;;  %3270 = vmatprep.subr.mxu0 %v3989_v18  ;;  %468 = vmatprep.mubr.f32.mxu1 %v4382_v14 }
  0x27   :  { %3255 = vmatprep.subr.mxu1 %v430_v50  ;;  %v6101_v49 = vand.u32 4294901760, %v4397_v30  ;;  %v6104_v50 = vand.u32 4294901760, %v4401_v32  ;;  %v4420_v61 = vsub.f32 %v4259_v37, %v4296_v51  ;;  %v325_v20 = vand.u32 4294901760, %v324_v27 }
  0x28   :  { %3256 = vmatpush3.msra.mxu1 %v318_v62  ;;  %v6279_v41 = vand.u32 4294901760, %v4388_v57  ;;  %v6280_v62 = vand.u32 4294901760, %v4409_v19  ;;  %v6281_v14 = vand.u32 4294901760, %v4413_v13  ;;  %v4447_v51 = vsub.f32 %v4301_v1, %v4332_v38 }
  0x29   :  { %3257 = vmatprep.subr.mxu1 %v437_v47  ;;  %v230_v7 = vsub.f32 %v4397_v30, %v6101_v49  ;;  %v331_v37 = vsub.f32 %v4401_v32, %v6104_v50  ;;  %v6283_v29 = vand.u32 4294901760, %v4420_v61 }
  0x2a   :  { %v443_v54 = vsub.f32 %v4388_v57, %v6279_v41  ;;  %v4437_v41 = vsub.f32 %v4273_v33, %v4310_v56  ;;  %3258 = vmatpush3.msra.mxu1 %v325_v20  ;;  %v236_v47 = vsub.f32 %v4409_v19, %v6280_v62  ;;  %v450_v49 = vsub.f32 %v4413_v13, %v6281_v14 }
  0x2b   :  { %6282 = vst [vmem:[#allocation26_spill] sm:$0xff] %v4447_v51  ;;  %v231_v50 = vand.u32 4294901760, %v230_v7  ;;  %v332_v27 = vand.u32 4294901760, %v331_v37  ;;  %v338_v33 = vsub.f32 %v4420_v61, %v6283_v29  ;;  %v6111_v62 = vand.u32 4294901760, %v4447_v51 }
  0x2c   :  { %v444_v44 = vand.u32 4294901760, %v443_v54  ;;  %v6112_v54 = vand.u32 4294901760, %v4437_v41  ;;  %v237_v20 = vand.u32 4294901760, %v236_v47  ;;  %v451_v56 = vand.u32 4294901760, %v450_v49 }
  0x2d   :  { %v4456_v14 = vsub.f32 %v4315_v12, %v4349_v52  ;;  %232 = vmatprep.mubr.f32.mxu0 %v231_v50  ;;  %v339_v1 = vand.u32 4294901760, %v338_v33  ;;  %v4463_v29 = vsub.f32 %v4341_v2, %v4371_v58  ;;  %v345_v49 = vsub.f32 %v4447_v51, %v6111_v62  ;;  %v6286_v33 = vld [vmem:[#allocation21_spill] sm:$0xff]  ;;  %v6299_v62 = vld [vmem:[#allocation16_spill] sm:$0xff] }
  0x2e   :  { %3259 = vmatprep.subr.mxu1 %v444_v44  ;;  %v457_v7 = vsub.f32 %v4437_v41, %v6112_v54  ;;  %238 = vmatmul.mubr.f32.vlgmr.msra.gmra.mxu0 %v237_v20  ;;  %v6287_v20 = vld [vmem:[#allocation5_spill] sm:$0xff]  ;;  %v6300_v54 = vand.u32 4294901760, %v3989_v18  ;;  %v6308_v18 = vand.u32 4294901760, %v4049_v35 }
  0x2f   :  { %6284 = vst [vmem:[#allocation27_spill] sm:$0xff] %v4456_v14  ;;  %3260 = vmatpush3.msra.mxu1 %v332_v27  ;;  %6285 = vst [vmem:[#allocation28_spill] sm:$0xff] %v4463_v29  ;;  %v6110_v12 = vand.u32 4294901760, %v4456_v14  ;;  %3271 = vmatpush3.msra.mxu0 %v4011_v23  ;;  %v6109_v44 = vand.u32 4294901760, %v4463_v29  ;;  %v346_v37 = vand.u32 4294901760, %v345_v49  ;;  %v6290_v49 = vld [vmem:[#allocation7_spill] sm:$0xff] }
  0x30   :  { %3261 = vmatprep.subr.mxu1 %v451_v56  ;;  %v458_v50 = vand.u32 4294901760, %v457_v7  ;;  %3272 = vmatprep.subr.mxu0 %v4017_v25  ;;  %v6289_v7 = vld [vmem:[#allocation6_spill] sm:$0xff] }
  0x31   :  { %3262 = vmatpush3.msra.mxu1 %v339_v1  ;;  %v464_v2 = vsub.f32 %v4456_v14, %v6110_v12  ;;  %605 = vmatprep.mubr.f32.mxu0 %v4397_v30  ;;  %v352_v56 = vsub.f32 %v4463_v29, %v6109_v44  ;;  %v6288_v1 = vld [vmem:[#allocation23_spill] sm:$0xff]  ;;  %v6297_v44 = vld [vmem:[#allocation14_spill] sm:$0xff] }
  0x32   :  { %3273 = vmatpush3.msra.mxu0 %v4040_v31  ;;  %3263 = vmatprep.subr.mxu1 %v458_v50  ;;  %v6291_v50 = vld [vmem:[#allocation8_spill] sm:$0xff]  ;;  %v6298_v12 = vld [vmem:[#allocation15_spill] sm:$0xff] }
  0x33   :  { %3274 = vmatprep.subr.mxu0 %v4049_v35  ;;  %3264 = vmatpush3.msra.mxu1 %v346_v37  ;;  %v465_v27 = vand.u32 4294901760, %v464_v2  ;;  %v353_v47 = vand.u32 4294901760, %v352_v56  ;;  %v6292_v37 = vld [vmem:[#allocation9_spill] sm:$0xff]  ;;  %v6293_v2 = vld [vmem:[#allocation10_spill] sm:$0xff]  ;;  %v6294_v56 = vld [vmem:[#allocation11_spill] sm:$0xff]  ;;  %v6313_v35 = vand.u32 4294901760, %v4409_v19 }
  0x34   :  { %3275 = vmatpush3.msra.mxu0 %v4065_v40 }
  0x35   :  { %3265 = vmatprep.subr.mxu1 %v465_v27  ;;  %3276 = vmatprep.subr.mxu0 %v4079_v45  ;;  %v6295_v27 = vld [vmem:[#allocation12_spill] sm:$0xff] }
  0x36   :  { %3266 = vmatpush3.msra.mxu1 %v353_v47  ;;  %3277 = vmatpush3.msra.mxu0 %v4114_v59  ;;  %v6296_v47 = vld [vmem:[#allocation13_spill] sm:$0xff] }
  0x37   :  { %470 = vmatmul.mubr.f32.vlgmr.msra.gmra.mxu1 %v4390_v26  ;;  %3278 = vmatprep.subr.mxu0 %v4129_v0  ;;  %v6301_v26 = vld [vmem:[#allocation18_spill] sm:$0xff] }
  0x38   :  { %3305 = vmatprep.subr.mxu1 %v3951_v3  ;;  %3279 = vmatpush3.msra.mxu0 %v4143_v8 }
  0x39   :  { %3306 = vmatpush3.msra.mxu1 %v3953_v4  ;;  %3280 = vmatprep.subr.mxu0 %v4157_v42 }
  0x3a   :  { %3307 = vmatprep.subr.mxu1 %v3955_v5  ;;  %3281 = vmatpush3.msra.mxu0 %v4169_v48 }
  0x3b   :  { %3308 = vmatpush3.msra.mxu1 %v3966_v9  ;;  %3282 = vmatprep.subr.mxu0 %v4186_v21 }
  0x3c   :  { %3309 = vmatprep.subr.mxu1 %v3968_v10  ;;  %3283 = vmatpush3.msra.mxu0 %v4198_v6 }
  0x3d   :  { %3310 = vmatpush3.msra.mxu1 %v3970_v11  ;;  %3284 = vmatprep.subr.mxu0 %v4225_v55 }
  0x3e   :  { %3311 = vmatprep.subr.mxu1 %v3982_v15  ;;  %3285 = vmatpush3.msra.mxu0 %v4241_v28 }
  0x3f   :  { %3312 = vmatpush3.msra.mxu1 %v3984_v16  ;;  %3286 = vmatprep.subr.mxu0 %v4265_v34 }
  0x40   :  { %3313 = vmatprep.subr.mxu1 %v3986_v17  ;;  %3287 = vmatpush3.msra.mxu0 %v4281_v46 }
  0x41   :  { %3314 = vmatpush3.msra.mxu1 %v4008_v22  ;;  %3288 = vmatprep.subr.mxu0 %v4293_v43 }
  0x42   :  { %3315 = vmatprep.subr.mxu1 %v4014_v24  ;;  %3289 = vmatpush3.msra.mxu0 %v6286_v33 }
  0x43   :  { %3316 = vmatpush3.msra.mxu1 %v6287_v20  ;;  %3290 = vmatprep.subr.mxu0 %v6288_v1 }
  0x44   :  { %3317 = vmatprep.subr.mxu1 %v6289_v7  ;;  %3291 = vmatpush3.msra.mxu0 %v4336_v60 }
  0x45   :  { %3318 = vmatpush3.msra.mxu1 %v6290_v49  ;;  %3292 = vmatprep.subr.mxu0 %v4361_v53 }
  0x46   :  { %3319 = vmatprep.subr.mxu1 %v6291_v50  ;;  %3293 = vmatpush3.msra.mxu0 %v4375_v36 }
  0x47   :  { %3320 = vmatpush3.msra.mxu1 %v6292_v37  ;;  %3294 = vmatprep.subr.mxu0 %v4388_v57 }
  0x48   :  { %3321 = vmatprep.subr.mxu1 %v6293_v2  ;;  %3295 = vmatpush3.msra.mxu0 %v4401_v32 }
  0x49   :  { %3322 = vmatpush3.msra.mxu1 %v6294_v56  ;;  %3296 = vmatprep.subr.mxu0 %v4413_v13 }
  0x4a   :  { %3323 = vmatprep.subr.mxu1 %v6295_v27  ;;  %3297 = vmatpush3.msra.mxu0 %v4420_v61 }
  0x4b   :  { %3324 = vmatpush3.msra.mxu1 %v6296_v47  ;;  %3298 = vmatprep.subr.mxu0 %v4437_v41 }
  0x4c   :  { %3325 = vmatprep.subr.mxu1 %v6297_v44  ;;  %3299 = vmatpush3.msra.mxu0 %v4447_v51  ;;  %v6302_v51 = vand.u32 4294901760, %v4011_v23  ;;  %v6309_v23 = vand.u32 4294901760, %v4065_v40  ;;  %v6315_v40 = vand.u32 4294901760, %v4143_v8  ;;  %v6321_v8 = vand.u32 4294901760, %v4241_v28 }
  0x4d   :  { %3326 = vmatpush3.msra.mxu1 %v6298_v12  ;;  %3300 = vmatprep.subr.mxu0 %v4456_v14  ;;  %v6303_v12 = vld [vmem:[#allocation19_spill] sm:$0xff]  ;;  %v6307_v14 = vld [vmem:[#allocation22_spill] sm:$0xff] }
  0x4e   :  { %3327 = vmatprep.subr.mxu1 %v6299_v62  ;;  %3301 = vmatpush3.msra.mxu0 %v4463_v29  ;;  %v6304_v62 = vand.u32 4294901760, %v4017_v25  ;;  %v6305_v29 = vld [vmem:[#allocation20_spill] sm:$0xff]  ;;  %v6310_v25 = vand.u32 4294901760, %v4079_v45  ;;  %v6316_v45 = vand.u32 4294901760, %v4157_v42 }
  0x4f   :  { %3328 = vmatpush3.msra.mxu1 %v4237_v63  ;;  %608 = vmatmul.mubr.f32.vlgmr.msra.gmra.mxu0 %v4409_v19  ;;  %v6306_v63 = vand.u32 4294901760, %v4040_v31  ;;  %v6311_v31 = vand.u32 4294901760, %v4397_v30  ;;  %v6327_v30 = vand.u32 4294901760, %v6288_v1 }
  0x50   :  { %3329 = vmatprep.subr.mxu1 %v4254_v39  ;;  %3340 = vmatprep.subr.mxu0 %v6300_v54  ;;  %v6329_v54 = vand.u32 4294901760, %v4336_v60 }
  0x51   :  { %3330 = vmatpush3.msra.mxu1 %v6301_v26  ;;  %3341 = vmatpush3.msra.mxu0 %v6302_v51  ;;  %v6314_v51 = vand.u32 4294901760, %v4129_v0  ;;  %v6318_v0 = vand.u32 4294901760, %v4186_v21  ;;  %v6323_v21 = vand.u32 4294901760, %v4281_v46 }
  0x52   :  { %3331 = vmatprep.subr.mxu1 %v6303_v12  ;;  %3342 = vmatprep.subr.mxu0 %v6304_v62 }
  0x53   :  { %3332 = vmatpush3.msra.mxu1 %v6305_v29  ;;  %3343 = vmatpush3.msra.mxu0 %v6306_v63  ;;  %v6312_v63 = vand.u32 4294901760, %v4114_v59  ;;  %v6317_v59 = vand.u32 4294901760, %v4169_v48  ;;  %v67_v48 = vld [vmem:[%s6047_s1 + $0x168] sm:$0xff] }
  0x54   :  { %3333 = vmatprep.subr.mxu1 %v6307_v14  ;;  %3344 = vmatprep.subr.mxu0 %v6308_v18  ;;  %v4624_v46 = vand.u32 4294901760, %v67_v48  ;;  %v6333_v18 = vand.u32 4294901760, %v4388_v57 }
  0x55   :  { %3334 = vmatpush3.msra.mxu1 %v4332_v38  ;;  %3345 = vmatpush3.msra.mxu0 %v6309_v23  ;;  %v64_v23 = vld [vmem:[%s6047_s1 + $0x150] sm:$0xff] }
  0x56   :  { %3335 = vmatprep.subr.mxu1 %v4349_v52  ;;  %3346 = vmatprep.subr.mxu0 %v6310_v25  ;;  %6326 = vst [vmem:[#allocation21_spill] sm:$0xff] %v4624_v46  ;;  %v4658_v60 = vsub.f32 %v67_v48, %v4624_v46  ;;  %v6348_v48 = vld [vmem:[#allocation16_spill] sm:$0xff] }
  0x57   :  { %3336 = vmatpush3.msra.mxu1 %v4371_v58  ;;  %712 = vmatprep.mubr.f32.mxu1 %v6311_v31  ;;  %v6334_v31 = vand.u32 4294901760, %v4401_v32 }
  0x58   :  { %3347 = vmatpush3.msra.mxu0 %v6312_v63  ;;  %716 = vmatmul.mubr.f32.vlgmr.msra.gmra.mxu1 %v6313_v35  ;;  %v6336_v35 = vand.u32 4294901760, %v4413_v13  ;;  %v63_v13 = vld [vmem:[%s6047_s1 + $0x148] sm:$0xff] }
  0x59   :  { %3348 = vmatprep.subr.mxu0 %v6314_v51  ;;  %3375 = vmatprep.subr.mxu1 %v3951_v3  ;;  %v6319_v3 = vand.u32 4294901760, %v4198_v6  ;;  %v6325_v6 = vand.u32 4294901760, %v6286_v33  ;;  %v6330_v33 = vand.u32 4294901760, %v4361_v53  ;;  %v81_v53 = vld [vmem:[%s6047_s1 + $0x1d8] sm:$0xff] }
  0x5a   :  { %3349 = vmatpush3.msra.mxu0 %v6315_v40  ;;  %3376 = vmatpush3.msra.mxu1 %v3953_v4  ;;  %v85_v4 = vld [vmem:[%s6047_s1 + $0x1f8] sm:$0xff]  ;;  %v4695_v32 = vand.u32 4294901760, %v81_v53 }
  0x5b   :  { %3350 = vmatprep.subr.mxu0 %v6316_v45  ;;  %3377 = vmatprep.subr.mxu1 %v3955_v5  ;;  %v69_v5 = vld [vmem:[%s6047_s1 + $0x178] sm:$0xff]  ;;  %v4598_v42 = vand.u32 4294901760, %v85_v4 }
  0x5c   :  { %3351 = vmatpush3.msra.mxu0 %v6317_v59  ;;  %3378 = vmatpush3.msra.mxu1 %v3966_v9  ;;  %v6320_v9 = vand.u32 4294901760, %v4225_v55  ;;  %v4600_v55 = vand.u32 4294901760, %v69_v5  ;;  %6337 = vst [vmem:[#allocation7_spill] sm:$0xff] %v4695_v32  ;;  %v4703_v59 = vand.u32 4294901760, %v64_v23 }
  0x5d   :  { %3352 = vmatprep.subr.mxu0 %v6318_v0  ;;  %3379 = vmatprep.subr.mxu1 %v3968_v10  ;;  %v68_v10 = vld [vmem:[%s6047_s1 + $0x170] sm:$0xff]  ;;  %v4638_v19 = vsub.f32 %v85_v4, %v4598_v42  ;;  %v6341_v0 = vand.u32 4294901760, %v4437_v41  ;;  %v79_v4 = vld [vmem:[%s6047_s1 + $0x1c8] sm:$0xff] }
  0x5e   :  { %3353 = vmatpush3.msra.mxu0 %v6319_v3  ;;  %3380 = vmatpush3.msra.mxu1 %v3970_v11  ;;  %v6322_v11 = vand.u32 4294901760, %v4265_v34  ;;  %v6324_v34 = vand.u32 4294901760, %v4293_v43  ;;  %6340 = vst [vmem:[#allocation9_spill] sm:$0xff] %v4703_v59 }
  0x5f   :  { %3354 = vmatprep.subr.mxu0 %v6320_v9  ;;  %3381 = vmatprep.subr.mxu1 %v3982_v15  ;;  %v84_v15 = vld [vmem:[%s6047_s1 + $0x1f0] sm:$0xff]  ;;  %v6345_v9 = vld [vmem:[#allocation15_spill] sm:$0xff] }
  0x60   :  { %3355 = vmatpush3.msra.mxu0 %v6321_v8  ;;  %3382 = vmatpush3.msra.mxu1 %v3984_v16  ;;  %v4611_v16 = vand.u32 4294901760, %v68_v10  ;;  %v4622_v28 = vand.u32 4294901760, %v84_v15 }
  0x61   :  { %3356 = vmatprep.subr.mxu0 %v6322_v11  ;;  %3383 = vmatprep.subr.mxu1 %v3986_v17  ;;  %v83_v17 = vld [vmem:[%s6047_s1 + $0x1e8] sm:$0xff]  ;;  %v6346_v11 = vld [vmem:[#allocation27_spill] sm:$0xff] }
  0x62   :  { %3357 = vmatpush3.msra.mxu0 %v6323_v21  ;;  %3384 = vmatpush3.msra.mxu1 %v4008_v22  ;;  %v66_v22 = vld [vmem:[%s6047_s1 + $0x160] sm:$0xff]  ;;  %v4635_v43 = vand.u32 4294901760, %v83_v17  ;;  %v4644_v62 = vsub.f32 %v68_v10, %v4611_v16 }
  0x63   :  { %3358 = vmatprep.subr.mxu0 %v6324_v34  ;;  %3385 = vmatprep.subr.mxu1 %v4014_v24  ;;  %v4633_v24 = vsub.f32 %v69_v5, %v4600_v55  ;;  %v4652_v1 = vand.u32 4294901760, %v66_v22  ;;  %v6343_v5 = vld [vmem:[#allocation26_spill] sm:$0xff]  ;;  %v78_v34 = vld [vmem:[%s6047_s1 + $0x1c0] sm:$0xff] }
  0x64   :  { %3359 = vmatpush3.msra.mxu0 %v6325_v6  ;;  %3386 = vmatpush3.msra.mxu1 %v6287_v20  ;;  %6328 = vst [vmem:[#allocation5_spill] sm:$0xff] %v4635_v43  ;;  %v82_v20 = vld [vmem:[%s6047_s1 + $0x1e0] sm:$0xff]  ;;  %v4678_v25 = vsub.f32 %v83_v17, %v4635_v43  ;;  %v6122_v63 = vand.u32 4294901760, %v4644_v62  ;;  %v4745_v17 = vand.u32 4294901760, %v63_v13 }
  0x65   :  { %3360 = vmatprep.subr.mxu0 %v6327_v30  ;;  %3387 = vmatprep.subr.mxu1 %v6289_v7  ;;  %6331 = vst [vmem:[#allocation23_spill] sm:$0xff] %v4652_v1  ;;  %v6332_v7 = vand.u32 4294901760, %v4375_v36  ;;  %v6125_v36 = vand.u32 4294901760, %v4638_v19  ;;  %v4683_v57 = vand.u32 4294901760, %v82_v20  ;;  %v4693_v51 = vsub.f32 %v66_v22, %v4652_v1  ;;  %v62_v6 = vld [vmem:[%s6047_s1 + $0x140] sm:$0xff] }
  0x66   :  { %3361 = vmatpush3.msra.mxu0 %v6329_v54  ;;  %3388 = vmatpush3.msra.mxu1 %v6290_v49  ;;  %v65_v49 = vld [vmem:[%s6047_s1 + $0x158] sm:$0xff]  ;;  %v6121_v41 = vand.u32 4294901760, %v4678_v25  ;;  %v4734_v10 = vsub.f32 %v4644_v62, %v6122_v63  ;;  %6349 = vst [vmem:[#allocation11_spill] sm:$0xff] %v4745_v17  ;;  %v4755_v30 = vsub.f32 %v81_v53, %v4695_v32  ;;  %v6350_v54 = vld [vmem:[#allocation28_spill] sm:$0xff] }
  0x67   :  { %3362 = vmatprep.subr.mxu0 %v6330_v33  ;;  %3389 = vmatprep.subr.mxu1 %v6291_v50  ;;  %v4667_v50 = vsub.f32 %v84_v15, %v4622_v28  ;;  %6335 = vst [vmem:[#allocation6_spill] sm:$0xff] %v4683_v57  ;;  %v4697_v40 = vand.u32 4294901760, %v65_v49  ;;  %v4737_v8 = vsub.f32 %v82_v20, %v4683_v57  ;;  %v6347_v15 = vand.u32 4294901760, %v6346_v11  ;;  %v6352_v20 = vld [vmem:[#allocation24_spill] sm:$0xff] }
  0x68   :  { %3363 = vmatpush3.msra.mxu0 %v6332_v7  ;;  %3390 = vmatpush3.msra.mxu1 %v6292_v37  ;;  %v6124_v37 = vand.u32 4294901760, %v4633_v24  ;;  %v6120_v22 = vand.u32 4294901760, %v4693_v51  ;;  %v6351_v33 = vand.u32 4294901760, %v6350_v54 }
  0x69   :  { %3364 = vmatprep.subr.mxu0 %v6333_v18  ;;  %3391 = vmatprep.subr.mxu1 %v6293_v2  ;;  %v80_v2 = vld [vmem:[%s6047_s1 + $0x1d0] sm:$0xff]  ;;  %6338 = vst [vmem:[#allocation8_spill] sm:$0xff] %v4697_v40  ;;  %v6123_v45 = vand.u32 4294901760, %v4667_v50  ;;  %v4743_v21 = vsub.f32 %v65_v49, %v4697_v40  ;;  %v4766_v49 = vsub.f32 %v64_v23, %v4703_v59  ;;  %v4768_v18 = vand.u32 4294901760, %v79_v4 }
  0x6a   :  { %3365 = vmatpush3.msra.mxu0 %v6334_v31  ;;  %3392 = vmatpush3.msra.mxu1 %v6294_v56  ;;  %v6339_v56 = vand.u32 4294901760, %v4420_v61  ;;  %v4715_v61 = vsub.f32 %v4638_v19, %v6125_v36  ;;  %v4722_v3 = vand.u32 4294901760, %v80_v2  ;;  %v6354_v31 = vld [vmem:[#allocation17_spill] sm:$0xff]  ;;  %v4782_v23 = vsub.f32 %v4678_v25, %v6121_v41 }
  0x6b   :  { %3366 = vmatprep.subr.mxu0 %v6336_v35  ;;  %3393 = vmatprep.subr.mxu1 %v6295_v27  ;;  %v6119_v27 = vand.u32 4294901760, %v4658_v60  ;;  %v4763_v7 = vsub.f32 %v4667_v50, %v6123_v45  ;;  %6353 = vst [vmem:[#allocation12_spill] sm:$0xff] %v4768_v18  ;;  %v6355_v35 = vld [vmem:[#allocation25_spill] sm:$0xff]  ;;  %v6126_v11 = vand.u32 4294901760, %v4737_v8  ;;  %v4809_v54 = vsub.f32 %v4693_v51, %v6120_v22  ;;  %v4823_v22 = vld [vmem:[%s6047_s1 + $0x1b0] sm:$0xff] }
  0x6c   :  { %3367 = vmatpush3.msra.mxu0 %v6339_v56  ;;  %3394 = vmatpush3.msra.mxu1 %v6296_v47  ;;  %v4720_v47 = vsub.f32 %v4633_v24, %v6124_v37  ;;  %6342 = vst [vmem:[#allocation10_spill] sm:$0xff] %v4722_v3  ;;  %v6129_v41 = vand.u32 4294901760, %v4766_v49  ;;  %v4827_v63 = vsub.f32 %v79_v4, %v4768_v18  ;;  %v59_v36 = vld [vmem:[%s6047_s1 + $0x128] sm:$0xff] }
  0x6d   :  { %3368 = vmatprep.subr.mxu0 %v6341_v0  ;;  %3395 = vmatprep.subr.mxu1 %v6297_v44  ;;  %v6344_v44 = vand.u32 4294901760, %v6343_v5  ;;  %v4773_v53 = vsub.f32 %v4658_v60, %v6119_v27  ;;  %v4785_v5 = vsub.f32 %v80_v2, %v4722_v3  ;;  %v61_v2 = vld [vmem:[%s6047_s1 + $0x138] sm:$0xff]  ;;  %v60_v27 = vld [vmem:[%s6047_s1 + $0x130] sm:$0xff] }
  0x6e   :  { %3396 = vmatpush3.msra.mxu1 %v6345_v9  ;;  %882 = vmatprep.mubr.f32.mxu0 %v6352_v20  ;;  %v4790_v9 = vand.u32 4294901760, %v78_v34 }
  0x6f   :  { %3369 = vmatpush3.msra.mxu0 %v6344_v44  ;;  %3397 = vmatprep.subr.mxu1 %v6348_v48  ;;  %v77_v48 = vld [vmem:[%s6047_s1 + $0x1b8] sm:$0xff]  ;;  %v6132_v37 = vand.u32 4294901760, %v4785_v5  ;;  %v58_v44 = vld [vmem:[%s6047_s1 + $0x120] sm:$0xff] }
  0x70   :  { %3370 = vmatprep.subr.mxu0 %v6347_v15  ;;  %3398 = vmatpush3.msra.mxu1 %v6354_v31  ;;  %6356 = vst [vmem:[#allocation13_spill] sm:$0xff] %v4790_v9  ;;  %v4793_v15 = vand.u32 4294901760, %v62_v6  ;;  %v6128_v31 = vand.u32 4294901760, %v4743_v21  ;;  %v4832_v45 = vand.u32 4294901760, %v77_v48 }
  0x71   :  { %3371 = vmatpush3.msra.mxu0 %v6351_v33  ;;  %3399 = vmatprep.subr.mxu1 %v4254_v39  ;;  %v4804_v39 = vsub.f32 %v63_v13, %v4745_v17  ;;  %v6127_v33 = vand.u32 4294901760, %v4755_v30  ;;  %v4850_v13 = vand.u32 4294901760, %v60_v27  ;;  %v4899_v56 = vsub.f32 %v4785_v5, %v6132_v37 }
  0x72   :  { %884 = vmatmul.mubr.f32.vlgmr.msra.gmra.mxu0 %v6355_v35  ;;  %3410 = vmatprep.subr.mxu0 %v4598_v42  ;;  %6357 = vst [vmem:[#allocation14_spill] sm:$0xff] %v4793_v15  ;;  %6359 = vst [vmem:[#allocation19_spill] sm:$0xff] %v4832_v45  ;;  %v4848_v4 = vsub.f32 %v62_v6, %v4793_v15  ;;  %v4904_v0 = vsub.f32 %v77_v48, %v4832_v45  ;;  %v6368_v37 = vand.u32 4294901760, %v4715_v61 }
  0x73   :  { %3400 = vmatpush3.msra.mxu1 %v6301_v26  ;;  %3411 = vmatpush3.msra.mxu0 %v4600_v55  ;;  %6358 = vst [vmem:[#allocation18_spill] sm:$0xff] %v4804_v39  ;;  %v1229_v26 = vand.u32 4294901760, %v4763_v7  ;;  %v4834_v7 = vand.u32 4294901760, %v61_v2  ;;  %6362 = vst [vmem:[#allocation26_spill] sm:$0xff] %v4850_v13  ;;  %v4864_v6 = vsub.f32 %v4755_v30, %v6127_v33  ;;  %v75_v33 = vld [vmem:[%s6047_s1 + $0x1a8] sm:$0xff] }
  0x74   :  { %3401 = vmatprep.subr.mxu1 %v6303_v12  ;;  %3412 = vmatprep.subr.mxu0 %v4622_v28  ;;  %6361 = vst [vmem:[#allocation22_spill] sm:$0xff] %v4848_v4  ;;  %v4853_v12 = vsub.f32 %v78_v34, %v4790_v9  ;;  %v4869_v34 = vsub.f32 %v4743_v21, %v6128_v31  ;;  %v4885_v31 = vand.u32 4294901760, %v59_v36 }
  0x75   :  { %3402 = vmatpush3.msra.mxu1 %v6305_v29  ;;  %3413 = vmatpush3.msra.mxu0 %v4611_v16  ;;  %6360 = vst [vmem:[#allocation20_spill] sm:$0xff] %v4834_v7  ;;  %v4845_v29 = vsub.f32 %v4737_v8, %v6126_v11  ;;  %v4872_v11 = vand.u32 4294901760, %v4823_v22  ;;  %v1250_v48 = vand.u32 4294901760, %v4864_v6  ;;  %v6371_v6 = vand.u32 4294901760, %v4827_v63 }
  0x76   :  { %3403 = vmatprep.subr.mxu1 %v6307_v14  ;;  %3414 = vmatprep.subr.mxu0 %v4635_v43  ;;  %6363 = vst [vmem:[#allocation15_spill] sm:$0xff] %v4853_v12  ;;  %6365 = vst [vmem:[#allocation16_spill] sm:$0xff] %v4885_v31  ;;  %v4901_v14 = vand.u32 4294901760, %v58_v44 }
  0x77   :  { %3404 = vmatpush3.msra.mxu1 %v4332_v38  ;;  %3415 = vmatpush3.msra.mxu0 %v4624_v46  ;;  %6364 = vst [vmem:[#allocation27_spill] sm:$0xff] %v4872_v11  ;;  %v4879_v38 = vsub.f32 %v4766_v49, %v6129_v41  ;;  %v4894_v41 = vsub.f32 %v61_v2, %v4834_v7  ;;  %v4919_v46 = vand.u32 4294901760, %v75_v33  ;;  %v6372_v2 = vand.u32 4294901760, %v4804_v39 }
  0x78   :  { %3405 = vmatprep.subr.mxu1 %v4349_v52  ;;  %3416 = vmatprep.subr.mxu0 %v4683_v57  ;;  %v74_v52 = vld [vmem:[%s6047_s1 + $0x1a0] sm:$0xff]  ;;  %6366 = vst [vmem:[#allocation28_spill] sm:$0xff] %v4901_v14  ;;  %v4939_v57 = vsub.f32 %v59_v36, %v4885_v31  ;;  %v4955_v36 = vsub.f32 %v58_v44, %v4901_v14 }
  0x79   :  { %3406 = vmatpush3.msra.mxu1 %v4371_v58  ;;  %986 = vmatprep.mubr.f32.mxu1 %v6352_v20  ;;  %v1243_v58 = vand.u32 4294901760, %v4845_v29  ;;  %v4910_v20 = vsub.f32 %v60_v27, %v4850_v13  ;;  %6369 = vst [vmem:[#allocation17_spill] sm:$0xff] %v4919_v46  ;;  %v57_v27 = vld [vmem:[%s6047_s1 + $0x118] sm:$0xff] }
  0x7a   :  { %3417 = vmatpush3.msra.mxu0 %v4652_v1  ;;  %988 = vmatmul.mubr.f32.vlgmr.msra.gmra.mxu1 %v6355_v35  ;;  %v1138_v1 = vand.u32 4294901760, %v4869_v34  ;;  %v4921_v35 = vand.u32 4294901760, %v74_v52  ;;  %v18_v29 = vld [vmem:[%s6046_s0 + $0x18] sm:$0xff]  ;;  %v4936_v34 = vsub.f32 %v4827_v63, %v6371_v6  ;;  %v1257_v6 = vand.u32 4294901760, %v4899_v56  ;;  %6373 = vst [vmem:[#allocation25_spill] sm:$0xff] %v4955_v36 }
  0x7b   :  { %6367 = vst [vmem:[#allocation24_spill] sm:$0xff] %v4910_v20  ;;  %3418 = vmatprep.subr.mxu0 %v4695_v32  ;;  %3445 = vmatprep.subr.mxu1 %v6368_v37  ;;  %v6370_v37 = vand.u32 4294901760, %v4720_v47  ;;  %v4944_v32 = vsub.f32 %v4804_v39, %v6372_v2  ;;  %v56_v47 = vld [vmem:[%s6047_s1 + $0x110] sm:$0xff]  ;;  %v73_v2 = vld [vmem:[%s6047_s1 + $0x198] sm:$0xff]  ;;  %v6375_v56 = vand.u32 4294901760, %v4853_v12  ;;  %v4978_v61 = vand.u32 4294901760, %v57_v27 }
  0x7c   :  { %3419 = vmatpush3.msra.mxu0 %v4697_v40  ;;  %v4963_v40 = vsub.f32 %v4823_v22, %v4872_v11  ;;  %v72_v22 = vld [vmem:[%s6047_s1 + $0x190] sm:$0xff]  ;;  %v1264_v43 = vand.u32 4294901760, %v4936_v34 }
  0x7d   :  { %3446 = vmatpush3.msra.mxu1 %v6370_v37  ;;  %v17_v37 = vld [vmem:[%s6046_s0 + $0x10] sm:$0xff]  ;;  %3420 = vmatprep.subr.mxu0 %v4722_v3  ;;  %v6374_v3 = vand.u32 4294901760, %v4734_v10  ;;  %v4971_v44 = vsub.f32 %v4853_v12, %v6375_v56  ;;  %v4989_v56 = vand.u32 4294901760, %v56_v47  ;;  %v6380_v12 = vand.u32 4294901760, %v4773_v53  ;;  %v55_v53 = vld [vmem:[%s6047_s1 + $0x108] sm:$0xff] }
  0x7e   :  { %3447 = vmatprep.subr.mxu1 %v1229_v26  ;;  %3421 = vmatpush3.msra.mxu0 %v4703_v59  ;;  %v6376_v26 = vand.u32 4294901760, %v4848_v4  ;;  %v4983_v59 = vand.u32 4294901760, %v18_v29 }
  0x7f   :  { %3448 = vmatpush3.msra.mxu1 %v6374_v3  ;;  %3422 = vmatprep.subr.mxu0 %v4768_v18  ;;  %v6378_v3 = vand.u32 4294901760, %v4782_v23  ;;  %v1152_v18 = vand.u32 4294901760, %v4944_v32  ;;  %v5001_v23 = vand.u32 4294901760, %v73_v2  ;;  %v71_v32 = vld [vmem:[%s6047_s1 + $0x188] sm:$0xff]  ;;  %v1271_v34 = vand.u32 4294901760, %v4971_v44 }
  0x80   :  { %v4976_v39 = vsub.f32 %v4848_v4, %v6376_v26  ;;  %6377 = vst [vmem:[#allocation29_spill] sm:$0xff] %v4983_v59  ;;  %v4992_v26 = vsub.f32 %v75_v33, %v4919_v46  ;;  %v4994_v4 = vand.u32 4294901760, %v17_v37  ;;  %3423 = vmatpush3.msra.mxu0 %v4745_v17  ;;  %v6381_v33 = vand.u32 4294901760, %v4904_v0  ;;  %1330 = vmatprep.mubr.f32.mxu1 %v4983_v59 }
  0x81   :  { %3449 = vmatprep.subr.mxu1 %v6378_v3  ;;  %3424 = vmatprep.subr.mxu0 %v4790_v9  ;;  %v5010_v17 = vand.u32 4294901760, %v72_v22  ;;  %v5025_v3 = vsub.f32 %v57_v27, %v4978_v61  ;;  %v5031_v9 = vsub.f32 %v18_v29, %v4983_v59  ;;  %v5038_v44 = vsub.f32 %v56_v47, %v4989_v56  ;;  %v70_v27 = vld [vmem:[%s6047_s1 + $0x180] sm:$0xff]  ;;  %v6420_v59 = vld [vmem:[#allocation26_spill] sm:$0xff] }
  0x82   :  { %6379 = vst [vmem:[#allocation30_spill] sm:$0xff] %v4994_v4  ;;  %3450 = vmatpush3.msra.mxu1 %v6380_v12  ;;  %v5008_v10 = vsub.f32 %v4904_v0, %v6381_v33  ;;  %v5017_v12 = vsub.f32 %v74_v52, %v4921_v35  ;;  %3425 = vmatpush3.msra.mxu0 %v4793_v15  ;;  %v1159_v33 = vand.u32 4294901760, %v4976_v39  ;;  %v54_v29 = vld [vmem:[%s6047_s1 + $0x100] sm:$0xff]  ;;  %v6386_v15 = vand.u32 4294901760, %v4963_v40 }
  0x83   :  { %3451 = vmatprep.subr.mxu1 %v1243_v58  ;;  %6382 = vst [vmem:[#allocation31_spill] sm:$0xff] %v5010_v17  ;;  %v6383_v58 = vand.u32 4294901760, %v4809_v54  ;;  %3426 = vmatprep.subr.mxu0 %v4832_v45  ;;  %v6384_v54 = vand.u32 4294901760, %v4894_v41  ;;  %v5058_v45 = vsub.f32 %v73_v2, %v5001_v23  ;;  %v6387_v39 = vand.u32 4294901760, %v4879_v38 }
  0x84   :  { %3427 = vmatpush3.msra.mxu0 %v4834_v7  ;;  %v5065_v7 = vand.u32 4294901760, %v55_v53  ;;  %v5071_v2 = vand.u32 4294901760, %v70_v27  ;;  %v6173_v38 = vand.u32 4294901760, %v4955_v36 }
  0x85   :  { %3452 = vmatpush3.msra.mxu1 %v6383_v58  ;;  %v1165_v52 = vsub.f32 %v4894_v41, %v6384_v54  ;;  %v5048_v58 = vsub.f32 %v17_v37, %v4994_v4  ;;  %v5054_v54 = vand.u32 4294901760, %v71_v32  ;;  %3428 = vmatprep.subr.mxu0 %v4872_v11  ;;  %v1278_v37 = vand.u32 4294901760, %v5008_v10 }
  0x86   :  { %3453 = vmatprep.subr.mxu1 %v1250_v48  ;;  %v6385_v48 = vand.u32 4294901760, %v4910_v20  ;;  %3429 = vmatpush3.msra.mxu0 %v4850_v13  ;;  %v5077_v10 = vsub.f32 %v72_v22, %v5010_v17 }
  0x87   :  { %3454 = vmatpush3.msra.mxu1 %v1138_v1  ;;  %v1284_v1 = vsub.f32 %v4963_v40, %v6386_v15  ;;  %3430 = vmatprep.subr.mxu0 %v4919_v46  ;;  %v1166_v15 = vand.u32 4294901760, %v1165_v52 }
  0x88   :  { %v1172_v47 = vsub.f32 %v4910_v20, %v6385_v48  ;;  %3455 = vmatprep.subr.mxu1 %v1257_v6  ;;  %v5073_v20 = vand.u32 4294901760, %v54_v29  ;;  %v6388_v48 = vand.u32 4294901760, %v4992_v26  ;;  %3431 = vmatpush3.msra.mxu0 %v4885_v31  ;;  %v6389_v6 = vand.u32 4294901760, %v4939_v57 }
  0x89   :  { %3456 = vmatpush3.msra.mxu1 %v6387_v39  ;;  %3432 = vmatprep.subr.mxu0 %v4921_v35  ;;  %v1285_v52 = vand.u32 4294901760, %v1284_v1  ;;  %v6390_v39 = vand.u32 4294901760, %v5017_v12 }
  0x8a   :  { %3457 = vmatprep.subr.mxu1 %v1264_v43  ;;  %v1291_v13 = vsub.f32 %v4992_v26, %v6388_v48  ;;  %v1173_v11 = vand.u32 4294901760, %v1172_v47  ;;  %v1179_v22 = vsub.f32 %v4939_v57, %v6389_v6  ;;  %v5091_v43 = vsub.f32 %v71_v32, %v5054_v54  ;;  %3433 = vmatpush3.msra.mxu0 %v4901_v14 }
  0x8b   :  { %3458 = vmatpush3.msra.mxu1 %v1152_v18  ;;  %v5095_v48 = vsub.f32 %v55_v53, %v5065_v7  ;;  %v1298_v18 = vsub.f32 %v5017_v12, %v6390_v39  ;;  %v5103_v6 = vsub.f32 %v54_v29, %v5073_v20  ;;  %v6392_v32 = vand.u32 4294901760, %v5031_v9  ;;  %3434 = vmatprep.subr.mxu0 %v5001_v23 }
  0x8c   :  { %3459 = vmatprep.subr.mxu1 %v1271_v34  ;;  %v5110_v53 = vsub.f32 %v70_v27, %v5071_v2  ;;  %v1292_v39 = vand.u32 4294901760, %v1291_v13  ;;  %v6394_v29 = vand.u32 4294901760, %v5048_v58  ;;  %3435 = vmatpush3.msra.mxu0 %v4978_v61  ;;  %v6395_v27 = vand.u32 4294901760, %v5058_v45 }
  0x8d   :  { %3460 = vmatpush3.msra.mxu1 %v1159_v33  ;;  %6391 = vst [vmem:[#allocation32_spill] sm:$0xff] %v5103_v6  ;;  %v1092_v34 = vsub.f32 %v5031_v9, %v6392_v32  ;;  %v1186_v33 = vsub.f32 %v4955_v36, %v6173_v38  ;;  %v1180_v32 = vand.u32 4294901760, %v1179_v22  ;;  %3436 = vmatprep.subr.mxu0 %v5010_v17  ;;  %v6396_v38 = vand.u32 4294901760, %v5025_v3 }
  0x8e   :  { %6393 = vst [vmem:[#allocation33_spill] sm:$0xff] %v5110_v53  ;;  %3461 = vmatprep.subr.mxu1 %v1278_v37  ;;  %v1098_v47 = vsub.f32 %v5048_v58, %v6394_v29  ;;  %v1305_v1 = vsub.f32 %v5058_v45, %v6395_v27  ;;  %v1299_v37 = vand.u32 4294901760, %v1298_v18  ;;  %3437 = vmatpush3.msra.mxu0 %v4989_v56  ;;  %v6397_v22 = vand.u32 4294901760, %v5077_v10 }
  0x8f   :  { %3462 = vmatpush3.msra.mxu1 %v1166_v15  ;;  %v1193_v29 = vsub.f32 %v5025_v3, %v6396_v38  ;;  %v1093_v15 = vand.u32 4294901760, %v1092_v34  ;;  %v6177_v13 = vand.u32 4294901760, %v5110_v53  ;;  %3438 = vmatprep.subr.mxu0 %v5054_v54  ;;  %v6398_v17 = vand.u32 4294901760, %v5038_v44 }
  0x90   :  { %3463 = vmatprep.subr.mxu1 %v1285_v52  ;;  %v1312_v27 = vsub.f32 %v5077_v10, %v6397_v22  ;;  %v1187_v52 = vand.u32 4294901760, %v1186_v33  ;;  %v1099_v18 = vand.u32 4294901760, %v1098_v47  ;;  %v6176_v46 = vand.u32 4294901760, %v5103_v6  ;;  %3439 = vmatpush3.msra.mxu0 %v5065_v7 }
  0x91   :  { %3464 = vmatpush3.msra.mxu1 %v1173_v11  ;;  %v1200_v38 = vsub.f32 %v5038_v44, %v6398_v17  ;;  %v1306_v11 = vand.u32 4294901760, %v1305_v1  ;;  %v6399_v34 = vand.u32 4294901760, %v5091_v43  ;;  %3440 = vmatprep.subr.mxu0 %v5071_v2  ;;  %v6400_v47 = vand.u32 4294901760, %v5095_v48 }
  0x92   :  { %3465 = vmatprep.subr.mxu1 %v1292_v39  ;;  %v1194_v39 = vand.u32 4294901760, %v1193_v29  ;;  %3441 = vmatpush3.msra.mxu0 %v5073_v20  ;;  %v1313_v17 = vand.u32 4294901760, %v1312_v27  ;;  %v1326_v1 = vsub.f32 %v5110_v53, %v6177_v13  ;;  %v6418_v13 = vld [vmem:[#allocation20_spill] sm:$0xff] }
  0x93   :  { %3466 = vmatpush3.msra.mxu1 %v1180_v32  ;;  %v1319_v22 = vsub.f32 %v5091_v43, %v6399_v34  ;;  %v1207_v33 = vsub.f32 %v5095_v48, %v6400_v47  ;;  %1094 = vmatprep.mubr.f32.mxu0 %v1093_v15  ;;  %v1201_v32 = vand.u32 4294901760, %v1200_v38  ;;  %v6402_v38 = vld [vmem:[#allocation18_spill] sm:$0xff]  ;;  %v6404_v34 = vld [vmem:[#allocation15_spill] sm:$0xff] }
  0x94   :  { %3467 = vmatprep.subr.mxu1 %v1299_v37  ;;  %1100 = vmatmul.mubr.f32.vlgmr.msra.gmra.mxu0 %v1099_v18  ;;  %v1214_v37 = vsub.f32 %v5103_v6, %v6176_v46  ;;  %v1327_v27 = vand.u32 4294901760, %v1326_v1  ;;  %v6401_v18 = vld [vmem:[#allocation5_spill] sm:$0xff]  ;;  %v6407_v47 = vld [vmem:[#allocation23_spill] sm:$0xff]  ;;  %v6410_v1 = vld [vmem:[#allocation10_spill] sm:$0xff] }
  0x95   :  { %3468 = vmatpush3.msra.mxu1 %v1187_v52  ;;  %3480 = vmatprep.subr.mxu0 %v4638_v19  ;;  %v1320_v29 = vand.u32 4294901760, %v1319_v22  ;;  %v1208_v15 = vand.u32 4294901760, %v1207_v33  ;;  %v6405_v22 = vld [vmem:[#allocation6_spill] sm:$0xff]  ;;  %v6408_v33 = vld [vmem:[#allocation7_spill] sm:$0xff] }
  0x96   :  { %3469 = vmatprep.subr.mxu1 %v1306_v11  ;;  %3481 = vmatpush3.msra.mxu0 %v4633_v24  ;;  %v1215_v52 = vand.u32 4294901760, %v1214_v37  ;;  %v6403_v11 = vld [vmem:[#allocation21_spill] sm:$0xff]  ;;  %v6417_v46 = vld [vmem:[#allocation19_spill] sm:$0xff] }
  0x97   :  { %3470 = vmatpush3.msra.mxu1 %v1194_v39  ;;  %3482 = vmatprep.subr.mxu0 %v4667_v50  ;;  %v6406_v39 = vld [vmem:[#allocation22_spill] sm:$0xff]  ;;  %v6412_v37 = vld [vmem:[#allocation9_spill] sm:$0xff] }
  0x98   :  { %3471 = vmatprep.subr.mxu1 %v1313_v17  ;;  %3483 = vmatpush3.msra.mxu0 %v4644_v62  ;;  %v6409_v17 = vld [vmem:[#allocation8_spill] sm:$0xff] }
  0x99   :  { %3472 = vmatpush3.msra.mxu1 %v1201_v32  ;;  %3484 = vmatprep.subr.mxu0 %v4678_v25  ;;  %v6411_v32 = vld [vmem:[#allocation24_spill] sm:$0xff] }
  0x9a   :  { %3473 = vmatprep.subr.mxu1 %v1320_v29  ;;  %3485 = vmatpush3.msra.mxu0 %v4658_v60  ;;  %v6413_v29 = vld [vmem:[#allocation12_spill] sm:$0xff] }
  0x9b   :  { %3474 = vmatpush3.msra.mxu1 %v1208_v15  ;;  %3486 = vmatprep.subr.mxu0 %v4737_v8  ;;  %v6414_v15 = vld [vmem:[#allocation11_spill] sm:$0xff] }
  0x9c   :  { %3475 = vmatprep.subr.mxu1 %v1327_v27  ;;  %3487 = vmatpush3.msra.mxu0 %v4693_v51  ;;  %v6415_v27 = vld [vmem:[#allocation13_spill] sm:$0xff] }
  0x9d   :  { %3476 = vmatpush3.msra.mxu1 %v1215_v52  ;;  %3488 = vmatprep.subr.mxu0 %v4755_v30  ;;  %v6416_v52 = vld [vmem:[#allocation14_spill] sm:$0xff] }
  0x9e   :  { %1332 = vmatmul.mubr.f32.vlgmr.msra.gmra.mxu1 %v4994_v4  ;;  %3515 = vmatprep.subr.mxu1 %v4598_v42  ;;  %v6419_v4 = vld [vmem:[#allocation27_spill] sm:$0xff] }
  0x9f   :  { %3489 = vmatpush3.msra.mxu0 %v4743_v21  ;;  %3516 = vmatpush3.msra.mxu1 %v4600_v55 }
  0xa0   :  { %3490 = vmatprep.subr.mxu0 %v4785_v5  ;;  %3517 = vmatprep.subr.mxu1 %v4622_v28 }
  0xa1   :  { %3491 = vmatpush3.msra.mxu0 %v4766_v49  ;;  %3518 = vmatpush3.msra.mxu1 %v4611_v16 }
  0xa2   :  { %3492 = vmatprep.subr.mxu0 %v4827_v63  ;;  %3519 = vmatprep.subr.mxu1 %v6401_v18 }
  0xa3   :  { %3493 = vmatpush3.msra.mxu0 %v6402_v38  ;;  %3520 = vmatpush3.msra.mxu1 %v6403_v11 }
  0xa4   :  { %3494 = vmatprep.subr.mxu0 %v6404_v34  ;;  %3521 = vmatprep.subr.mxu1 %v6405_v22 }
  0xa5   :  { %3495 = vmatpush3.msra.mxu0 %v6406_v39  ;;  %3522 = vmatpush3.msra.mxu1 %v6407_v47 }
  0xa6   :  { %3496 = vmatprep.subr.mxu0 %v4904_v0  ;;  %3523 = vmatprep.subr.mxu1 %v6408_v33 }
  0xa7   :  { %3497 = vmatpush3.msra.mxu0 %v4894_v41  ;;  %3524 = vmatpush3.msra.mxu1 %v6409_v17 }
  0xa8   :  { %3498 = vmatprep.subr.mxu0 %v4963_v40  ;;  %3525 = vmatprep.subr.mxu1 %v6410_v1 }
  0xa9   :  { %3499 = vmatpush3.msra.mxu0 %v6411_v32  ;;  %3526 = vmatpush3.msra.mxu1 %v6412_v37 }
  0xaa   :  { %3500 = vmatprep.subr.mxu0 %v4992_v26  ;;  %3527 = vmatprep.subr.mxu1 %v6413_v29 }
  0xab   :  { %3501 = vmatpush3.msra.mxu0 %v4939_v57  ;;  %3528 = vmatpush3.msra.mxu1 %v6414_v15 }
  0xac   :  { %3502 = vmatprep.subr.mxu0 %v5017_v12  ;;  %3529 = vmatprep.subr.mxu1 %v6415_v27 }
  0xad   :  { %3503 = vmatpush3.msra.mxu0 %v4955_v36  ;;  %3530 = vmatpush3.msra.mxu1 %v6416_v52  ;;  %v6421_v36 = vld [vmem:[#allocation17_spill] sm:$0xff] }
  0xae   :  { %3504 = vmatprep.subr.mxu0 %v5058_v45  ;;  %3531 = vmatprep.subr.mxu1 %v6417_v46 }
  0xaf   :  { %3505 = vmatpush3.msra.mxu0 %v5025_v3  ;;  %3532 = vmatpush3.msra.mxu1 %v6418_v13 }
  0xb0   :  { %3506 = vmatprep.subr.mxu0 %v5077_v10  ;;  %3533 = vmatprep.subr.mxu1 %v6419_v4 }
  0xb1   :  { %3507 = vmatpush3.msra.mxu0 %v5038_v44  ;;  %3534 = vmatpush3.msra.mxu1 %v6420_v59 }
  0xb2   :  { %3508 = vmatprep.subr.mxu0 %v5091_v43  ;;  %3535 = vmatprep.subr.mxu1 %v6421_v36  ;;  %v6422_v36 = vand.u32 4294901760, %v4638_v19  ;;  %v6427_v19 = vand.u32 4294901760, %v4678_v25  ;;  %v6432_v25 = vand.u32 4294901760, %v5048_v58 }
  0xb3   :  { %3509 = vmatpush3.msra.mxu0 %v5095_v48  ;;  %3536 = vmatpush3.msra.mxu1 %v4885_v31  ;;  %v6423_v31 = vand.u32 4294901760, %v4633_v24  ;;  %v6428_v24 = vand.u32 4294901760, %v4658_v60  ;;  %v6434_v60 = vand.u32 4294901760, %v4743_v21 }
  0xb4   :  { %3510 = vmatprep.subr.mxu0 %v5110_v53  ;;  %3537 = vmatprep.subr.mxu1 %v4921_v35  ;;  %v6424_v53 = vld [vmem:[#allocation31_spill] sm:$0xff] }
  0xb5   :  { %3511 = vmatpush3.msra.mxu0 %v5103_v6  ;;  %1467 = vmatprep.mubr.f32.mxu0 %v5031_v9  ;;  %v6425_v6 = vand.u32 4294901760, %v4667_v50  ;;  %v6429_v50 = vand.u32 4294901760, %v4737_v8  ;;  %v6435_v8 = vand.u32 4294901760, %v4785_v5  ;;  %v6441_v5 = vand.u32 4294901760, %v4904_v0 }
  0xb6   :  { %3538 = vmatpush3.msra.mxu1 %v4901_v14  ;;  %1470 = vmatmul.mubr.f32.vlgmr.msra.gmra.mxu0 %v5048_v58  ;;  %v6426_v14 = vand.u32 4294901760, %v4644_v62  ;;  %v6430_v62 = vand.u32 4294901760, %v5031_v9  ;;  %v116_v9 = vld [vmem:[%s6047_s1 + $0x2f0] sm:$0xff]  ;;  %v6443_v0 = vand.u32 4294901760, %v4963_v40  ;;  %v98_v40 = vld [vmem:[%s6047_s1 + $0x260] sm:$0xff] }
  0xb7   :  { %3539 = vmatprep.subr.mxu1 %v5001_v23  ;;  %3550 = vmatprep.subr.mxu0 %v6422_v36  ;;  %v6442_v36 = vand.u32 4294901760, %v4894_v41  ;;  %v99_v41 = vld [vmem:[%s6047_s1 + $0x268] sm:$0xff] }
  0xb8   :  { %3540 = vmatpush3.msra.mxu1 %v4978_v61  ;;  %3551 = vmatpush3.msra.mxu0 %v6423_v31  ;;  %v6431_v31 = vand.u32 4294901760, %v4693_v51  ;;  %v6436_v51 = vand.u32 4294901760, %v4766_v49  ;;  %v100_v49 = vld [vmem:[%s6047_s1 + $0x270] sm:$0xff] }
  0xb9   :  { %3541 = vmatprep.subr.mxu1 %v6424_v53  ;;  %3552 = vmatprep.subr.mxu0 %v6425_v6  ;;  %v115_v6 = vld [vmem:[%s6047_s1 + $0x2e8] sm:$0xff] }
  0xba   :  { %3542 = vmatpush3.msra.mxu1 %v4989_v56  ;;  %3553 = vmatpush3.msra.mxu0 %v6426_v14  ;;  %v6433_v14 = vand.u32 4294901760, %v4755_v30  ;;  %v6437_v30 = vand.u32 4294901760, %v4827_v63  ;;  %v6440_v63 = vand.u32 4294901760, %v6406_v39  ;;  %v5314_v39 = vand.u32 4294901760, %v115_v6 }
  0xbb   :  { %3543 = vmatprep.subr.mxu1 %v5054_v54  ;;  %3554 = vmatprep.subr.mxu0 %v6427_v19 }
  0xbc   :  { %3544 = vmatpush3.msra.mxu1 %v5065_v7  ;;  %3555 = vmatpush3.msra.mxu0 %v6428_v24  ;;  %v6452_v24 = vand.u32 4294901760, %v5058_v45  ;;  %v96_v45 = vld [vmem:[%s6047_s1 + $0x250] sm:$0xff] }
  0xbd   :  { %3545 = vmatprep.subr.mxu1 %v5071_v2  ;;  %3556 = vmatprep.subr.mxu0 %v6429_v50 }
  0xbe   :  { %3546 = vmatpush3.msra.mxu1 %v5073_v20  ;;  %1574 = vmatprep.mubr.f32.mxu1 %v6430_v62  ;;  %v5354_v62 = vsub.f32 %v115_v6, %v5314_v39 }
  0xbf   :  { %3557 = vmatpush3.msra.mxu0 %v6431_v31  ;;  %1578 = vmatmul.mubr.f32.vlgmr.msra.gmra.mxu1 %v6432_v25 }
  0xc0   :  { %3558 = vmatprep.subr.mxu0 %v6433_v14  ;;  %3585 = vmatprep.subr.mxu1 %v4598_v42  ;;  %v101_v42 = vld [vmem:[%s6047_s1 + $0x278] sm:$0xff] }
  0xc1   :  { %3559 = vmatpush3.msra.mxu0 %v6434_v60  ;;  %3586 = vmatpush3.msra.mxu1 %v4600_v55  ;;  %v6438_v55 = vand.u32 4294901760, %v6402_v38  ;;  %v5273_v21 = vand.u32 4294901760, %v101_v42  ;;  %v6444_v38 = vand.u32 4294901760, %v6411_v32 }
  0xc2   :  { %3560 = vmatprep.subr.mxu0 %v6435_v8  ;;  %3587 = vmatprep.subr.mxu1 %v4622_v28  ;;  %v6439_v28 = vand.u32 4294901760, %v6404_v34  ;;  %v5306_v34 = vand.u32 4294901760, %v116_v9 }
  0xc3   :  { %3561 = vmatpush3.msra.mxu0 %v6436_v51  ;;  %3588 = vmatpush3.msra.mxu1 %v4611_v16  ;;  %v117_v16 = vld [vmem:[%s6047_s1 + $0x2f8] sm:$0xff]  ;;  %v6458_v51 = vand.u32 4294901760, %v5038_v44 }
  0xc4   :  { %3562 = vmatprep.subr.mxu0 %v6437_v30  ;;  %3589 = vmatprep.subr.mxu1 %v6401_v18  ;;  %v5287_v58 = vand.u32 4294901760, %v117_v16  ;;  %v5295_v18 = vand.u32 4294901760, %v100_v49  ;;  %v5346_v19 = vsub.f32 %v116_v9, %v5306_v34 }
  0xc5   :  { %3563 = vmatpush3.msra.mxu0 %v6438_v55  ;;  %3590 = vmatpush3.msra.mxu1 %v6403_v11  ;;  %v5304_v11 = vsub.f32 %v101_v42, %v5273_v21  ;;  %v6459_v42 = vand.u32 4294901760, %v5091_v43  ;;  %v6460_v55 = vld [vmem:[#allocation17_spill] sm:$0xff]  ;;  %v94_v43 = vld [vmem:[%s6047_s1 + $0x240] sm:$0xff] }
  0xc6   :  { %3564 = vmatprep.subr.mxu0 %v6439_v28  ;;  %3591 = vmatprep.subr.mxu1 %v6405_v22  ;;  %v6445_v22 = vand.u32 4294901760, %v4992_v26  ;;  %v6448_v26 = vand.u32 4294901760, %v5017_v12  ;;  %v5331_v32 = vsub.f32 %v100_v49, %v5295_v18  ;;  %v113_v12 = vld [vmem:[%s6047_s1 + $0x2d8] sm:$0xff]  ;;  %v5397_v28 = vand.u32 4294901760, %v96_v45 }
  0xc7   :  { %3565 = vmatpush3.msra.mxu0 %v6440_v63  ;;  %3592 = vmatpush3.msra.mxu1 %v6407_v47  ;;  %v6446_v47 = vand.u32 4294901760, %v4939_v57  ;;  %v5333_v57 = vand.u32 4294901760, %v98_v40  ;;  %v5377_v60 = vand.u32 4294901760, %v113_v12  ;;  %v6463_v49 = vand.u32 4294901760, %v5095_v48 }
  0xc8   :  { %3566 = vmatprep.subr.mxu0 %v6441_v5  ;;  %3593 = vmatprep.subr.mxu1 %v6408_v33  ;;  %v5319_v33 = vand.u32 4294901760, %v99_v41  ;;  %v6190_v8 = vand.u32 4294901760, %v5331_v32  ;;  %6462 = vst [vmem:[#allocation23_spill] sm:$0xff] %v5397_v28  ;;  %v6464_v5 = vld [vmem:[#allocation16_spill] sm:$0xff] }
  0xc9   :  { %3567 = vmatpush3.msra.mxu0 %v6442_v36  ;;  %3594 = vmatpush3.msra.mxu1 %v6409_v17  ;;  %v114_v17 = vld [vmem:[%s6047_s1 + $0x2e0] sm:$0xff]  ;;  %6449 = vst [vmem:[#allocation18_spill] sm:$0xff] %v5333_v57  ;;  %6457 = vst [vmem:[#allocation6_spill] sm:$0xff] %v5377_v60 }
  0xca   :  { %3568 = vmatprep.subr.mxu0 %v6443_v0  ;;  %3595 = vmatprep.subr.mxu1 %v6410_v1  ;;  %6447 = vst [vmem:[#allocation5_spill] sm:$0xff] %v5319_v33  ;;  %v5325_v1 = vsub.f32 %v117_v16, %v5287_v58  ;;  %v5351_v50 = vand.u32 4294901760, %v114_v17  ;;  %v5360_v31 = vsub.f32 %v99_v41, %v5319_v33  ;;  %v6189_v16 = vand.u32 4294901760, %v5354_v62  ;;  %v6465_v0 = vld [vmem:[#allocation33_spill] sm:$0xff] }
  0xcb   :  { %3569 = vmatpush3.msra.mxu0 %v6444_v38  ;;  %3596 = vmatpush3.msra.mxu1 %v6412_v37  ;;  %v97_v37 = vld [vmem:[%s6047_s1 + $0x258] sm:$0xff]  ;;  %v6466_v41 = vand.u32 4294901760, %v6465_v0  ;;  %v5427_v48 = vsub.f32 %v5331_v32, %v6190_v8 }
  0xcc   :  { %3570 = vmatprep.subr.mxu0 %v6445_v22  ;;  %3597 = vmatprep.subr.mxu1 %v6413_v29  ;;  %v6450_v29 = vld [vmem:[#allocation25_spill] sm:$0xff]  ;;  %6453 = vst [vmem:[#allocation21_spill] sm:$0xff] %v5351_v50  ;;  %v6194_v25 = vand.u32 4294901760, %v5325_v1  ;;  %v5363_v14 = vand.u32 4294901760, %v97_v37  ;;  %v5404_v63 = vsub.f32 %v114_v17, %v5351_v50  ;;  %v6188_v6 = vand.u32 4294901760, %v5360_v31  ;;  %v6468_v17 = vld [vmem:[#allocation32_spill] sm:$0xff] }
  0xcd   :  { %3571 = vmatpush3.msra.mxu0 %v6446_v47  ;;  %3598 = vmatpush3.msra.mxu1 %v6414_v15  ;;  %v6451_v15 = vand.u32 4294901760, %v6450_v29  ;;  %v5436_v47 = vsub.f32 %v113_v12, %v5377_v60  ;;  %v6474_v12 = vld [vmem:[#allocation30_spill] sm:$0xff] }
  0xce   :  { %3572 = vmatprep.subr.mxu0 %v6448_v26  ;;  %3599 = vmatprep.subr.mxu1 %v6415_v27  ;;  %v6193_v27 = vand.u32 4294901760, %v5304_v11  ;;  %6455 = vst [vmem:[#allocation15_spill] sm:$0xff] %v5363_v14  ;;  %v5415_v9 = vsub.f32 %v5325_v1, %v6194_v25  ;;  %v5418_v36 = vsub.f32 %v97_v37, %v5363_v14  ;;  %v6469_v26 = vand.u32 4294901760, %v6468_v17  ;;  %v109_v17 = vld [vmem:[%s6047_s1 + $0x2b8] sm:$0xff] }
  0xcf   :  { %3573 = vmatpush3.msra.mxu0 %v6451_v15  ;;  %3600 = vmatpush3.msra.mxu1 %v6416_v52  ;;  %v6454_v52 = vand.u32 4294901760, %v5025_v3  ;;  %v6456_v3 = vand.u32 4294901760, %v5077_v10  ;;  %v6192_v10 = vand.u32 4294901760, %v5346_v19  ;;  %v5524_v8 = vand.u32 4294901760, %v109_v17 }
  0xd0   :  { %3574 = vmatprep.subr.mxu0 %v6452_v24  ;;  %3601 = vmatprep.subr.mxu1 %v6417_v46  ;;  %v112_v46 = vld [vmem:[%s6047_s1 + $0x2d0] sm:$0xff]  ;;  %v5386_v30 = vsub.f32 %v5304_v11, %v6193_v27  ;;  %v5449_v24 = vand.u32 4294901760, %v94_v43 }
  0xd1   :  { %3575 = vmatpush3.msra.mxu0 %v6454_v52  ;;  %3602 = vmatpush3.msra.mxu1 %v6418_v13  ;;  %v5375_v13 = vsub.f32 %v98_v40, %v5333_v57  ;;  %v5395_v44 = vand.u32 4294901760, %v112_v46  ;;  %v110_v40 = vld [vmem:[%s6047_s1 + $0x2c0] sm:$0xff]  ;;  %v5445_v29 = vsub.f32 %v5346_v19, %v6192_v10  ;;  %6479 = vst [vmem:[#allocation13_spill] sm:$0xff] %v5524_v8  ;;  %v91_v10 = vld [vmem:[%s6047_s1 + $0x228] sm:$0xff] }
  0xd2   :  { %3576 = vmatprep.subr.mxu0 %v6456_v3  ;;  %3603 = vmatprep.subr.mxu1 %v6419_v4  ;;  %v95_v4 = vld [vmem:[%s6047_s1 + $0x248] sm:$0xff]  ;;  %6472 = vst [vmem:[#allocation10_spill] sm:$0xff] %v5449_v24  ;;  %v6473_v52 = vld [vmem:[#allocation28_spill] sm:$0xff]  ;;  %v5454_v3 = vsub.f32 %v96_v45, %v5397_v28  ;;  %v2084_v45 = vand.u32 4294901760, %v5415_v9  ;;  %v5476_v0 = vand.u32 4294901760, %v110_v40 }
  0xd3   :  { %3577 = vmatpush3.msra.mxu0 %v6458_v51  ;;  %3604 = vmatpush3.msra.mxu1 %v6420_v59  ;;  %6461 = vst [vmem:[#allocation22_spill] sm:$0xff] %v5395_v44  ;;  %v111_v59 = vld [vmem:[%s6047_s1 + $0x2c8] sm:$0xff]  ;;  %v5429_v38 = vand.u32 4294901760, %v95_v4  ;;  %v6187_v22 = vand.u32 4294901760, %v5375_v13  ;;  %v5459_v51 = vsub.f32 %v5354_v62, %v6189_v16 }
  0xd4   :  { %3578 = vmatprep.subr.mxu0 %v6459_v42  ;;  %3605 = vmatprep.subr.mxu1 %v6460_v55  ;;  %v5447_v15 = vand.u32 4294901760, %v111_v59  ;;  %v6191_v42 = vand.u32 4294901760, %v5404_v63  ;;  %v93_v55 = vld [vmem:[%s6047_s1 + $0x238] sm:$0xff]  ;;  %6475 = vst [vmem:[#allocation24_spill] sm:$0xff] %v5476_v0  ;;  %v5535_v27 = vsub.f32 %v110_v40, %v5476_v0  ;;  %v5576_v40 = vand.u32 4294901760, %v91_v10 }
  0xd5   :  { %3579 = vmatpush3.msra.mxu0 %v6463_v49  ;;  %3606 = vmatpush3.msra.mxu1 %v6464_v5  ;;  %6467 = vst [vmem:[#allocation7_spill] sm:$0xff] %v5429_v38  ;;  %v5466_v49 = vsub.f32 %v112_v46, %v5395_v44  ;;  %v5474_v5 = vsub.f32 %v5360_v31, %v6188_v6 }
  0xd6   :  { %3580 = vmatprep.subr.mxu0 %v6466_v41  ;;  %3607 = vmatprep.subr.mxu1 %v4921_v35  ;;  %v6470_v35 = vld [vmem:[#allocation29_spill] sm:$0xff]  ;;  %6471 = vst [vmem:[#allocation8_spill] sm:$0xff] %v5447_v15  ;;  %v6195_v41 = vand.u32 4294901760, %v5418_v36  ;;  %v5488_v9 = vsub.f32 %v5375_v13, %v6187_v22  ;;  %v92_v22 = vld [vmem:[%s6047_s1 + $0x230] sm:$0xff]  ;;  %v5506_v6 = vsub.f32 %v111_v59, %v5447_v15  ;;  %v6198_v59 = vand.u32 4294901760, %v5454_v3 }
  0xd7   :  { %3581 = vmatpush3.msra.mxu0 %v6469_v26  ;;  %1744 = vmatprep.mubr.f32.mxu0 %v6470_v35  ;;  %v6196_v26 = vand.u32 4294901760, %v5436_v47  ;;  %v6197_v16 = vand.u32 4294901760, %v5466_v49  ;;  %6480 = vst [vmem:[#allocation14_spill] sm:$0xff] %v5535_v27  ;;  %6484 = vst [vmem:[#allocation26_spill] sm:$0xff] %v5576_v40 }
  0xd8   :  { %3608 = vmatpush3.msra.mxu1 %v6473_v52  ;;  %1746 = vmatmul.mubr.f32.vlgmr.msra.gmra.mxu0 %v6474_v12  ;;  %v5500_v52 = vand.u32 4294901760, %v93_v55 }
  0xd9   :  { %3609 = vmatprep.subr.mxu1 %v5001_v23  ;;  %3620 = vmatprep.subr.mxu0 %v5287_v58  ;;  %v5483_v23 = vsub.f32 %v95_v4, %v5429_v38  ;;  %v5498_v4 = vsub.f32 %v94_v43, %v5449_v24  ;;  %v5514_v43 = vsub.f32 %v5404_v63, %v6191_v42 }
  0xda   :  { %3610 = vmatpush3.msra.mxu1 %v4978_v61  ;;  %3621 = vmatpush3.msra.mxu0 %v5273_v21  ;;  %v2091_v61 = vand.u32 4294901760, %v5445_v29  ;;  %6478 = vst [vmem:[#allocation11_spill] sm:$0xff] %v5500_v52  ;;  %v108_v29 = vld [vmem:[%s6047_s1 + $0x2b0] sm:$0xff]  ;;  %v5529_v42 = vsub.f32 %v5418_v36, %v6195_v41  ;;  %v5543_v25 = vsub.f32 %v5436_v47, %v6196_v26  ;;  %v5545_v41 = vand.u32 4294901760, %v92_v22 }
  0xdb   :  { %6476 = vst [vmem:[#allocation9_spill] sm:$0xff] %v5483_v23  ;;  %3611 = vmatprep.subr.mxu1 %v6424_v53  ;;  %3622 = vmatprep.subr.mxu0 %v5306_v34  ;;  %6477 = vst [vmem:[#allocation12_spill] sm:$0xff] %v5498_v4  ;;  %v5559_v26 = vand.u32 4294901760, %v108_v29  ;;  %v2105_v37 = vand.u32 4294901760, %v5514_v43 }
  0xdc   :  { %3612 = vmatpush3.msra.mxu1 %v4989_v56  ;;  %3623 = vmatpush3.msra.mxu0 %v5295_v18  ;;  %6481 = vst [vmem:[#allocation19_spill] sm:$0xff] %v5545_v41  ;;  %v107_v56 = vld [vmem:[%s6047_s1 + $0x2a8] sm:$0xff]  ;;  %v5592_v53 = vsub.f32 %v92_v22, %v5545_v41  ;;  %v6490_v22 = vand.u32 4294901760, %v5506_v6 }
  0xdd   :  { %3613 = vmatprep.subr.mxu1 %v5054_v54  ;;  %3624 = vmatprep.subr.mxu0 %v5314_v39  ;;  %v5557_v54 = vsub.f32 %v93_v55, %v5500_v52  ;;  %6483 = vst [vmem:[#allocation27_spill] sm:$0xff] %v5559_v26  ;;  %v5574_v55 = vsub.f32 %v5454_v3, %v6198_v59  ;;  %v5584_v43 = vand.u32 4294901760, %v107_v56  ;;  %v2112_v59 = vand.u32 4294901760, %v5543_v25 }
  0xde   :  { %3614 = vmatpush3.msra.mxu1 %v5065_v7  ;;  %3625 = vmatpush3.msra.mxu0 %v5319_v33  ;;  %v90_v7 = vld [vmem:[%s6047_s1 + $0x220] sm:$0xff]  ;;  %v6489_v25 = vand.u32 4294901760, %v5386_v30  ;;  %v5637_v33 = vsub.f32 %v108_v29, %v5559_v26  ;;  %v88_v29 = vld [vmem:[%s6047_s1 + $0x210] sm:$0xff] }
  0xdf   :  { %3615 = vmatprep.subr.mxu1 %v5071_v2  ;;  %3626 = vmatprep.subr.mxu0 %v5351_v50  ;;  %6482 = vst [vmem:[#allocation20_spill] sm:$0xff] %v5557_v54  ;;  %v5569_v2 = vsub.f32 %v5466_v49, %v6197_v16  ;;  %6485 = vst [vmem:[#allocation31_spill] sm:$0xff] %v5584_v43  ;;  %v5587_v46 = vand.u32 4294901760, %v90_v7  ;;  %v89_v16 = vld [vmem:[%s6047_s1 + $0x218] sm:$0xff] }
  0xe0   :  { %3616 = vmatpush3.msra.mxu1 %v5073_v20  ;;  %1848 = vmatprep.mubr.f32.mxu1 %v6470_v35  ;;  %v106_v20 = vld [vmem:[%s6047_s1 + $0x2a0] sm:$0xff]  ;;  %v5600_v35 = vsub.f32 %v109_v17, %v5524_v8 }
  0xe1   :  { %3627 = vmatpush3.msra.mxu0 %v5333_v57  ;;  %1850 = vmatmul.mubr.f32.vlgmr.msra.gmra.mxu1 %v6474_v12  ;;  %6486 = vst [vmem:[#allocation25_spill] sm:$0xff] %v5587_v46  ;;  %v6487_v57 = vand.u32 4294901760, %v5483_v23  ;;  %v5616_v17 = vand.u32 4294901760, %v106_v20  ;;  %v2119_v30 = vand.u32 4294901760, %v5569_v2 }
  0xe2   :  { %3628 = vmatprep.subr.mxu0 %v5377_v60  ;;  %3655 = vmatprep.subr.mxu1 %v2084_v45  ;;  %6488 = vst [vmem:[#allocation17_spill] sm:$0xff] %v5600_v35  ;;  %v20_v45 = vld [vmem:[%s6046_s0 + $0x28] sm:$0xff]  ;;  %v6491_v60 = vand.u32 4294901760, %v5498_v4 }
  0xe3   :  { %v5597_v12 = vsub.f32 %v5483_v23, %v6487_v57  ;;  %3629 = vmatpush3.msra.mxu0 %v5363_v14  ;;  %3656 = vmatpush3.msra.mxu1 %v6489_v25  ;;  %v5614_v57 = vsub.f32 %v5506_v6, %v6490_v22  ;;  %v19_v14 = vld [vmem:[%s6046_s0 + $0x20] sm:$0xff]  ;;  %v2007_v25 = vand.u32 4294901760, %v5574_v55  ;;  %v5631_v22 = vsub.f32 %v91_v10, %v5576_v40 }
  0xe4   :  { %v5621_v50 = vsub.f32 %v5498_v4, %v6491_v60  ;;  %3630 = vmatprep.subr.mxu0 %v5395_v44  ;;  %3657 = vmatprep.subr.mxu1 %v2091_v61  ;;  %v105_v60 = vld [vmem:[%s6047_s1 + $0x298] sm:$0xff]  ;;  %v6492_v4 = vand.u32 4294901760, %v5427_v48  ;;  %v6493_v61 = vand.u32 4294901760, %v5535_v27  ;;  %v5648_v10 = vsub.f32 %v90_v7, %v5587_v46  ;;  %v104_v7 = vld [vmem:[%s6047_s1 + $0x290] sm:$0xff] }
  0xe5   :  { %3631 = vmatpush3.msra.mxu0 %v5397_v28  ;;  %v5650_v55 = vand.u32 4294901760, %v89_v16  ;;  %v5655_v44 = vand.u32 4294901760, %v20_v45  ;;  %v6495_v48 = vand.u32 4294901760, %v5459_v51  ;;  %v5666_v28 = vsub.f32 %v107_v56, %v5584_v43  ;;  %v103_v56 = vld [vmem:[%s6047_s1 + $0x288] sm:$0xff] }
  0xe6   :  { %3658 = vmatpush3.msra.mxu1 %v6492_v4  ;;  %v5645_v2 = vsub.f32 %v5535_v27, %v6493_v61  ;;  %3632 = vmatprep.subr.mxu0 %v5447_v15  ;;  %v2014_v4 = vand.u32 4294901760, %v5597_v12  ;;  %v5668_v27 = vand.u32 4294901760, %v19_v14  ;;  %v6497_v15 = vand.u32 4294901760, %v5474_v5 }
  0xe7   :  { %6494 = vst [vmem:[#allocation16_spill] sm:$0xff] %v5655_v44  ;;  %3659 = vmatprep.subr.mxu1 %v6495_v48  ;;  %3633 = vmatpush3.msra.mxu0 %v5429_v38  ;;  %v2126_v51 = vand.u32 4294901760, %v5614_v57  ;;  %v2021_v12 = vand.u32 4294901760, %v5621_v50  ;;  %v5675_v48 = vand.u32 4294901760, %v105_v60  ;;  %v6498_v61 = vand.u32 4294901760, %v5557_v54  ;;  %v87_v57 = vld [vmem:[%s6047_s1 + $0x208] sm:$0xff] }
  0xe8   :  { %6496 = vst [vmem:[#allocation33_spill] sm:$0xff] %v5668_v27  ;;  %3660 = vmatpush3.msra.mxu1 %v6497_v15  ;;  %3634 = vmatprep.subr.mxu0 %v5476_v0  ;;  %v5687_v5 = vand.u32 4294901760, %v88_v29  ;;  %v6499_v38 = vand.u32 4294901760, %v5488_v9  ;;  %v5701_v15 = vsub.f32 %v89_v16, %v5650_v55  ;;  %v5703_v0 = vand.u32 4294901760, %v104_v7  ;;  %v102_v16 = vld [vmem:[%s6047_s1 + $0x280] sm:$0xff] }
  0xe9   :  { %v5680_v23 = vsub.f32 %v5557_v54, %v6498_v61  ;;  %3661 = vmatprep.subr.mxu1 %v2105_v37  ;;  %v5694_v61 = vsub.f32 %v106_v20, %v5616_v17  ;;  %3635 = vmatpush3.msra.mxu0 %v5449_v24  ;;  %v2133_v37 = vand.u32 4294901760, %v5645_v2  ;;  %v5706_v50 = vsub.f32 %v20_v45, %v5655_v44  ;;  %v86_v9 = vld [vmem:[%s6047_s1 + $0x200] sm:$0xff] }
  0xea   :  { %3662 = vmatpush3.msra.mxu1 %v6499_v38  ;;  %6500 = vst [vmem:[#allocation32_spill] sm:$0xff] %v5703_v0  ;;  %3636 = vmatprep.subr.mxu0 %v5524_v8  ;;  %v6501_v20 = vand.u32 4294901760, %v5600_v35  ;;  %v5712_v54 = vand.u32 4294901760, %v103_v56  ;;  %v5722_v45 = vsub.f32 %v19_v14, %v5668_v27  ;;  %v5732_v8 = vsub.f32 %v105_v60, %v5675_v48 }
  0xeb   :  { %3663 = vmatprep.subr.mxu1 %v2112_v59  ;;  %3637 = vmatpush3.msra.mxu0 %v5500_v52  ;;  %v6502_v59 = vand.u32 4294901760, %v5529_v42  ;;  %v2028_v2 = vand.u32 4294901760, %v5680_v23  ;;  %v6503_v14 = vand.u32 4294901760, %v5637_v33  ;;  %v5739_v52 = vsub.f32 %v88_v29, %v5687_v5 }
  0xec   :  { %v2139_v24 = vsub.f32 %v5600_v35, %v6501_v20  ;;  %v5728_v20 = vand.u32 4294901760, %v87_v57  ;;  %3638 = vmatprep.subr.mxu0 %v5559_v26  ;;  %v6504_v42 = vand.u32 4294901760, %v5592_v53  ;;  %v5746_v60 = vand.u32 4294901760, %v102_v16  ;;  %2192 = vmatprep.mubr.f32.mxu1 %v5655_v44  ;;  %v6538_v44 = vld [vmem:[#allocation31_spill] sm:$0xff] }
  0xed   :  { %3664 = vmatpush3.msra.mxu1 %v6502_v59  ;;  %v2146_v35 = vsub.f32 %v5637_v33, %v6503_v14  ;;  %3639 = vmatpush3.msra.mxu0 %v5545_v41  ;;  %v5748_v38 = vand.u32 4294901760, %v86_v9  ;;  %v5752_v14 = vsub.f32 %v104_v7, %v5703_v0  ;;  %v6506_v7 = vand.u32 4294901760, %v5631_v22 }
  0xee   :  { %3665 = vmatprep.subr.mxu1 %v2119_v30  ;;  %v2034_v23 = vsub.f32 %v5592_v53, %v6504_v42  ;;  %3640 = vmatprep.subr.mxu0 %v5584_v43  ;;  %v2140_v29 = vand.u32 4294901760, %v2139_v24  ;;  %v6505_v42 = vand.u32 4294901760, %v5666_v28  ;;  %v5762_v30 = vsub.f32 %v87_v57, %v5728_v20 }
  0xef   :  { %3666 = vmatpush3.msra.mxu1 %v2007_v25  ;;  %3641 = vmatpush3.msra.mxu0 %v5576_v40  ;;  %v2041_v43 = vsub.f32 %v5631_v22, %v6506_v7  ;;  %v6507_v41 = vand.u32 4294901760, %v5694_v61  ;;  %v5778_v7 = vsub.f32 %v86_v9, %v5748_v38  ;;  %v6512_v9 = vand.u32 4294901760, %v5722_v45 }
  0xf0   :  { %3667 = vmatprep.subr.mxu1 %v2126_v51  ;;  %v2153_v59 = vsub.f32 %v5666_v28, %v6505_v42  ;;  %v5769_v51 = vsub.f32 %v103_v56, %v5712_v54  ;;  %3642 = vmatprep.subr.mxu0 %v5616_v17  ;;  %v2147_v42 = vand.u32 4294901760, %v2146_v35  ;;  %v2035_v25 = vand.u32 4294901760, %v2034_v23 }
  0xf1   :  { %3668 = vmatpush3.msra.mxu1 %v2014_v4  ;;  %v2160_v4 = vsub.f32 %v5694_v61, %v6507_v41  ;;  %3643 = vmatpush3.msra.mxu0 %v5587_v46  ;;  %6508 = vst [vmem:[#allocation29_spill] sm:$0xff] %v5778_v7  ;;  %v6509_v56 = vand.u32 4294901760, %v5706_v50  ;;  %v5785_v35 = vsub.f32 %v102_v16, %v5746_v60  ;;  %v6511_v23 = vand.u32 4294901760, %v5648_v10 }
  0xf2   :  { %3669 = vmatprep.subr.mxu1 %v2133_v37  ;;  %3644 = vmatprep.subr.mxu0 %v5675_v48  ;;  %v2154_v41 = vand.u32 4294901760, %v2153_v59  ;;  %v1960_v57 = vsub.f32 %v5722_v45, %v6512_v9  ;;  %v6513_v16 = vand.u32 4294901760, %v5732_v8  ;;  %v6243_v46 = vand.u32 4294901760, %v5778_v7 }
  0xf3   :  { %3670 = vmatpush3.msra.mxu1 %v2021_v12  ;;  %v1954_v24 = vsub.f32 %v5706_v50, %v6509_v56  ;;  %6510 = vst [vmem:[#allocation28_spill] sm:$0xff] %v5785_v35  ;;  %v2048_v12 = vsub.f32 %v5648_v10, %v6511_v23  ;;  %3645 = vmatpush3.msra.mxu0 %v5650_v55  ;;  %v2042_v56 = vand.u32 4294901760, %v2041_v43  ;;  %v6514_v23 = vand.u32 4294901760, %v5701_v15 }
  0xf4   :  { %3671 = vmatprep.subr.mxu1 %v2140_v29  ;;  %v2167_v37 = vsub.f32 %v5732_v8, %v6513_v16  ;;  %3646 = vmatprep.subr.mxu0 %v5703_v0  ;;  %v2161_v29 = vand.u32 4294901760, %v2160_v4  ;;  %v6244_v59 = vand.u32 4294901760, %v5785_v35  ;;  %v1961_v4 = vand.u32 4294901760, %v1960_v57 }
  0xf5   :  { %3672 = vmatpush3.msra.mxu1 %v2028_v2  ;;  %v2055_v9 = vsub.f32 %v5701_v15, %v6514_v23  ;;  %3647 = vmatpush3.msra.mxu0 %v5687_v5  ;;  %v1955_v43 = vand.u32 4294901760, %v1954_v24  ;;  %v6515_v2 = vand.u32 4294901760, %v5752_v14  ;;  %v6516_v0 = vand.u32 4294901760, %v5739_v52 }
  0xf6   :  { %3673 = vmatprep.subr.mxu1 %v2147_v42  ;;  %3648 = vmatprep.subr.mxu0 %v5712_v54  ;;  %v2049_v42 = vand.u32 4294901760, %v2048_v12  ;;  %v6517_v24 = vand.u32 4294901760, %v5769_v51  ;;  %v6518_v57 = vand.u32 4294901760, %v5762_v30 }
  0xf7   :  { %3674 = vmatpush3.msra.mxu1 %v2035_v25  ;;  %v2174_v16 = vsub.f32 %v5752_v14, %v6515_v2  ;;  %v2062_v23 = vsub.f32 %v5739_v52, %v6516_v0  ;;  %3649 = vmatpush3.msra.mxu0 %v5728_v20  ;;  %v2168_v25 = vand.u32 4294901760, %v2167_v37  ;;  %v2188_v37 = vsub.f32 %v5785_v35, %v6244_v59  ;;  %v6536_v59 = vld [vmem:[#allocation11_spill] sm:$0xff] }
  0xf8   :  { %3675 = vmatprep.subr.mxu1 %v2154_v41  ;;  %v2181_v2 = vsub.f32 %v5769_v51, %v6517_v24  ;;  %3650 = vmatprep.subr.mxu0 %v5746_v60  ;;  %v2056_v41 = vand.u32 4294901760, %v2055_v9  ;;  %v2069_v12 = vsub.f32 %v5762_v30, %v6518_v57  ;;  %v6522_v24 = vld [vmem:[#allocation21_spill] sm:$0xff] }
  0xf9   :  { %3676 = vmatpush3.msra.mxu1 %v2042_v56  ;;  %3651 = vmatpush3.msra.mxu0 %v5748_v38  ;;  %v2175_v0 = vand.u32 4294901760, %v2174_v16  ;;  %v2063_v56 = vand.u32 4294901760, %v2062_v23  ;;  %v2189_v16 = vand.u32 4294901760, %v2188_v37  ;;  %v6520_v23 = vld [vmem:[#allocation5_spill] sm:$0xff]  ;;  %v6528_v37 = vld [vmem:[#allocation15_spill] sm:$0xff] }
  0xfa   :  { %3677 = vmatprep.subr.mxu1 %v2161_v29  ;;  %1956 = vmatprep.mubr.f32.mxu0 %v1955_v43  ;;  %v2076_v29 = vsub.f32 %v5778_v7, %v6243_v46  ;;  %v2182_v9 = vand.u32 4294901760, %v2181_v2  ;;  %v2070_v43 = vand.u32 4294901760, %v2069_v12  ;;  %v6523_v2 = vld [vmem:[#allocation12_spill] sm:$0xff]  ;;  %v6525_v57 = vld [vmem:[#allocation17_spill] sm:$0xff]  ;;  %v6526_v12 = vld [vmem:[#allocation6_spill] sm:$0xff] }
  0xfb   :  { %3678 = vmatpush3.msra.mxu1 %v2049_v42  ;;  %1962 = vmatmul.mubr.f32.vlgmr.msra.gmra.mxu0 %v1961_v4  ;;  %v6519_v4 = vld [vmem:[#allocation9_spill] sm:$0xff] }
  0xfc   :  { %3679 = vmatprep.subr.mxu1 %v2168_v25  ;;  %3690 = vmatprep.subr.mxu0 %v5325_v1  ;;  %v2077_v42 = vand.u32 4294901760, %v2076_v29  ;;  %v6521_v25 = vld [vmem:[#allocation14_spill] sm:$0xff]  ;;  %v6530_v29 = vld [vmem:[#allocation23_spill] sm:$0xff]  ;;  %v6535_v46 = vld [vmem:[#allocation13_spill] sm:$0xff] }
  0xfd   :  { %3680 = vmatpush3.msra.mxu1 %v2056_v41  ;;  %3691 = vmatpush3.msra.mxu0 %v5304_v11  ;;  %v6524_v41 = vld [vmem:[#allocation18_spill] sm:$0xff] }
  0xfe   :  { %3681 = vmatprep.subr.mxu1 %v2175_v0  ;;  %3692 = vmatprep.subr.mxu0 %v5346_v19  ;;  %v6527_v0 = vld [vmem:[#allocation20_spill] sm:$0xff] }
  0xff   :  { %3682 = vmatpush3.msra.mxu1 %v2063_v56  ;;  %3693 = vmatpush3.msra.mxu0 %v5331_v32  ;;  %v6529_v56 = vld [vmem:[#allocation22_spill] sm:$0xff] }
 0x100   :  { %3683 = vmatprep.subr.mxu1 %v2182_v9  ;;  %3694 = vmatprep.subr.mxu0 %v5354_v62  ;;  %v6531_v9 = vld [vmem:[#allocation8_spill] sm:$0xff] }
 0x101   :  { %3684 = vmatpush3.msra.mxu1 %v2070_v43  ;;  %3695 = vmatpush3.msra.mxu0 %v5360_v31  ;;  %v6532_v43 = vld [vmem:[#allocation7_spill] sm:$0xff] }
 0x102   :  { %3685 = vmatprep.subr.mxu1 %v2189_v16  ;;  %3696 = vmatprep.subr.mxu0 %v5404_v63  ;;  %v6533_v16 = vld [vmem:[#allocation24_spill] sm:$0xff] }
 0x103   :  { %3686 = vmatpush3.msra.mxu1 %v2077_v42  ;;  %3697 = vmatpush3.msra.mxu0 %v5375_v13  ;;  %v6534_v42 = vld [vmem:[#allocation10_spill] sm:$0xff] }
 0x104   :  { %2194 = vmatmul.mubr.f32.vlgmr.msra.gmra.mxu1 %v5668_v27  ;;  %3698 = vmatprep.subr.mxu0 %v5436_v47  ;;  %v6537_v27 = vld [vmem:[#allocation19_spill] sm:$0xff] }
 0x105   :  { %3725 = vmatprep.subr.mxu1 %v5287_v58  ;;  %3699 = vmatpush3.msra.mxu0 %v5418_v36 }
 0x106   :  { %3726 = vmatpush3.msra.mxu1 %v5273_v21  ;;  %3700 = vmatprep.subr.mxu0 %v5466_v49 }
 0x107   :  { %3727 = vmatprep.subr.mxu1 %v5306_v34  ;;  %3701 = vmatpush3.msra.mxu0 %v5454_v3 }
 0x108   :  { %3728 = vmatpush3.msra.mxu1 %v5295_v18  ;;  %3702 = vmatprep.subr.mxu0 %v5506_v6 }
 0x109   :  { %3729 = vmatprep.subr.mxu1 %v5314_v39  ;;  %3703 = vmatpush3.msra.mxu0 %v6519_v4 }
 0x10a   :  { %3730 = vmatpush3.msra.mxu1 %v6520_v23  ;;  %3704 = vmatprep.subr.mxu0 %v6521_v25 }
 0x10b   :  { %3731 = vmatprep.subr.mxu1 %v6522_v24  ;;  %3705 = vmatpush3.msra.mxu0 %v6523_v2 }
 0x10c   :  { %3732 = vmatpush3.msra.mxu1 %v6524_v41  ;;  %3706 = vmatprep.subr.mxu0 %v6525_v57 }
 0x10d   :  { %3733 = vmatprep.subr.mxu1 %v6526_v12  ;;  %3707 = vmatpush3.msra.mxu0 %v6527_v0 }
 0x10e   :  { %3734 = vmatpush3.msra.mxu1 %v6528_v37  ;;  %3708 = vmatprep.subr.mxu0 %v5637_v33 }
 0x10f   :  { %3735 = vmatprep.subr.mxu1 %v6529_v56  ;;  %3709 = vmatpush3.msra.mxu0 %v5592_v53 }
 0x110   :  { %3736 = vmatpush3.msra.mxu1 %v6530_v29  ;;  %3710 = vmatprep.subr.mxu0 %v5666_v28 }
 0x111   :  { %3737 = vmatprep.subr.mxu1 %v6531_v9  ;;  %3711 = vmatpush3.msra.mxu0 %v5631_v22 }
 0x112   :  { %3738 = vmatpush3.msra.mxu1 %v6532_v43  ;;  %3712 = vmatprep.subr.mxu0 %v5694_v61 }
 0x113   :  { %3739 = vmatprep.subr.mxu1 %v6533_v16  ;;  %3713 = vmatpush3.msra.mxu0 %v5648_v10 }
 0x114   :  { %3740 = vmatpush3.msra.mxu1 %v6534_v42  ;;  %3714 = vmatprep.subr.mxu0 %v5732_v8 }
 0x115   :  { %3741 = vmatprep.subr.mxu1 %v6535_v46  ;;  %3715 = vmatpush3.msra.mxu0 %v5701_v15 }
 0x116   :  { %3742 = vmatpush3.msra.mxu1 %v6536_v59  ;;  %3716 = vmatprep.subr.mxu0 %v5752_v14 }
 0x117   :  { %3743 = vmatprep.subr.mxu1 %v5559_v26  ;;  %3717 = vmatpush3.msra.mxu0 %v5739_v52  ;;  %v6539_v26 = vld [vmem:[#allocation25_spill] sm:$0xff] }
 0x118   :  { %3744 = vmatpush3.msra.mxu1 %v6537_v27  ;;  %3718 = vmatprep.subr.mxu0 %v5769_v51 }
 0x119   :  { %3745 = vmatprep.subr.mxu1 %v6538_v44  ;;  %3719 = vmatpush3.msra.mxu0 %v5762_v30  ;;  %v6540_v44 = vand.u32 4294901760, %v5325_v1  ;;  %v6545_v1 = vand.u32 4294901760, %v5354_v62  ;;  %v6550_v62 = vand.u32 4294901760, %v5722_v45 }
 0x11a   :  { %3746 = vmatpush3.msra.mxu1 %v5576_v40  ;;  %3720 = vmatprep.subr.mxu0 %v5785_v35  ;;  %v6541_v40 = vand.u32 4294901760, %v5304_v11  ;;  %v6542_v35 = vld [vmem:[#allocation32_spill] sm:$0xff]  ;;  %v6546_v11 = vand.u32 4294901760, %v5360_v31  ;;  %v6552_v31 = vand.u32 4294901760, %v5418_v36 }
 0x11b   :  { %3747 = vmatprep.subr.mxu1 %v5616_v17  ;;  %3721 = vmatpush3.msra.mxu0 %v5778_v7  ;;  %v6543_v7 = vand.u32 4294901760, %v5346_v19  ;;  %v6547_v19 = vand.u32 4294901760, %v5404_v63  ;;  %v6553_v63 = vand.u32 4294901760, %v5466_v49  ;;  %v6562_v49 = vand.u32 4294901760, %v5592_v53  ;;  %v118_v53 = vld [vmem:[%s6047_s1 + $0x300] sm:$0xff] }
 0x11c   :  { %2329 = vmatprep.mubr.f32.mxu0 %v5706_v50  ;;  %3748 = vmatpush3.msra.mxu1 %v6539_v26  ;;  %v6544_v26 = vand.u32 4294901760, %v5331_v32  ;;  %v6548_v32 = vand.u32 4294901760, %v5706_v50 }
 0x11d   :  { %2332 = vmatmul.mubr.f32.vlgmr.msra.gmra.mxu0 %v5722_v45  ;;  %3749 = vmatprep.subr.mxu1 %v5675_v48  ;;  %v6563_v45 = vand.u32 4294901760, %v5666_v28  ;;  %v6566_v28 = vand.u32 4294901760, %v5648_v10  ;;  %v6569_v10 = vand.u32 4294901760, %v5752_v14  ;;  %v6574_v14 = vand.u32 4294901760, %v5762_v30 }
 0x11e   :  { %3760 = vmatprep.subr.mxu0 %v6540_v44  ;;  %3750 = vmatpush3.msra.mxu1 %v5650_v55  ;;  %v6549_v44 = vand.u32 4294901760, %v5375_v13  ;;  %v6554_v13 = vand.u32 4294901760, %v5454_v3  ;;  %v6561_v3 = vand.u32 4294901760, %v5637_v33  ;;  %v6564_v33 = vand.u32 4294901760, %v5631_v22 }
 0x11f   :  { %3761 = vmatpush3.msra.mxu0 %v6541_v40  ;;  %3751 = vmatprep.subr.mxu1 %v6542_v35  ;;  %v119_v40 = vld [vmem:[%s6047_s1 + $0x308] sm:$0xff] }
 0x120   :  { %3762 = vmatprep.subr.mxu0 %v6543_v7  ;;  %3752 = vmatpush3.msra.mxu1 %v5687_v5  ;;  %v6565_v7 = vand.u32 4294901760, %v5694_v61  ;;  %v6568_v61 = vand.u32 4294901760, %v5701_v15  ;;  %v6573_v15 = vld [vmem:[#allocation31_spill] sm:$0xff] }
 0x121   :  { %3763 = vmatpush3.msra.mxu0 %v6544_v26  ;;  %3753 = vmatprep.subr.mxu1 %v5712_v54  ;;  %v6551_v26 = vand.u32 4294901760, %v5436_v47  ;;  %v6555_v47 = vand.u32 4294901760, %v5506_v6  ;;  %v6560_v6 = vand.u32 4294901760, %v6527_v0 }
 0x122   :  { %3764 = vmatprep.subr.mxu0 %v6545_v1  ;;  %3754 = vmatpush3.msra.mxu1 %v5728_v20 }
 0x123   :  { %3765 = vmatpush3.msra.mxu0 %v6546_v11  ;;  %3755 = vmatprep.subr.mxu1 %v5746_v60 }
 0x124   :  { %3766 = vmatprep.subr.mxu0 %v6547_v19  ;;  %3756 = vmatpush3.msra.mxu1 %v5748_v38 }
 0x125   :  { %2436 = vmatprep.mubr.f32.mxu1 %v6548_v32  ;;  %3767 = vmatpush3.msra.mxu0 %v6549_v44 }
 0x126   :  { %2440 = vmatmul.mubr.f32.vlgmr.msra.gmra.mxu1 %v6550_v62  ;;  %3768 = vmatprep.subr.mxu0 %v6551_v26 }
 0x127   :  { %3795 = vmatprep.subr.mxu1 %v5287_v58  ;;  %3769 = vmatpush3.msra.mxu0 %v6552_v31  ;;  %v6556_v58 = vand.u32 4294901760, %v6519_v4  ;;  %v5974_v4 = vand.u32 4294901760, %v119_v40 }
 0x128   :  { %3796 = vmatpush3.msra.mxu1 %v5273_v21  ;;  %3770 = vmatprep.subr.mxu0 %v6553_v63  ;;  %v21_v21 = vld [vmem:[%s6046_s0 + $0x30] sm:$0xff]  ;;  %v3199_v63 = vld [vmem:[%s6048_s2] ss:$0 sm:$0xff]  ;;  %s3921_s2 = smov [#allocation2]  }
 0x129   :  { %3797 = vmatprep.subr.mxu1 %v5306_v34  ;;  %3771 = vmatpush3.msra.mxu0 %v6554_v13  ;;  %v6557_v34 = vand.u32 4294901760, %v6521_v25  ;;  %v129_v36 = vsel %vm127_vm0, %v21_v21, 0  ;;  %v5985_v25 = vand.u32 4294901760, %v118_v53  ;;  %s3191_s6 = sshll.u32 %s3921_s2, 4  ;;  %s3192_s6 = int_to_ptr.vmem [resolvable:$true] %s3191_s6 }
 0x12a   :  { %3798 = vmatpush3.msra.mxu1 %v5295_v18  ;;  %3772 = vmatprep.subr.mxu0 %v6555_v47  ;;  %v6558_v18 = vand.u32 4294901760, %v6523_v2  ;;  %v5960_v50 = vand.u32 4294901760, %v129_v36  ;;  %v2824_v2 = vsub.f32 %v119_v40, %v5974_v4  ;;  %s3897_s7 = scalar_lea.vmem %s3192_s6, 128  ;;  %p3902_p1 = scmp.lt.s32.totalorder %s3192_s6, %s3192_s6 }
 0x12b   :  { %3799 = vmatprep.subr.mxu1 %v5314_v39  ;;  %3773 = vmatpush3.msra.mxu0 %v6556_v58  ;;  %v6559_v39 = vand.u32 4294901760, %v6525_v57  ;;  %v6575_v57 = vld [vmem:[#allocation26_spill] sm:$0xff]  ;;  %p3898_p0 = scmp.ne.s32.totalorder %s3192_s6, %s3897_s7  ;;  %p3903_p2 = scmp.lt.s32.totalorder %s3897_s7, %s3897_s7 }
 0x12c   :  { %3800 = vmatpush3.msra.mxu1 %v6520_v23  ;;  %3774 = vmatprep.subr.mxu0 %v6557_v34  ;;  %v5980_v22 = vsub.f32 %v129_v36, %v5960_v50  ;;  %v6567_v23 = vand.u32 4294901760, %v5732_v8 }
 0x12d   :  { %3801 = vmatprep.subr.mxu1 %v6522_v24  ;;  %3775 = vmatpush3.msra.mxu0 %v6558_v18  ;;  %v6570_v24 = vld [vmem:[#allocation27_spill] sm:$0xff]  ;;  %p3904_p3 = por %p3903_p2, %p3902_p1 }
 0x12e   :  { %3802 = vmatpush3.msra.mxu1 %v6524_v41  ;;  %3776 = vmatprep.subr.mxu0 %v6559_v39  ;;  %v6571_v41 = vand.u32 4294901760, %v5739_v52  ;;  %v2786_v8 = vand.u32 4294901760, %v5980_v22  ;;  %v6578_v52 = vld [vmem:[#allocation29_spill] sm:$0xff] }
 0x12f   :  { %3803 = vmatprep.subr.mxu1 %v6526_v12  ;;  %3777 = vmatpush3.msra.mxu0 %v6560_v6  ;;  %v6576_v12 = vld [vmem:[#allocation28_spill] sm:$0xff]  ;;  %p3905_p4 = pnand %p3904_p3, %p3898_p0 }
 0x130   :  { %3804 = vmatpush3.msra.mxu1 %v6528_v37  ;;  %3778 = vmatprep.subr.mxu0 %v6561_v3  ;;  %v6577_v0 = vand.u32 4294901760, %v6576_v12  ;;  %v6579_v37 = vand.u32 4294901760, %v6578_v52 }
 0x131   :  { %3805 = vmatprep.subr.mxu1 %v6529_v56  ;;  %3779 = vmatpush3.msra.mxu0 %v6562_v49  ;;  %v2787_v56 = vsub.f32 %v5980_v22, %v2786_v8 }
 0x132   :  { %3806 = vmatpush3.msra.mxu1 %v6530_v29  ;;  %3780 = vmatprep.subr.mxu0 %v6563_v45  ;;  %v6581_v29 = vld [vmem:[#allocation25_spill] sm:$0xff] }
 0x133   :  { %3807 = vmatprep.subr.mxu1 %v6531_v9  ;;  %3781 = vmatpush3.msra.mxu0 %v6564_v33  ;;  %v6582_v9 = vld [vmem:[#allocation33_spill] sm:$0xff] }
 0x134   :  { %3808 = vmatpush3.msra.mxu1 %v6532_v43  ;;  %3782 = vmatprep.subr.mxu0 %v6565_v7 }
 0x135   :  { %3809 = vmatprep.subr.mxu1 %v6533_v16  ;;  %3783 = vmatpush3.msra.mxu0 %v6566_v28  ;;  %v2788_v16 = vand.u32 4294901760, %v2787_v56 }
 0x136   :  { %3810 = vmatpush3.msra.mxu1 %v6534_v42  ;;  %3784 = vmatprep.subr.mxu0 %v6567_v23 }
 0x137   :  { %3811 = vmatprep.subr.mxu1 %v6535_v46  ;;  %3785 = vmatpush3.msra.mxu0 %v6568_v61  ;;  %v6572_v46 = vand.u32 4294901760, %v5769_v51  ;;  %v6580_v51 = vld [vmem:[#allocation16_spill] sm:$0xff] }
 0x138   :  { %3812 = vmatpush3.msra.mxu1 %v6536_v59  ;;  %3786 = vmatprep.subr.mxu0 %v6569_v10  ;;  %v2831_v59 = vsub.f32 %v118_v53, %v5985_v25 }
 0x139   :  { %3813 = vmatprep.subr.mxu1 %v6570_v24  ;;  %3787 = vmatpush3.msra.mxu0 %v6571_v41 }
 0x13a   :  { %3814 = vmatpush3.msra.mxu1 %v6537_v27  ;;  %3788 = vmatprep.subr.mxu0 %v6572_v46  ;;  %v2825_v27 = vand.u32 4294901760, %v2824_v2  ;;  %v2832_v30 = vand.u32 4294901760, %v2831_v59 }
 0x13b   :  { %3815 = vmatprep.subr.mxu1 %v6573_v15  ;;  %3789 = vmatpush3.msra.mxu0 %v6574_v14 }
 0x13c   :  { %3816 = vmatpush3.msra.mxu1 %v6575_v57  ;;  %3790 = vmatprep.subr.mxu0 %v6577_v0  ;;  %v2826_v43 = vsub.f32 %v2824_v2, %v2825_v27  ;;  %v2833_v42 = vsub.f32 %v2831_v59, %v2832_v30 }
 0x13d   :  { %3817 = vmatprep.subr.mxu1 %v5616_v17  ;;  %3791 = vmatpush3.msra.mxu0 %v6579_v37  ;;  %v3919_v17 = vmov 0.0  }
 0x13e   :  { %2606 = vmatprep.mubr.f32.mxu0 %v6580_v51  ;;  %3818 = vmatpush3.msra.mxu1 %v6581_v29 }
 0x13f   :  { %2608 = vmatmul.mubr.f32.vlgmr.msra.gmra.mxu0 %v6582_v9  ;;  %3819 = vmatprep.subr.mxu1 %v5675_v48  ;;  %v2834_v48 = vand.u32 4294901760, %v2833_v42 }
 0x140   :  { %2710 = vmatprep.mubr.f32.mxu1 %v6580_v51  ;;  %3820 = vmatpush3.msra.mxu1 %v5650_v55  ;;  %v2827_v55 = vand.u32 4294901760, %v2826_v43 }
 0x141   :  { %3848 = vmatprep.subr.mxu0 %v3919_v17  ;;  %3821 = vmatprep.subr.mxu1 %v6542_v35 }
 0x142   :  { %3849 = vmatpush3.msra.mxu0 %v5974_v4  ;;  %3822 = vmatpush3.msra.mxu1 %v5687_v5 }
 0x143   :  { %3850 = vmatprep.subr.mxu0 %v3919_v17  ;;  %3823 = vmatprep.subr.mxu1 %v5712_v54  ;;  %v3232_v54 = vpop.f32.mrf.mxu0 }
 0x144   :  { %3851 = vmatpush3.msra.mxu0 %v5985_v25  ;;  %3824 = vmatpush3.msra.mxu1 %v5728_v20 }
 0x145   :  { %3852 = vmatprep.mubr.msk.f32.mxu0 %vm3920_vm1, %v3919_v17  ;;  %3825 = vmatprep.subr.mxu1 %v5746_v60  ;;  %v3233_v5 = vpop.f32.mrf.mxu0 }
 0x146   :  { %3853 = vmatmul.mubr.f32.vlgmr.msra.gmra.mxu0 %v2788_v16  ;;  %3826 = vmatpush3.msra.mxu1 %v5748_v38  ;;  %v3267_v38 = vpop.f32.mrf.mxu1  ;;  %v3234_v31 = vadd.f32 %v3233_v5, %v3232_v54 }
 0x147   :  { %3862 = vmatprep.subr.mxu0 %v3919_v17  ;;  %2712 = vmatmul.mubr.f32.vlgmr.msra.gmra.mxu1 %v6582_v9  ;;  %v3302_v20 = vpop.f32.mrf.mxu0 }
 0x148   :  { %3855 = vmatprep.subr.mxu1 %v3919_v17  ;;  %3859 = vmatprep.mubr.msk.f32.mxu1 %vm3920_vm1, %v3919_v17  ;;  %v3268_v60 = vpop.f32.mrf.mxu1  ;;  %v240_v21 = vadd.f32 %v3234_v31, %v3199_v63 }
 0x149   :  { %3856 = vmatpush3.msra.mxu1 %v2827_v55  ;;  %3863 = vmatpush3.msra.mxu0 %v2824_v2  ;;  %v3303_v35 = vpop.f32.mrf.mxu0  ;;  %v3269_v34 = vadd.f32 %v3268_v60, %v3267_v38 }
 0x14a   :  { %3857 = vmatprep.subr.mxu1 %v3919_v17  ;;  %3864 = vmatprep.subr.mxu0 %v3919_v17  ;;  %v3337_v1 = vpop.f32.mrf.mxu1  ;;  %v3304_v39 = vadd.f32 %v3303_v35, %v3302_v20 }
 0x14b   :  { %3858 = vmatpush3.msra.mxu1 %v2834_v48  ;;  %3865 = vmatpush3.msra.mxu0 %v2831_v59  ;;  %v3372_v11 = vpop.f32.mrf.mxu0  ;;  %v472_v3 = vadd.f32 %v3269_v34, %v240_v21 }
 0x14c   :  { %3860 = vmatmul.mubr.f32.vlgmr.msra.gmra.mxu1 %v5960_v50  ;;  %3869 = vmatprep.subr.mxu1 %v3919_v17  ;;  %v3338_v19 = vpop.f32.mrf.mxu1 }
 0x14d   :  { %3866 = vmatprep.mubr.msk.f32.mxu0 %vm3920_vm1, %v3919_v17  ;;  %3870 = vmatpush3.msra.mxu1 %v5974_v4  ;;  %v3373_v32 = vpop.f32.mrf.mxu0  ;;  %v3339_v49 = vadd.f32 %v3338_v19, %v3337_v1 }
 0x14e   :  { %3867 = vmatmul.mubr.f32.vlgmr.msra.gmra.mxu0 %v5980_v22  ;;  %3871 = vmatprep.subr.mxu1 %v3919_v17  ;;  %v3407_v44 = vpop.f32.mrf.mxu1  ;;  %v3374_v45 = vadd.f32 %v3373_v32, %v3372_v11 }
 0x14f   :  { %3876 = vmatprep.subr.mxu0 %v3919_v17  ;;  %3872 = vmatpush3.msra.mxu1 %v5985_v25 }
 0x150   :  { %3873 = vmatprep.mubr.msk.f32.mxu1 %vm3920_vm1, %v3919_v17  ;;  %3877 = vmatpush3.msra.mxu0 %v2825_v27  ;;  %v3408_v26 = vpop.f32.mrf.mxu1 }
 0x151   :  { %3874 = vmatmul.mubr.f32.vlgmr.msra.gmra.mxu1 %v2786_v8  ;;  %3878 = vmatprep.subr.mxu0 %v3919_v17  ;;  %v3409_v7 = vadd.f32 %v3408_v26, %v3407_v44 }
 0x152   :  { %3883 = vmatprep.subr.mxu1 %v3919_v17  ;;  %3879 = vmatpush3.msra.mxu0 %v2832_v30 }
 0x153   :  { %3880 = vmatprep.mubr.msk.f32.mxu0 %vm3920_vm1, %v3919_v17  ;;  %3884 = vmatpush3.msra.mxu1 %v5974_v4 }
 0x154   :  { %3881 = vmatmul.mubr.f32.vlgmr.msra.gmra.mxu0 %v5960_v50  ;;  %3885 = vmatprep.subr.mxu1 %v3919_v17  ;;  %v3442_v62 = vpop.f32.mrf.mxu0 }
 0x155   :  { %3887 = vmatprep.mubr.msk.f32.mxu1 %vm3920_vm1, %v3919_v17  ;;  %3886 = vmatpush3.msra.mxu1 %v5985_v25 }
 0x156   :  { %3888 = vmatmul.mubr.f32.vlgmr.msra.gmra.mxu1 %v5960_v50  ;;  %v3443_v13 = vpop.f32.mrf.mxu0  ;;  %v610_v50 = vadd.f32 %v3304_v39, %v472_v3 }
 0x157   :  { %v3444_v23 = vadd.f32 %v3443_v13, %v3442_v62 }
 0x158   :  { %v718_v53 = vadd.f32 %v3339_v49, %v610_v50 }
 0x15a   :  { %v886_v22 = vadd.f32 %v3374_v45, %v718_v53 }
 0x15c   :  { %v990_v61 = vadd.f32 %v3409_v7, %v886_v22 }
 0x15e   :  { %v3477_v47 = vpop.f32.mrf.mxu1  ;;  %v1102_v2 = vadd.f32 %v3444_v23, %v990_v61 }
 0x160   :  { %v3478_v18 = vpop.f32.mrf.mxu1 }
 0x161   :  { %v3479_v10 = vadd.f32 %v3478_v18, %v3477_v47 }
 0x163   :  { %v1334_v15 = vadd.f32 %v3479_v10, %v1102_v2 }
 0x176   :  { %v3512_v58 = vpop.f32.mrf.mxu0 }
 0x178   :  { %v3513_v36 = vpop.f32.mrf.mxu0 }
 0x179   :  { %v3514_v41 = vadd.f32 %v3513_v36, %v3512_v58 }
 0x17b   :  { %v1472_v57 = vadd.f32 %v3514_v41, %v1334_v15 }
 0x17f   :  { %v3547_v6 = vpop.f32.mrf.mxu1 }
 0x181   :  { %v3548_v33 = vpop.f32.mrf.mxu1 }
 0x182   :  { %v3549_v59 = vadd.f32 %v3548_v33, %v3547_v6 }
 0x184   :  { %v1580_v27 = vadd.f32 %v3549_v59, %v1472_v57 }
 0x198   :  { %v3582_v40 = vpop.f32.mrf.mxu0 }
 0x19a   :  { %v3583_v4 = vpop.f32.mrf.mxu0 }
 0x19b   :  { %v3584_v12 = vadd.f32 %v3583_v4, %v3582_v40 }
 0x19d   :  { %v1748_v56 = vadd.f32 %v3584_v12, %v1580_v27 }
 0x1a1   :  { %v3617_v28 = vpop.f32.mrf.mxu1 }
 0x1a3   :  { %v3618_v24 = vpop.f32.mrf.mxu1 }
 0x1a4   :  { %v3619_v52 = vadd.f32 %v3618_v24, %v3617_v28 }
 0x1a6   :  { %v1852_v30 = vadd.f32 %v3619_v52, %v1748_v56 }
 0x1bb   :  { %v3652_v25 = vpop.f32.mrf.mxu0 }
 0x1bd   :  { %v3653_v8 = vpop.f32.mrf.mxu0 }
 0x1be   :  { %v3654_v29 = vadd.f32 %v3653_v8, %v3652_v25 }
 0x1c0   :  { %v1964_v16 = vadd.f32 %v3654_v29, %v1852_v30 }
 0x1c4   :  { %v3687_v46 = vpop.f32.mrf.mxu1 }
 0x1c6   :  { %v3688_v0 = vpop.f32.mrf.mxu1 }
 0x1c7   :  { %v3689_v17 = vadd.f32 %v3688_v0, %v3687_v46 }
 0x1c9   :  { %v2196_v48 = vadd.f32 %v3689_v17, %v1964_v16 }
 0x1dd   :  { %v3722_v14 = vpop.f32.mrf.mxu0 }
 0x1df   :  { %v3723_v37 = vpop.f32.mrf.mxu0 }
 0x1e0   :  { %v3724_v42 = vadd.f32 %v3723_v37, %v3722_v14 }
 0x1e2   :  { %v2334_v38 = vadd.f32 %v3724_v42, %v2196_v48 }
 0x1e6   :  { %v3757_v51 = vpop.f32.mrf.mxu1 }
 0x1e8   :  { %v3758_v43 = vpop.f32.mrf.mxu1 }
 0x1e9   :  { %v3759_v54 = vadd.f32 %v3758_v43, %v3757_v51 }
 0x1eb   :  { %v2442_v1 = vadd.f32 %v3759_v54, %v2334_v38 }
 0x1ff   :  { %v3792_v9 = vpop.f32.mrf.mxu0 }
 0x201   :  { %v3793_v55 = vpop.f32.mrf.mxu0 }
 0x202   :  { %v3794_v20 = vadd.f32 %v3793_v55, %v3792_v9 }
 0x204   :  { %v2610_v19 = vadd.f32 %v3794_v20, %v2442_v1 }
 0x206   :  { %v2790_v5 = vpop.f32.mrf.mxu0 }
 0x207   :  { %v3827_v60 = vpop.f32.mrf.mxu1 }
 0x208   :  { %v3854_v35 = vpop.f32.mrf.mxu0 }
 0x209   :  { %v3828_v11 = vpop.f32.mrf.mxu1 }
 0x20a   :  { %v3829_v32 = vadd.f32 %v3828_v11, %v3827_v60 }
 0x20c   :  { %v2871_v44 = vpop.f32.mrf.mxu1  ;;  %v2714_v62 = vadd.f32 %v3829_v32, %v2610_v19 }
 0x20e   :  { %v3861_v26 = vpop.f32.mrf.mxu1  ;;  %v2947_v31 = vpop.f32.mrf.mxu0  ;;  %v2791_v63 = vadd.f32 %v2790_v5, %v2714_v62 }
 0x210   :  { %v3868_v13 = vpop.f32.mrf.mxu0  ;;  %v2872_v47 = vadd.f32 %v2871_v44, %v2791_v63 }
 0x211   :  { %v3022_v58 = vpop.f32.mrf.mxu1 }
 0x212   :  { %v2948_v21 = vadd.f32 %v2947_v31, %v2872_v47 }
 0x213   :  { %v3875_v34 = vpop.f32.mrf.mxu1 }
 0x214   :  { %v3099_v18 = vpop.f32.mrf.mxu0  ;;  %v3023_v39 = vadd.f32 %v3022_v58, %v2948_v21 }
 0x216   :  { %v3882_v36 = vpop.f32.mrf.mxu0  ;;  %v3100_v6 = vadd.f32 %v3099_v18, %v3023_v39  ;;  %v3172_v3 = vpop.f32.mrf.mxu1 }
 0x218   :  { %v3173_v49 = vadd.f32 %v3172_v3, %v3100_v6  ;;  %v3889_v40 = vpop.f32.mrf.mxu1 }
 0x21a   :  { %v3176_v50 = vmul.f32 1.442695, %v3173_v49 }
 0x21c   :  { %3893 = vpow2.f32 %v3176_v50 }
 0x229   :  { %v3894_v45 = vpop.eup %3893 }
 0x22a   :  { %v3179_v33 = vsel %vm3178_vm2, %v3894_v45, 0.0 }
 0x22b   :  { %3180 = vadd.xlane.f32.xlu0 %v3179_v33 }
 0x2b4   :  { %v3181_v53 = vpop.xlane.xlu0 %3180 }
 0x2b5   :  { %3895 = vrcp.f32 %v3181_v53 }
 0x2c2   :  { %v3896_v7 = vpop.eup %3895 }
 0x2c3   :  { %v3183_v4 = vmul.f32 %v3896_v7, %v3894_v45 }
 0x2c5   :  { %3184 = vst.msk [vmem:[#allocation2] sm:$0xff] %vm3178_vm2, %v3183_v4 }
 0x2c6   :  { %3908 = shalt.err (!%p3905_p4)
}
 0x2c7   :  { %3194 = dma.vmem_to_hbm [thread:$0]  %s3192_s6, 128, %s6049_s3, [#allocation3]  }
 0x2c8   :  { %3917 = dma.done.wait [#allocation3], 128  }
 0x2c9   :  { %3918 = vsyncadd [#allocation3], 4294967168 }
 0x2ca   :  { %3198 = vsyncpa [#allocation3], 1 }

</bundles_post_ra>
